<compile_context>
chip_gen: v5e
topology: v5e:2x2
jax: 0.10.0
libtpu: 0.0.40
codegen_flags: <defaults>
</compile_context>

<pallas_src>
import functools

import jax
import jax.numpy as jnp
from jax.experimental import pallas as pl
from jax.experimental.pallas import tpu as pltpu

EPS = 1e-5


# ----------------------------------------------------------------- kernel side

def _mish(x):
    # mish(x) = x * tanh(softplus(x)).  With e = exp(min(x, 20)) (PyTorch's
    # softplus threshold), tanh(log1p(e)) == (e*e + 2e) / (e*e + 2e + 2), so a
    # single EUP exp + one approx EUP reciprocal replaces exp+log+tanh.
    e = jnp.exp(jnp.minimum(x, 20.0))
    n = e * (e + 2.0)
    return x * n * pl.reciprocal(n + 2.0, approx=True)


def _link2_kernel(x_ref, wa_ref, w3_ref, w4_ref, w5_ref,
                  bias12_ref, g12_ref, b12_ref, g34_ref, b34_ref,
                  g5_ref, b5_ref, mask_ref,
                  out_ref, y1_ref, y2_ref,
                  *, N, H, W, C, Cout, M):
    Hp, Wp = H + 2, W + 2
    Rp = N * Hp * Wp            # padded-grid pixel count (== conv5 output size)
    R = N * H * W               # interior pixel count (bn1..bn4 statistics)
    C2 = 2 * C

    interior = mask_ref[...] > 0.5                    # (1, Rp) bool

    # 3x3 tap offsets in padded-flat pixel coordinates (ky-major, kx-minor).
    offs = [(ky - 1) * Wp + (kx - 1) for ky in range(3) for kx in range(3)]

    def conv3x3(src_ref, w_ref):
        # sum_t  w_ref[t] (Co, Ci) @ src_ref[:, M+o_t : M+o_t+Rp] (Ci, Rp)
        # Interior output pixels only ever read in-image columns (ring columns of
        # the source are zero == conv padding); ring output pixels are don't-care.
        acc = None
        for t, o in enumerate(offs):
            tap = src_ref[:, pl.ds(M + o, Rp)]
            part = jnp.dot(w_ref[t], tap, preferred_element_type=jnp.float32)
            acc = part if acc is None else acc + part
        return acc                                     # (Co, Rp) f32

    def bn_interior(v, g, b):
        # Training-mode BatchNorm; statistics over the R interior pixels only
        # (ring columns hold don't-care values, excluded via the mask).
        # Two-pass (shifted) variance for numerical robustness.
        vm = jnp.where(interior, v, 0.0)
        mean = jnp.sum(vm, axis=1, keepdims=True) * (1.0 / R)
        d = v - mean
        var = jnp.sum(jnp.where(interior, d * d, 0.0),
                      axis=1, keepdims=True) * (1.0 / R)
        return g * d * jax.lax.rsqrt(var + EPS) + b

    # Zero ONLY the margin strips of the stage-2 scratch buffers (interior+ring
    # columns are fully overwritten below).
    zpad = jnp.zeros((C, M), jnp.bfloat16)
    y1_ref[:, pl.ds(0, M)] = zpad
    y1_ref[:, pl.ds(M + Rp, M)] = zpad
    y2_ref[:, pl.ds(0, M)] = zpad
    y2_ref[:, pl.ds(M + Rp, M)] = zpad

    # ---- stage 1: [conv1(x) ; conv2(2x)+bias] as one tap-matmul chain --------
    c12 = conv3x3(x_ref, wa_ref) + bias12_ref[...]                 # (C2, Rp)
    y12 = bn_interior(_mish(c12), g12_ref[...], b12_ref[...])
    y12 = jnp.where(interior, y12, 0.0)        # ring must be 0 == conv3/4 padding
    y1_ref[:, pl.ds(M, Rp)] = y12[:C].astype(jnp.bfloat16)
    y2_ref[:, pl.ds(M, Rp)] = y12[C:].astype(jnp.bfloat16)

    # ---- stage 2: conv3(y1) and conv4(y2) as separate dense chains -----------
    cout1 = conv3x3(y1_ref, w3_ref)                                # (C, Rp)
    cout2 = conv3x3(y2_ref, w4_ref)                                # (C, Rp)
    m1 = _mish(cout1)
    m2 = _mish(cout2)
    g34 = g34_ref[...]
    b34 = b34_ref[...]
    d3 = bn_interior(cout1 + m2, g34[:C], b34[:C])
    d4 = bn_interior(cout2 + m1, g34[C:], b34[C:])
    mid = jnp.where(interior, d3 + d4, 0.0)    # zero ring == conv5's padding ring

    # ---- stage 3: conv5 (1x1, padding=1) + mish + bn5 -------------------------
    # conv5 has no bias and mish(0) == 0, so ring outputs are exactly zero and
    # bn5's batch statistics run unmasked over all Rp padded-grid pixels, which
    # is exactly the (N, Cout, H+2, W+2) tensor PyTorch's bn5 sees.
    c5 = jnp.dot(w5_ref[...], mid.astype(jnp.bfloat16),
                 preferred_element_type=jnp.float32)               # (Cout, Rp)
    m5 = _mish(c5)
    mean5 = jnp.sum(m5, axis=1, keepdims=True) * (1.0 / Rp)
    d5 = m5 - mean5
    var5 = jnp.sum(d5 * d5, axis=1, keepdims=True) * (1.0 / Rp)
    out_ref[...] = g5_ref[...] * d5 * jax.lax.rsqrt(var5 + EPS) + b5_ref[...]


# ------------------------------------------------------------- one-time prep

def _expand_grouped(w, groups, cin):
    # PyTorch grouped weight (Cout, Cin//groups, kh, kw) -> dense (Cout, Cin, kh, kw)
    co, cig, kh, kw = w.shape
    og = co // groups
    dense = jnp.zeros((co, cin, kh, kw), jnp.float32)
    for g in range(groups):
        dense = dense.at[g * og:(g + 1) * og, g * cig:(g + 1) * cig].set(
            w[g * og:(g + 1) * og].astype(jnp.float32))
    return dense


def _taps(dense):
    # (Co, Ci, 3, 3) -> (9, Co, Ci), tap index t = ky*3 + kx
    co, ci = dense.shape[0], dense.shape[1]
    return jnp.transpose(dense, (2, 3, 0, 1)).reshape(9, co, ci)


def prepare_link2(p, x_shape, *, gdiv, kernel_size, strides):
    """Hoisted, one-time parameter preprocessing (review item: not per-forward)."""
    assert kernel_size == 3 and strides == 1   # TODO(synk): ks=5 (pad=2) / stride>1
    N, C, H, W = x_shape
    assert C % gdiv == 0 and C % 2 == 0 and C % 4 == 0 and C % 8 == 0
    Cout = p["w5"].shape[0]
    Hp, Wp = H + 2, W + 2
    Rp = N * Hp * Wp
    M = ((Wp + 1 + 7) // 8) * 8                # lane margin >= max tap offset Wp+1

    w1d = _expand_grouped(p["w1"], C // gdiv, C)
    w2d = _expand_grouped(p["w2"], C // gdiv, C)
    # Stage-1 combined per-tap weight: output rows [conv1 | conv2*2], K = C only.
    wa = jnp.concatenate([_taps(w1d), 2.0 * _taps(w2d)], axis=1).astype(jnp.bfloat16)
    w3 = _taps(_expand_grouped(p["w3"], C // 2, C)).astype(jnp.bfloat16)   # (9,C,C)
    w4 = _taps(_expand_grouped(p["w4"], C // 4, C)).astype(jnp.bfloat16)   # (9,C,C)
    w5 = _expand_grouped(p["w5"], C // 8, C)[:, :, 0, 0].astype(jnp.bfloat16)  # (Cout,C)

    col = lambda v: v.astype(jnp.float32).reshape(-1, 1)
    bias12 = col(jnp.concatenate([jnp.zeros((C,), jnp.float32),
                                  p["conv2_bias"].astype(jnp.float32)]))
    g12 = col(jnp.concatenate([p["bn1_g"], p["bn2_g"]]))
    b12 = col(jnp.concatenate([p["bn1_b"], p["bn2_b"]]))
    g34 = col(jnp.concatenate([p["bn3_g"], p["bn4_g"]]))
    b34 = col(jnp.concatenate([p["bn3_b"], p["bn4_b"]]))
    g5 = col(p["bn5_g"])
    b5 = col(p["bn5_b"])

    # Interior mask over the padded-flat pixel axis (shape-dependent, made once).
    q = jnp.arange(Rp)
    r = q % (Hp * Wp)
    yp = r // Wp
    xp = r % Wp
    interior = ((yp >= 1) & (yp <= H) & (xp >= 1) & (xp <= W))
    interior = interior.astype(jnp.float32).reshape(1, Rp)

    dims = dict(N=N, C=C, H=H, W=W, Cout=Cout, M=M)
    arrays = (wa, w3, w4, w5, bias12, g12, b12, g34, b34, g5, b5, interior)
    return dims, arrays


# ---------------------------------------------------------------- glue (JAX)

def _full_spec(shape):
    zero = (0,) * len(shape)
    return pl.BlockSpec(shape, lambda i, _z=zero: _z)


def basic_link2_block(x_nchw, prep):
    dims, (wa, w3, w4, w5, bias12, g12, b12, g34, b34, g5, b5, interior) = prep
    N, C, H, W = dims["N"], dims["C"], dims["H"], dims["W"]
    Cout, M = dims["Cout"], dims["M"]
    Hp, Wp = H + 2, W + 2
    Rp = N * Hp * Wp
    Lp = Rp + 2 * M
    assert x_nchw.shape == (N, C, H, W)

    # Layout plumbing (pure XLA, tiny): NCHW -> channels on sublanes, padded-grid
    # flat pixels on lanes (zero spatial ring), plus a zero lane margin of M on
    # both sides so every 3x3 tap in the kernel is a static in-bounds lane slice.
    x_flat = jnp.pad(jnp.transpose(x_nchw, (1, 0, 2, 3)).astype(jnp.float32),
                     ((0, 0), (0, 0), (1, 1), (1, 1))).reshape(C, Rp)
    x_flat = jnp.pad(x_flat, ((0, 0), (M, M))).astype(jnp.bfloat16)      # (C, Lp)

    args = (x_flat, wa, w3, w4, w5, bias12, g12, b12, g34, b34, g5, b5, interior)
    kernel = functools.partial(_link2_kernel,
                               N=N, H=H, W=W, C=C, Cout=Cout, M=M)

    out = pl.pallas_call(
        kernel,
        out_shape=jax.ShapeDtypeStruct((Cout, Rp), jnp.float32),
        grid_spec=pltpu.PrefetchScalarGridSpec(
            num_scalar_prefetch=0,
            grid=(1,),
            in_specs=[_full_spec(a.shape) for a in args],
            out_specs=_full_spec((Cout, Rp)),
            scratch_shapes=[pltpu.VMEM((C, Lp), jnp.bfloat16),   # y1 (margin-extended)
                            pltpu.VMEM((C, Lp), jnp.bfloat16)],  # y2
        ),
        compiler_params=pltpu.CompilerParams(
            dimension_semantics=("arbitrary",),
            vmem_limit_bytes=32 * 1024 * 1024),
    )(*args)

    # Lane-dense (Cout, N*Hp*Wp) slab -> NCHW(+ring).  No border scatter needed.
    return jnp.transpose(out.reshape(Cout, N, Hp, Wp), (1, 0, 2, 3))


# -------------------------------------------------------- pure-JAX reference

def _mish_ref(x):
    sp = jnp.where(x > 20.0, x, jnp.log1p(jnp.exp(jnp.minimum(x, 20.0))))
    return x * jnp.tanh(sp)


def _conv_ref(x, w, stride, pad, groups, bias=None):
    out = jax.lax.conv_general_dilated(
        x, w, window_strides=(stride, stride),
        padding=[(pad, pad), (pad, pad)],
        dimension_numbers=("NCHW", "OIHW", "NCHW"),
        feature_group_count=groups,
        precision=jax.lax.Precision.HIGHEST)
    if bias is not None:
        out = out + bias[None, :, None, None]
    return out


def _bn_ref(x, g, b):
    mean = jnp.mean(x, axis=(0, 2, 3), keepdims=True)
    var = jnp.mean(jnp.square(x - mean), axis=(0, 2, 3), keepdims=True)
    return (g[None, :, None, None] * (x - mean) / jnp.sqrt(var + EPS)
            + b[None, :, None, None])


def reference_forward(x, p, *, gdiv, kernel_size, strides):
    Cin = x.shape[1]
    pad34 = 1 if kernel_size == 3 else 2
    c1 = _conv_ref(x, p["w1"], 1, 1, Cin // gdiv)
    c2 = _conv_ref(x * 2, p["w2"], 1, 1, Cin // gdiv, bias=p["conv2_bias"])
    y1 = _bn_ref(_mish_ref(c1), p["bn1_g"], p["bn1_b"])
    y2 = _bn_ref(_mish_ref(c2), p["bn2_g"], p["bn2_b"])
    cout1 = _conv_ref(y1, p["w3"], 1, pad34, Cin // 2)
    cout2 = _conv_ref(y2, p["w4"], 1, pad34, Cin // 4)
    out = (_bn_ref(cout1 + _mish_ref(cout2), p["bn3_g"], p["bn3_b"])
           + _bn_ref(cout2 + _mish_ref(cout1), p["bn4_g"], p["bn4_b"]))
    out = _bn_ref(_mish_ref(_conv_ref(out, p["w5"], strides, 1, Cin // 8)),
                  p["bn5_g"], p["bn5_b"])
    return out


if __name__ == "__main__":
    N, Cin, Cout, H, W = 2, 8, 16, 16, 16
    gdiv, ksize, strides = 2, 3, 1

    key = jax.random.PRNGKey(0)
    ks = jax.random.split(key, 18)

    params = {
        "w1": 0.3 * jax.random.normal(ks[0], (Cin, gdiv, 3, 3), jnp.float32),
        "w2": 0.3 * jax.random.normal(ks[1], (Cin, gdiv, 3, 3), jnp.float32),
        "conv2_bias": 0.1 * jax.random.normal(ks[2], (Cin,), jnp.float32),
        "w3": 0.3 * jax.random.normal(ks[3], (Cin, 2, ksize, ksize), jnp.float32),
        "w4": 0.3 * jax.random.normal(ks[4], (Cin, 4, ksize, ksize), jnp.float32),
        "w5": 0.3 * jax.random.normal(ks[5], (Cout, Cin, 1, 1), jnp.float32),
        "bn1_g": 1.0 + 0.1 * jax.random.normal(ks[6], (Cin,), jnp.float32),
        "bn2_g": 1.0 + 0.1 * jax.random.normal(ks[7], (Cin,), jnp.float32),
        "bn3_g": 1.0 + 0.1 * jax.random.normal(ks[8], (Cin,), jnp.float32),
        "bn4_g": 1.0 + 0.1 * jax.random.normal(ks[9], (Cin,), jnp.float32),
        "bn5_g": 1.0 + 0.1 * jax.random.normal(ks[10], (Cout,), jnp.float32),
        "bn1_b": 0.05 * jax.random.normal(ks[11], (Cin,), jnp.float32),
        "bn2_b": 0.05 * jax.random.normal(ks[12], (Cin,), jnp.float32),
        "bn3_b": 0.05 * jax.random.normal(ks[13], (Cin,), jnp.float32),
        "bn4_b": 0.05 * jax.random.normal(ks[14], (Cin,), jnp.float32),
        "bn5_b": 0.05 * jax.random.normal(ks[15], (Cout,), jnp.float32),
    }

    x = jax.random.normal(ks[16], (N, Cin, H, W), jnp.float32)   # NCHW, as PyTorch

    # One-time prep (weights/params packing + interior mask), then the forward.
    prep = prepare_link2(params, x.shape, gdiv=gdiv, kernel_size=ksize,
                         strides=strides)
    fwd = jax.jit(functools.partial(basic_link2_block, prep=prep))

    out = jax.block_until_ready(fwd(x))

    ref = jax.block_until_ready(
        reference_forward(x, params, gdiv=gdiv, kernel_size=ksize, strides=strides))

    assert out.shape == ref.shape == (N, Cout, H + 2, W + 2), (out.shape, ref.shape)
    # The kernel runs its matmuls single-pass bf16 on the MXU (f32 accumulation)
    # and uses an approximate reciprocal in mish; the reference is full-f32
    # HIGHEST precision, hence the relaxed tolerance.
    max_err = float(jnp.max(jnp.abs(out - ref)))
    assert max_err < 6e-2, f"mismatch vs reference: max abs err = {max_err}"

    print("KERNEL_OK")
</pallas_src>

<mosaic_0001>
module attributes {stable_mosaic.version = 11 : i64} {
  func.func @_link2_kernel(%arg0: i32, %arg1: memref<8x696xbf16, #tpu.memory_space<vmem>>, %arg2: memref<9x16x8xbf16, #tpu.memory_space<vmem>>, %arg3: memref<9x8x8xbf16, #tpu.memory_space<vmem>>, %arg4: memref<9x8x8xbf16, #tpu.memory_space<vmem>>, %arg5: memref<16x8xbf16, #tpu.memory_space<vmem>>, %arg6: memref<16x1xf32, #tpu.memory_space<vmem>>, %arg7: memref<16x1xf32, #tpu.memory_space<vmem>>, %arg8: memref<16x1xf32, #tpu.memory_space<vmem>>, %arg9: memref<16x1xf32, #tpu.memory_space<vmem>>, %arg10: memref<16x1xf32, #tpu.memory_space<vmem>>, %arg11: memref<16x1xf32, #tpu.memory_space<vmem>>, %arg12: memref<16x1xf32, #tpu.memory_space<vmem>>, %arg13: memref<1x648xf32, #tpu.memory_space<vmem>>, %arg14: memref<16x648xf32, #tpu.memory_space<vmem>>, %arg15: memref<8x696xbf16, #tpu.memory_space<vmem>>, %arg16: memref<8x696xbf16, #tpu.memory_space<vmem>>) attributes {dimension_semantics = [#tpu.dimension_semantics<arbitrary>], iteration_bounds = array<i64: 1>, scalar_prefetch = 0 : i64, scratch_operands = 2 : i64, tpu.core_type = #tpu.core_type<tc>, window_params = [{pipeline_mode = #tpu.pipeline_mode<synchronous>, transform_indices = @transform_0, window_bounds = array<i64: 8, 696>}, {pipeline_mode = #tpu.pipeline_mode<synchronous>, transform_indices = @transform_1, window_bounds = array<i64: 9, 16, 8>}, {pipeline_mode = #tpu.pipeline_mode<synchronous>, transform_indices = @transform_2, window_bounds = array<i64: 9, 8, 8>}, {pipeline_mode = #tpu.pipeline_mode<synchronous>, transform_indices = @transform_3, window_bounds = array<i64: 9, 8, 8>}, {pipeline_mode = #tpu.pipeline_mode<synchronous>, transform_indices = @transform_4, window_bounds = array<i64: 16, 8>}, {pipeline_mode = #tpu.pipeline_mode<synchronous>, transform_indices = @transform_5, window_bounds = array<i64: 16, 1>}, {pipeline_mode = #tpu.pipeline_mode<synchronous>, transform_indices = @transform_6, window_bounds = array<i64: 16, 1>}, {pipeline_mode = #tpu.pipeline_mode<synchronous>, transform_indices = @transform_7, window_bounds = array<i64: 16, 1>}, {pipeline_mode = #tpu.pipeline_mode<synchronous>, transform_indices = @transform_8, window_bounds = array<i64: 16, 1>}, {pipeline_mode = #tpu.pipeline_mode<synchronous>, transform_indices = @transform_9, window_bounds = array<i64: 16, 1>}, {pipeline_mode = #tpu.pipeline_mode<synchronous>, transform_indices = @transform_10, window_bounds = array<i64: 16, 1>}, {pipeline_mode = #tpu.pipeline_mode<synchronous>, transform_indices = @transform_11, window_bounds = array<i64: 16, 1>}, {pipeline_mode = #tpu.pipeline_mode<synchronous>, transform_indices = @transform_12, window_bounds = array<i64: 1, 648>}, {pipeline_mode = #tpu.pipeline_mode<synchronous>, transform_indices = @transform_13, window_bounds = array<i64: 16, 648>}]} {
    %c0 = arith.constant 0 : index
    %c0_0 = arith.constant 0 : index
    %0 = vector.load %arg13[%c0, %c0_0] : memref<1x648xf32, #tpu.memory_space<vmem>>, vector<1x648xf32>
    %cst = arith.constant 5.000000e-01 : f32
    %1 = vector.broadcast %cst : f32 to vector<1x648xf32>
    %2 = arith.cmpf ogt, %0, %1 : vector<1x648xf32>
    %cst_1 = arith.constant 0.000000e+00 : bf16
    %3 = vector.broadcast %cst_1 : bf16 to vector<8x24xbf16>
    %c0_2 = arith.constant 0 : index
    %c0_3 = arith.constant 0 : index
    %4 = vector.load %arg15[%c0_2, %c0_3] : memref<8x696xbf16, #tpu.memory_space<vmem>>, vector<8x24xbf16>
    tpu.vector_store %arg15[%c0_2, %c0_3], %3 {strides = array<i32>} : memref<8x696xbf16, #tpu.memory_space<vmem>>, vector<8x24xbf16>,
    %c0_4 = arith.constant 0 : index
    %c672 = arith.constant 672 : index
    %5 = vector.load %arg15[%c0_4, %c672] : memref<8x696xbf16, #tpu.memory_space<vmem>>, vector<8x24xbf16>
    tpu.vector_store %arg15[%c0_4, %c672], %3 {strides = array<i32>} : memref<8x696xbf16, #tpu.memory_space<vmem>>, vector<8x24xbf16>,
    %c0_5 = arith.constant 0 : index
    %c0_6 = arith.constant 0 : index
    %6 = vector.load %arg16[%c0_5, %c0_6] : memref<8x696xbf16, #tpu.memory_space<vmem>>, vector<8x24xbf16>
    tpu.vector_store %arg16[%c0_5, %c0_6], %3 {strides = array<i32>} : memref<8x696xbf16, #tpu.memory_space<vmem>>, vector<8x24xbf16>,
    %c0_7 = arith.constant 0 : index
    %c672_8 = arith.constant 672 : index
    %7 = vector.load %arg16[%c0_7, %c672_8] : memref<8x696xbf16, #tpu.memory_space<vmem>>, vector<8x24xbf16>
    tpu.vector_store %arg16[%c0_7, %c672_8], %3 {strides = array<i32>} : memref<8x696xbf16, #tpu.memory_space<vmem>>, vector<8x24xbf16>,
    %c0_9 = arith.constant 0 : index
    %c5 = arith.constant 5 : index
    %8 = vector.load %arg1[%c0_9, %c5] : memref<8x696xbf16, #tpu.memory_space<vmem>>, vector<8x648xbf16>
    %c0_10 = arith.constant 0 : index
    %c0_11 = arith.constant 0 : index
    %c0_12 = arith.constant 0 : index
    %9 = vector.load %arg2[%c0_10, %c0_11, %c0_12] : memref<9x16x8xbf16, #tpu.memory_space<vmem>>, vector<1x16x8xbf16>
    %10 = vector.shape_cast %9 : vector<1x16x8xbf16> to vector<16x8xbf16>
    %cst_13 = arith.constant dense<0.000000e+00> : vector<16x648xf32>
    %11 = tpu.matmul %10, %8, %cst_13 {dimension_numbers = #tpu.dot_dimension_numbers<[1], [0], [0], [1], [0, 0, 1, 1], [], []>} : vector<16x8xbf16>, vector<8x648xbf16>, vector<16x648xf32> -> vector<16x648xf32>
    %c0_14 = arith.constant 0 : index
    %c6 = arith.constant 6 : index
    %12 = vector.load %arg1[%c0_14, %c6] : memref<8x696xbf16, #tpu.memory_space<vmem>>, vector<8x648xbf16>
    %c1 = arith.constant 1 : index
    %c0_15 = arith.constant 0 : index
    %c0_16 = arith.constant 0 : index
    %13 = vector.load %arg2[%c1, %c0_15, %c0_16] : memref<9x16x8xbf16, #tpu.memory_space<vmem>>, vector<1x16x8xbf16>
    %14 = vector.shape_cast %13 : vector<1x16x8xbf16> to vector<16x8xbf16>
    %cst_17 = arith.constant dense<0.000000e+00> : vector<16x648xf32>
    %15 = tpu.matmul %14, %12, %cst_17 {dimension_numbers = #tpu.dot_dimension_numbers<[1], [0], [0], [1], [0, 0, 1, 1], [], []>} : vector<16x8xbf16>, vector<8x648xbf16>, vector<16x648xf32> -> vector<16x648xf32>
    %16 = arith.addf %11, %15 : vector<16x648xf32>
    %c0_18 = arith.constant 0 : index
    %c7 = arith.constant 7 : index
    %17 = vector.load %arg1[%c0_18, %c7] : memref<8x696xbf16, #tpu.memory_space<vmem>>, vector<8x648xbf16>
    %c2 = arith.constant 2 : index
    %c0_19 = arith.constant 0 : index
    %c0_20 = arith.constant 0 : index
    %18 = vector.load %arg2[%c2, %c0_19, %c0_20] : memref<9x16x8xbf16, #tpu.memory_space<vmem>>, vector<1x16x8xbf16>
    %19 = vector.shape_cast %18 : vector<1x16x8xbf16> to vector<16x8xbf16>
    %cst_21 = arith.constant dense<0.000000e+00> : vector<16x648xf32>
    %20 = tpu.matmul %19, %17, %cst_21 {dimension_numbers = #tpu.dot_dimension_numbers<[1], [0], [0], [1], [0, 0, 1, 1], [], []>} : vector<16x8xbf16>, vector<8x648xbf16>, vector<16x648xf32> -> vector<16x648xf32>
    %21 = arith.addf %16, %20 : vector<16x648xf32>
    %c0_22 = arith.constant 0 : index
    %c23 = arith.constant 23 : index
    %22 = vector.load %arg1[%c0_22, %c23] : memref<8x696xbf16, #tpu.memory_space<vmem>>, vector<8x648xbf16>
    %c3 = arith.constant 3 : index
    %c0_23 = arith.constant 0 : index
    %c0_24 = arith.constant 0 : index
    %23 = vector.load %arg2[%c3, %c0_23, %c0_24] : memref<9x16x8xbf16, #tpu.memory_space<vmem>>, vector<1x16x8xbf16>
    %24 = vector.shape_cast %23 : vector<1x16x8xbf16> to vector<16x8xbf16>
    %cst_25 = arith.constant dense<0.000000e+00> : vector<16x648xf32>
    %25 = tpu.matmul %24, %22, %cst_25 {dimension_numbers = #tpu.dot_dimension_numbers<[1], [0], [0], [1], [0, 0, 1, 1], [], []>} : vector<16x8xbf16>, vector<8x648xbf16>, vector<16x648xf32> -> vector<16x648xf32>
    %26 = arith.addf %21, %25 : vector<16x648xf32>
    %c0_26 = arith.constant 0 : index
    %c24 = arith.constant 24 : index
    %27 = vector.load %arg1[%c0_26, %c24] : memref<8x696xbf16, #tpu.memory_space<vmem>>, vector<8x648xbf16>
    %c4 = arith.constant 4 : index
    %c0_27 = arith.constant 0 : index
    %c0_28 = arith.constant 0 : index
    %28 = vector.load %arg2[%c4, %c0_27, %c0_28] : memref<9x16x8xbf16, #tpu.memory_space<vmem>>, vector<1x16x8xbf16>
    %29 = vector.shape_cast %28 : vector<1x16x8xbf16> to vector<16x8xbf16>
    %cst_29 = arith.constant dense<0.000000e+00> : vector<16x648xf32>
    %30 = tpu.matmul %29, %27, %cst_29 {dimension_numbers = #tpu.dot_dimension_numbers<[1], [0], [0], [1], [0, 0, 1, 1], [], []>} : vector<16x8xbf16>, vector<8x648xbf16>, vector<16x648xf32> -> vector<16x648xf32>
    %31 = arith.addf %26, %30 : vector<16x648xf32>
    %c0_30 = arith.constant 0 : index
    %c25 = arith.constant 25 : index
    %32 = vector.load %arg1[%c0_30, %c25] : memref<8x696xbf16, #tpu.memory_space<vmem>>, vector<8x648xbf16>
    %c5_31 = arith.constant 5 : index
    %c0_32 = arith.constant 0 : index
    %c0_33 = arith.constant 0 : index
    %33 = vector.load %arg2[%c5_31, %c0_32, %c0_33] : memref<9x16x8xbf16, #tpu.memory_space<vmem>>, vector<1x16x8xbf16>
    %34 = vector.shape_cast %33 : vector<1x16x8xbf16> to vector<16x8xbf16>
    %cst_34 = arith.constant dense<0.000000e+00> : vector<16x648xf32>
    %35 = tpu.matmul %34, %32, %cst_34 {dimension_numbers = #tpu.dot_dimension_numbers<[1], [0], [0], [1], [0, 0, 1, 1], [], []>} : vector<16x8xbf16>, vector<8x648xbf16>, vector<16x648xf32> -> vector<16x648xf32>
    %36 = arith.addf %31, %35 : vector<16x648xf32>
    %c0_35 = arith.constant 0 : index
    %c41 = arith.constant 41 : index
    %37 = vector.load %arg1[%c0_35, %c41] : memref<8x696xbf16, #tpu.memory_space<vmem>>, vector<8x648xbf16>
    %c6_36 = arith.constant 6 : index
    %c0_37 = arith.constant 0 : index
    %c0_38 = arith.constant 0 : index
    %38 = vector.load %arg2[%c6_36, %c0_37, %c0_38] : memref<9x16x8xbf16, #tpu.memory_space<vmem>>, vector<1x16x8xbf16>
    %39 = vector.shape_cast %38 : vector<1x16x8xbf16> to vector<16x8xbf16>
    %cst_39 = arith.constant dense<0.000000e+00> : vector<16x648xf32>
    %40 = tpu.matmul %39, %37, %cst_39 {dimension_numbers = #tpu.dot_dimension_numbers<[1], [0], [0], [1], [0, 0, 1, 1], [], []>} : vector<16x8xbf16>, vector<8x648xbf16>, vector<16x648xf32> -> vector<16x648xf32>
    %41 = arith.addf %36, %40 : vector<16x648xf32>
    %c0_40 = arith.constant 0 : index
    %c42 = arith.constant 42 : index
    %42 = vector.load %arg1[%c0_40, %c42] : memref<8x696xbf16, #tpu.memory_space<vmem>>, vector<8x648xbf16>
    %c7_41 = arith.constant 7 : index
    %c0_42 = arith.constant 0 : index
    %c0_43 = arith.constant 0 : index
    %43 = vector.load %arg2[%c7_41, %c0_42, %c0_43] : memref<9x16x8xbf16, #tpu.memory_space<vmem>>, vector<1x16x8xbf16>
    %44 = vector.shape_cast %43 : vector<1x16x8xbf16> to vector<16x8xbf16>
    %cst_44 = arith.constant dense<0.000000e+00> : vector<16x648xf32>
    %45 = tpu.matmul %44, %42, %cst_44 {dimension_numbers = #tpu.dot_dimension_numbers<[1], [0], [0], [1], [0, 0, 1, 1], [], []>} : vector<16x8xbf16>, vector<8x648xbf16>, vector<16x648xf32> -> vector<16x648xf32>
    %46 = arith.addf %41, %45 : vector<16x648xf32>
    %c0_45 = arith.constant 0 : index
    %c43 = arith.constant 43 : index
    %47 = vector.load %arg1[%c0_45, %c43] : memref<8x696xbf16, #tpu.memory_space<vmem>>, vector<8x648xbf16>
    %c8 = arith.constant 8 : index
    %c0_46 = arith.constant 0 : index
    %c0_47 = arith.constant 0 : index
    %48 = vector.load %arg2[%c8, %c0_46, %c0_47] : memref<9x16x8xbf16, #tpu.memory_space<vmem>>, vector<1x16x8xbf16>
    %49 = vector.shape_cast %48 : vector<1x16x8xbf16> to vector<16x8xbf16>
    %cst_48 = arith.constant dense<0.000000e+00> : vector<16x648xf32>
    %50 = tpu.matmul %49, %47, %cst_48 {dimension_numbers = #tpu.dot_dimension_numbers<[1], [0], [0], [1], [0, 0, 1, 1], [], []>} : vector<16x8xbf16>, vector<8x648xbf16>, vector<16x648xf32> -> vector<16x648xf32>
    %51 = arith.addf %46, %50 : vector<16x648xf32>
    %c0_49 = arith.constant 0 : index
    %c0_50 = arith.constant 0 : index
    %52 = vector.load %arg6[%c0_49, %c0_50] : memref<16x1xf32, #tpu.memory_space<vmem>>, vector<16x1xf32>
    %53 = vector.broadcast %52 : vector<16x1xf32> to vector<16x648xf32>
    %54 = arith.addf %51, %53 : vector<16x648xf32>
    %cst_51 = arith.constant 2.000000e+01 : f32
    %55 = vector.broadcast %cst_51 : f32 to vector<16x648xf32>
    %56 = arith.minimumf %54, %55 : vector<16x648xf32>
    %57 = math.exp %56 : vector<16x648xf32>
    %cst_52 = arith.constant 2.000000e+00 : f32
    %58 = vector.broadcast %cst_52 : f32 to vector<16x648xf32>
    %59 = arith.addf %57, %58 : vector<16x648xf32>
    %60 = arith.mulf %57, %59 : vector<16x648xf32>
    %61 = arith.mulf %54, %60 : vector<16x648xf32>
    %cst_53 = arith.constant 2.000000e+00 : f32
    %62 = vector.broadcast %cst_53 : f32 to vector<16x648xf32>
    %63 = arith.addf %60, %62 : vector<16x648xf32>
    %64 = tpu.reciprocal %63 {approx = true} : vector<16x648xf32> -> vector<16x648xf32>
    %65 = arith.mulf %61, %64 : vector<16x648xf32>
    %c0_54 = arith.constant 0 : index
    %c0_55 = arith.constant 0 : index
    %66 = vector.load %arg7[%c0_54, %c0_55] : memref<16x1xf32, #tpu.memory_space<vmem>>, vector<16x1xf32>
    %c0_56 = arith.constant 0 : index
    %c0_57 = arith.constant 0 : index
    %67 = vector.load %arg8[%c0_56, %c0_57] : memref<16x1xf32, #tpu.memory_space<vmem>>, vector<16x1xf32>
    %cst_58 = arith.constant 0.000000e+00 : f32
    %68 = vector.shape_cast %2 : vector<1x648xi1> to vector<1x648xi1>
    %69 = vector.broadcast %68 : vector<1x648xi1> to vector<16x648xi1>
    %70 = vector.broadcast %cst_58 : f32 to vector<16x648xf32>
    %71 = arith.select %69, %65, %70 : vector<16x648xi1>, vector<16x648xf32>
    %cst_59 = arith.constant dense<0.000000e+00> : vector<16xf32>
    %72 = vector.multi_reduction <add>, %71, %cst_59 [1] : vector<16x648xf32> to vector<16xf32>
    %73 = vector.shape_cast %72 : vector<16xf32> to vector<16x1xf32>
    %cst_60 = arith.constant 0.001953125 : f32
    %74 = vector.broadcast %cst_60 : f32 to vector<16x1xf32>
    %75 = arith.mulf %73, %74 : vector<16x1xf32>
    %76 = vector.broadcast %75 : vector<16x1xf32> to vector<16x648xf32>
    %77 = arith.subf %65, %76 : vector<16x648xf32>
    %78 = arith.mulf %77, %77 : vector<16x648xf32>
    %cst_61 = arith.constant 0.000000e+00 : f32
    %79 = vector.shape_cast %2 : vector<1x648xi1> to vector<1x648xi1>
    %80 = vector.broadcast %79 : vector<1x648xi1> to vector<16x648xi1>
    %81 = vector.broadcast %cst_61 : f32 to vector<16x648xf32>
    %82 = arith.select %80, %78, %81 : vector<16x648xi1>, vector<16x648xf32>
    %cst_62 = arith.constant dense<0.000000e+00> : vector<16xf32>
    %83 = vector.multi_reduction <add>, %82, %cst_62 [1] : vector<16x648xf32> to vector<16xf32>
    %84 = vector.shape_cast %83 : vector<16xf32> to vector<16x1xf32>
    %cst_63 = arith.constant 0.001953125 : f32
    %85 = vector.broadcast %cst_63 : f32 to vector<16x1xf32>
    %86 = arith.mulf %84, %85 : vector<16x1xf32>
    %87 = vector.broadcast %66 : vector<16x1xf32> to vector<16x648xf32>
    %88 = arith.mulf %87, %77 : vector<16x648xf32>
    %cst_64 = arith.constant 9.99999974E-6 : f32
    %89 = vector.broadcast %cst_64 : f32 to vector<16x1xf32>
    %90 = arith.addf %86, %89 : vector<16x1xf32>
    %91 = math.rsqrt %90 : vector<16x1xf32>
    %92 = vector.broadcast %91 : vector<16x1xf32> to vector<16x648xf32>
    %93 = arith.mulf %88, %92 : vector<16x648xf32>
    %94 = vector.broadcast %67 : vector<16x1xf32> to vector<16x648xf32>
    %95 = arith.addf %93, %94 : vector<16x648xf32>
    %cst_65 = arith.constant 0.000000e+00 : f32
    %96 = vector.shape_cast %2 : vector<1x648xi1> to vector<1x648xi1>
    %97 = vector.broadcast %96 : vector<1x648xi1> to vector<16x648xi1>
    %98 = vector.broadcast %cst_65 : f32 to vector<16x648xf32>
    %99 = arith.select %97, %95, %98 : vector<16x648xi1>, vector<16x648xf32>
    %100 = vector.extract_strided_slice %99 {offsets = [0, 0], sizes = [8, 648], strides = [1, 1]} : vector<16x648xf32> to vector<8x648xf32>
    %101 = arith.truncf %100 : vector<8x648xf32> to vector<8x648xbf16>
    %c0_66 = arith.constant 0 : index
    %c24_67 = arith.constant 24 : index
    %102 = vector.load %arg15[%c0_66, %c24_67] : memref<8x696xbf16, #tpu.memory_space<vmem>>, vector<8x648xbf16>
    tpu.vector_store %arg15[%c0_66, %c24_67], %101 {strides = array<i32>} : memref<8x696xbf16, #tpu.memory_space<vmem>>, vector<8x648xbf16>,
    %103 = vector.extract_strided_slice %99 {offsets = [8, 0], sizes = [8, 648], strides = [1, 1]} : vector<16x648xf32> to vector<8x648xf32>
    %104 = arith.truncf %103 : vector<8x648xf32> to vector<8x648xbf16>
    %c0_68 = arith.constant 0 : index
    %c24_69 = arith.constant 24 : index
    %105 = vector.load %arg16[%c0_68, %c24_69] : memref<8x696xbf16, #tpu.memory_space<vmem>>, vector<8x648xbf16>
    tpu.vector_store %arg16[%c0_68, %c24_69], %104 {strides = array<i32>} : memref<8x696xbf16, #tpu.memory_space<vmem>>, vector<8x648xbf16>,
    %c0_70 = arith.constant 0 : index
    %c5_71 = arith.constant 5 : index
    %106 = vector.load %arg15[%c0_70, %c5_71] : memref<8x696xbf16, #tpu.memory_space<vmem>>, vector<8x648xbf16>
    %c0_72 = arith.constant 0 : index
    %c0_73 = arith.constant 0 : index
    %c0_74 = arith.constant 0 : index
    %107 = vector.load %arg3[%c0_72, %c0_73, %c0_74] : memref<9x8x8xbf16, #tpu.memory_space<vmem>>, vector<1x8x8xbf16>
    %108 = vector.shape_cast %107 : vector<1x8x8xbf16> to vector<8x8xbf16>
    %cst_75 = arith.constant dense<0.000000e+00> : vector<8x648xf32>
    %109 = tpu.matmul %108, %106, %cst_75 {dimension_numbers = #tpu.dot_dimension_numbers<[1], [0], [0], [1], [0, 0, 1, 1], [], []>} : vector<8x8xbf16>, vector<8x648xbf16>, vector<8x648xf32> -> vector<8x648xf32>
    %c0_76 = arith.constant 0 : index
    %c6_77 = arith.constant 6 : index
    %110 = vector.load %arg15[%c0_76, %c6_77] : memref<8x696xbf16, #tpu.memory_space<vmem>>, vector<8x648xbf16>
    %c1_78 = arith.constant 1 : index
    %c0_79 = arith.constant 0 : index
    %c0_80 = arith.constant 0 : index
    %111 = vector.load %arg3[%c1_78, %c0_79, %c0_80] : memref<9x8x8xbf16, #tpu.memory_space<vmem>>, vector<1x8x8xbf16>
    %112 = vector.shape_cast %111 : vector<1x8x8xbf16> to vector<8x8xbf16>
    %cst_81 = arith.constant dense<0.000000e+00> : vector<8x648xf32>
    %113 = tpu.matmul %112, %110, %cst_81 {dimension_numbers = #tpu.dot_dimension_numbers<[1], [0], [0], [1], [0, 0, 1, 1], [], []>} : vector<8x8xbf16>, vector<8x648xbf16>, vector<8x648xf32> -> vector<8x648xf32>
    %114 = arith.addf %109, %113 : vector<8x648xf32>
    %c0_82 = arith.constant 0 : index
    %c7_83 = arith.constant 7 : index
    %115 = vector.load %arg15[%c0_82, %c7_83] : memref<8x696xbf16, #tpu.memory_space<vmem>>, vector<8x648xbf16>
    %c2_84 = arith.constant 2 : index
    %c0_85 = arith.constant 0 : index
    %c0_86 = arith.constant 0 : index
    %116 = vector.load %arg3[%c2_84, %c0_85, %c0_86] : memref<9x8x8xbf16, #tpu.memory_space<vmem>>, vector<1x8x8xbf16>
    %117 = vector.shape_cast %116 : vector<1x8x8xbf16> to vector<8x8xbf16>
    %cst_87 = arith.constant dense<0.000000e+00> : vector<8x648xf32>
    %118 = tpu.matmul %117, %115, %cst_87 {dimension_numbers = #tpu.dot_dimension_numbers<[1], [0], [0], [1], [0, 0, 1, 1], [], []>} : vector<8x8xbf16>, vector<8x648xbf16>, vector<8x648xf32> -> vector<8x648xf32>
    %119 = arith.addf %114, %118 : vector<8x648xf32>
    %c0_88 = arith.constant 0 : index
    %c23_89 = arith.constant 23 : index
    %120 = vector.load %arg15[%c0_88, %c23_89] : memref<8x696xbf16, #tpu.memory_space<vmem>>, vector<8x648xbf16>
    %c3_90 = arith.constant 3 : index
    %c0_91 = arith.constant 0 : index
    %c0_92 = arith.constant 0 : index
    %121 = vector.load %arg3[%c3_90, %c0_91, %c0_92] : memref<9x8x8xbf16, #tpu.memory_space<vmem>>, vector<1x8x8xbf16>
    %122 = vector.shape_cast %121 : vector<1x8x8xbf16> to vector<8x8xbf16>
    %cst_93 = arith.constant dense<0.000000e+00> : vector<8x648xf32>
    %123 = tpu.matmul %122, %120, %cst_93 {dimension_numbers = #tpu.dot_dimension_numbers<[1], [0], [0], [1], [0, 0, 1, 1], [], []>} : vector<8x8xbf16>, vector<8x648xbf16>, vector<8x648xf32> -> vector<8x648xf32>
    %124 = arith.addf %119, %123 : vector<8x648xf32>
    %c0_94 = arith.constant 0 : index
    %c24_95 = arith.constant 24 : index
    %125 = vector.load %arg15[%c0_94, %c24_95] : memref<8x696xbf16, #tpu.memory_space<vmem>>, vector<8x648xbf16>
    %c4_96 = arith.constant 4 : index
    %c0_97 = arith.constant 0 : index
    %c0_98 = arith.constant 0 : index
    %126 = vector.load %arg3[%c4_96, %c0_97, %c0_98] : memref<9x8x8xbf16, #tpu.memory_space<vmem>>, vector<1x8x8xbf16>
    %127 = vector.shape_cast %126 : vector<1x8x8xbf16> to vector<8x8xbf16>
    %cst_99 = arith.constant dense<0.000000e+00> : vector<8x648xf32>
    %128 = tpu.matmul %127, %125, %cst_99 {dimension_numbers = #tpu.dot_dimension_numbers<[1], [0], [0], [1], [0, 0, 1, 1], [], []>} : vector<8x8xbf16>, vector<8x648xbf16>, vector<8x648xf32> -> vector<8x648xf32>
    %129 = arith.addf %124, %128 : vector<8x648xf32>
    %c0_100 = arith.constant 0 : index
    %c25_101 = arith.constant 25 : index
    %130 = vector.load %arg15[%c0_100, %c25_101] : memref<8x696xbf16, #tpu.memory_space<vmem>>, vector<8x648xbf16>
    %c5_102 = arith.constant 5 : index
    %c0_103 = arith.constant 0 : index
    %c0_104 = arith.constant 0 : index
    %131 = vector.load %arg3[%c5_102, %c0_103, %c0_104] : memref<9x8x8xbf16, #tpu.memory_space<vmem>>, vector<1x8x8xbf16>
    %132 = vector.shape_cast %131 : vector<1x8x8xbf16> to vector<8x8xbf16>
    %cst_105 = arith.constant dense<0.000000e+00> : vector<8x648xf32>
    %133 = tpu.matmul %132, %130, %cst_105 {dimension_numbers = #tpu.dot_dimension_numbers<[1], [0], [0], [1], [0, 0, 1, 1], [], []>} : vector<8x8xbf16>, vector<8x648xbf16>, vector<8x648xf32> -> vector<8x648xf32>
    %134 = arith.addf %129, %133 : vector<8x648xf32>
    %c0_106 = arith.constant 0 : index
    %c41_107 = arith.constant 41 : index
    %135 = vector.load %arg15[%c0_106, %c41_107] : memref<8x696xbf16, #tpu.memory_space<vmem>>, vector<8x648xbf16>
    %c6_108 = arith.constant 6 : index
    %c0_109 = arith.constant 0 : index
    %c0_110 = arith.constant 0 : index
    %136 = vector.load %arg3[%c6_108, %c0_109, %c0_110] : memref<9x8x8xbf16, #tpu.memory_space<vmem>>, vector<1x8x8xbf16>
    %137 = vector.shape_cast %136 : vector<1x8x8xbf16> to vector<8x8xbf16>
    %cst_111 = arith.constant dense<0.000000e+00> : vector<8x648xf32>
    %138 = tpu.matmul %137, %135, %cst_111 {dimension_numbers = #tpu.dot_dimension_numbers<[1], [0], [0], [1], [0, 0, 1, 1], [], []>} : vector<8x8xbf16>, vector<8x648xbf16>, vector<8x648xf32> -> vector<8x648xf32>
    %139 = arith.addf %134, %138 : vector<8x648xf32>
    %c0_112 = arith.constant 0 : index
    %c42_113 = arith.constant 42 : index
    %140 = vector.load %arg15[%c0_112, %c42_113] : memref<8x696xbf16, #tpu.memory_space<vmem>>, vector<8x648xbf16>
    %c7_114 = arith.constant 7 : index
    %c0_115 = arith.constant 0 : index
    %c0_116 = arith.constant 0 : index
    %141 = vector.load %arg3[%c7_114, %c0_115, %c0_116] : memref<9x8x8xbf16, #tpu.memory_space<vmem>>, vector<1x8x8xbf16>
    %142 = vector.shape_cast %141 : vector<1x8x8xbf16> to vector<8x8xbf16>
    %cst_117 = arith.constant dense<0.000000e+00> : vector<8x648xf32>
    %143 = tpu.matmul %142, %140, %cst_117 {dimension_numbers = #tpu.dot_dimension_numbers<[1], [0], [0], [1], [0, 0, 1, 1], [], []>} : vector<8x8xbf16>, vector<8x648xbf16>, vector<8x648xf32> -> vector<8x648xf32>
    %144 = arith.addf %139, %143 : vector<8x648xf32>
    %c0_118 = arith.constant 0 : index
    %c43_119 = arith.constant 43 : index
    %145 = vector.load %arg15[%c0_118, %c43_119] : memref<8x696xbf16, #tpu.memory_space<vmem>>, vector<8x648xbf16>
    %c8_120 = arith.constant 8 : index
    %c0_121 = arith.constant 0 : index
    %c0_122 = arith.constant 0 : index
    %146 = vector.load %arg3[%c8_120, %c0_121, %c0_122] : memref<9x8x8xbf16, #tpu.memory_space<vmem>>, vector<1x8x8xbf16>
    %147 = vector.shape_cast %146 : vector<1x8x8xbf16> to vector<8x8xbf16>
    %cst_123 = arith.constant dense<0.000000e+00> : vector<8x648xf32>
    %148 = tpu.matmul %147, %145, %cst_123 {dimension_numbers = #tpu.dot_dimension_numbers<[1], [0], [0], [1], [0, 0, 1, 1], [], []>} : vector<8x8xbf16>, vector<8x648xbf16>, vector<8x648xf32> -> vector<8x648xf32>
    %149 = arith.addf %144, %148 : vector<8x648xf32>
    %c0_124 = arith.constant 0 : index
    %c5_125 = arith.constant 5 : index
    %150 = vector.load %arg16[%c0_124, %c5_125] : memref<8x696xbf16, #tpu.memory_space<vmem>>, vector<8x648xbf16>
    %c0_126 = arith.constant 0 : index
    %c0_127 = arith.constant 0 : index
    %c0_128 = arith.constant 0 : index
    %151 = vector.load %arg4[%c0_126, %c0_127, %c0_128] : memref<9x8x8xbf16, #tpu.memory_space<vmem>>, vector<1x8x8xbf16>
    %152 = vector.shape_cast %151 : vector<1x8x8xbf16> to vector<8x8xbf16>
    %cst_129 = arith.constant dense<0.000000e+00> : vector<8x648xf32>
    %153 = tpu.matmul %152, %150, %cst_129 {dimension_numbers = #tpu.dot_dimension_numbers<[1], [0], [0], [1], [0, 0, 1, 1], [], []>} : vector<8x8xbf16>, vector<8x648xbf16>, vector<8x648xf32> -> vector<8x648xf32>
    %c0_130 = arith.constant 0 : index
    %c6_131 = arith.constant 6 : index
    %154 = vector.load %arg16[%c0_130, %c6_131] : memref<8x696xbf16, #tpu.memory_space<vmem>>, vector<8x648xbf16>
    %c1_132 = arith.constant 1 : index
    %c0_133 = arith.constant 0 : index
    %c0_134 = arith.constant 0 : index
    %155 = vector.load %arg4[%c1_132, %c0_133, %c0_134] : memref<9x8x8xbf16, #tpu.memory_space<vmem>>, vector<1x8x8xbf16>
    %156 = vector.shape_cast %155 : vector<1x8x8xbf16> to vector<8x8xbf16>
    %cst_135 = arith.constant dense<0.000000e+00> : vector<8x648xf32>
    %157 = tpu.matmul %156, %154, %cst_135 {dimension_numbers = #tpu.dot_dimension_numbers<[1], [0], [0], [1], [0, 0, 1, 1], [], []>} : vector<8x8xbf16>, vector<8x648xbf16>, vector<8x648xf32> -> vector<8x648xf32>
    %158 = arith.addf %153, %157 : vector<8x648xf32>
    %c0_136 = arith.constant 0 : index
    %c7_137 = arith.constant 7 : index
    %159 = vector.load %arg16[%c0_136, %c7_137] : memref<8x696xbf16, #tpu.memory_space<vmem>>, vector<8x648xbf16>
    %c2_138 = arith.constant 2 : index
    %c0_139 = arith.constant 0 : index
    %c0_140 = arith.constant 0 : index
    %160 = vector.load %arg4[%c2_138, %c0_139, %c0_140] : memref<9x8x8xbf16, #tpu.memory_space<vmem>>, vector<1x8x8xbf16>
    %161 = vector.shape_cast %160 : vector<1x8x8xbf16> to vector<8x8xbf16>
    %cst_141 = arith.constant dense<0.000000e+00> : vector<8x648xf32>
    %162 = tpu.matmul %161, %159, %cst_141 {dimension_numbers = #tpu.dot_dimension_numbers<[1], [0], [0], [1], [0, 0, 1, 1], [], []>} : vector<8x8xbf16>, vector<8x648xbf16>, vector<8x648xf32> -> vector<8x648xf32>
    %163 = arith.addf %158, %162 : vector<8x648xf32>
    %c0_142 = arith.constant 0 : index
    %c23_143 = arith.constant 23 : index
    %164 = vector.load %arg16[%c0_142, %c23_143] : memref<8x696xbf16, #tpu.memory_space<vmem>>, vector<8x648xbf16>
    %c3_144 = arith.constant 3 : index
    %c0_145 = arith.constant 0 : index
    %c0_146 = arith.constant 0 : index
    %165 = vector.load %arg4[%c3_144, %c0_145, %c0_146] : memref<9x8x8xbf16, #tpu.memory_space<vmem>>, vector<1x8x8xbf16>
    %166 = vector.shape_cast %165 : vector<1x8x8xbf16> to vector<8x8xbf16>
    %cst_147 = arith.constant dense<0.000000e+00> : vector<8x648xf32>
    %167 = tpu.matmul %166, %164, %cst_147 {dimension_numbers = #tpu.dot_dimension_numbers<[1], [0], [0], [1], [0, 0, 1, 1], [], []>} : vector<8x8xbf16>, vector<8x648xbf16>, vector<8x648xf32> -> vector<8x648xf32>
    %168 = arith.addf %163, %167 : vector<8x648xf32>
    %c0_148 = arith.constant 0 : index
    %c24_149 = arith.constant 24 : index
    %169 = vector.load %arg16[%c0_148, %c24_149] : memref<8x696xbf16, #tpu.memory_space<vmem>>, vector<8x648xbf16>
    %c4_150 = arith.constant 4 : index
    %c0_151 = arith.constant 0 : index
    %c0_152 = arith.constant 0 : index
    %170 = vector.load %arg4[%c4_150, %c0_151, %c0_152] : memref<9x8x8xbf16, #tpu.memory_space<vmem>>, vector<1x8x8xbf16>
    %171 = vector.shape_cast %170 : vector<1x8x8xbf16> to vector<8x8xbf16>
    %cst_153 = arith.constant dense<0.000000e+00> : vector<8x648xf32>
    %172 = tpu.matmul %171, %169, %cst_153 {dimension_numbers = #tpu.dot_dimension_numbers<[1], [0], [0], [1], [0, 0, 1, 1], [], []>} : vector<8x8xbf16>, vector<8x648xbf16>, vector<8x648xf32> -> vector<8x648xf32>
    %173 = arith.addf %168, %172 : vector<8x648xf32>
    %c0_154 = arith.constant 0 : index
    %c25_155 = arith.constant 25 : index
    %174 = vector.load %arg16[%c0_154, %c25_155] : memref<8x696xbf16, #tpu.memory_space<vmem>>, vector<8x648xbf16>
    %c5_156 = arith.constant 5 : index
    %c0_157 = arith.constant 0 : index
    %c0_158 = arith.constant 0 : index
    %175 = vector.load %arg4[%c5_156, %c0_157, %c0_158] : memref<9x8x8xbf16, #tpu.memory_space<vmem>>, vector<1x8x8xbf16>
    %176 = vector.shape_cast %175 : vector<1x8x8xbf16> to vector<8x8xbf16>
    %cst_159 = arith.constant dense<0.000000e+00> : vector<8x648xf32>
    %177 = tpu.matmul %176, %174, %cst_159 {dimension_numbers = #tpu.dot_dimension_numbers<[1], [0], [0], [1], [0, 0, 1, 1], [], []>} : vector<8x8xbf16>, vector<8x648xbf16>, vector<8x648xf32> -> vector<8x648xf32>
    %178 = arith.addf %173, %177 : vector<8x648xf32>
    %c0_160 = arith.constant 0 : index
    %c41_161 = arith.constant 41 : index
    %179 = vector.load %arg16[%c0_160, %c41_161] : memref<8x696xbf16, #tpu.memory_space<vmem>>, vector<8x648xbf16>
    %c6_162 = arith.constant 6 : index
    %c0_163 = arith.constant 0 : index
    %c0_164 = arith.constant 0 : index
    %180 = vector.load %arg4[%c6_162, %c0_163, %c0_164] : memref<9x8x8xbf16, #tpu.memory_space<vmem>>, vector<1x8x8xbf16>
    %181 = vector.shape_cast %180 : vector<1x8x8xbf16> to vector<8x8xbf16>
    %cst_165 = arith.constant dense<0.000000e+00> : vector<8x648xf32>
    %182 = tpu.matmul %181, %179, %cst_165 {dimension_numbers = #tpu.dot_dimension_numbers<[1], [0], [0], [1], [0, 0, 1, 1], [], []>} : vector<8x8xbf16>, vector<8x648xbf16>, vector<8x648xf32> -> vector<8x648xf32>
    %183 = arith.addf %178, %182 : vector<8x648xf32>
    %c0_166 = arith.constant 0 : index
    %c42_167 = arith.constant 42 : index
    %184 = vector.load %arg16[%c0_166, %c42_167] : memref<8x696xbf16, #tpu.memory_space<vmem>>, vector<8x648xbf16>
    %c7_168 = arith.constant 7 : index
    %c0_169 = arith.constant 0 : index
    %c0_170 = arith.constant 0 : index
    %185 = vector.load %arg4[%c7_168, %c0_169, %c0_170] : memref<9x8x8xbf16, #tpu.memory_space<vmem>>, vector<1x8x8xbf16>
    %186 = vector.shape_cast %185 : vector<1x8x8xbf16> to vector<8x8xbf16>
    %cst_171 = arith.constant dense<0.000000e+00> : vector<8x648xf32>
    %187 = tpu.matmul %186, %184, %cst_171 {dimension_numbers = #tpu.dot_dimension_numbers<[1], [0], [0], [1], [0, 0, 1, 1], [], []>} : vector<8x8xbf16>, vector<8x648xbf16>, vector<8x648xf32> -> vector<8x648xf32>
    %188 = arith.addf %183, %187 : vector<8x648xf32>
    %c0_172 = arith.constant 0 : index
    %c43_173 = arith.constant 43 : index
    %189 = vector.load %arg16[%c0_172, %c43_173] : memref<8x696xbf16, #tpu.memory_space<vmem>>, vector<8x648xbf16>
    %c8_174 = arith.constant 8 : index
    %c0_175 = arith.constant 0 : index
    %c0_176 = arith.constant 0 : index
    %190 = vector.load %arg4[%c8_174, %c0_175, %c0_176] : memref<9x8x8xbf16, #tpu.memory_space<vmem>>, vector<1x8x8xbf16>
    %191 = vector.shape_cast %190 : vector<1x8x8xbf16> to vector<8x8xbf16>
    %cst_177 = arith.constant dense<0.000000e+00> : vector<8x648xf32>
    %192 = tpu.matmul %191, %189, %cst_177 {dimension_numbers = #tpu.dot_dimension_numbers<[1], [0], [0], [1], [0, 0, 1, 1], [], []>} : vector<8x8xbf16>, vector<8x648xbf16>, vector<8x648xf32> -> vector<8x648xf32>
    %193 = arith.addf %188, %192 : vector<8x648xf32>
    %cst_178 = arith.constant 2.000000e+01 : f32
    %194 = vector.broadcast %cst_178 : f32 to vector<8x648xf32>
    %195 = arith.minimumf %149, %194 : vector<8x648xf32>
    %196 = math.exp %195 : vector<8x648xf32>
    %cst_179 = arith.constant 2.000000e+00 : f32
    %197 = vector.broadcast %cst_179 : f32 to vector<8x648xf32>
    %198 = arith.addf %196, %197 : vector<8x648xf32>
    %199 = arith.mulf %196, %198 : vector<8x648xf32>
    %200 = arith.mulf %149, %199 : vector<8x648xf32>
    %cst_180 = arith.constant 2.000000e+00 : f32
    %201 = vector.broadcast %cst_180 : f32 to vector<8x648xf32>
    %202 = arith.addf %199, %201 : vector<8x648xf32>
    %203 = tpu.reciprocal %202 {approx = true} : vector<8x648xf32> -> vector<8x648xf32>
    %204 = arith.mulf %200, %203 : vector<8x648xf32>
    %cst_181 = arith.constant 2.000000e+01 : f32
    %205 = vector.broadcast %cst_181 : f32 to vector<8x648xf32>
    %206 = arith.minimumf %193, %205 : vector<8x648xf32>
    %207 = math.exp %206 : vector<8x648xf32>
    %cst_182 = arith.constant 2.000000e+00 : f32
    %208 = vector.broadcast %cst_182 : f32 to vector<8x648xf32>
    %209 = arith.addf %207, %208 : vector<8x648xf32>
    %210 = arith.mulf %207, %209 : vector<8x648xf32>
    %211 = arith.mulf %193, %210 : vector<8x648xf32>
    %cst_183 = arith.constant 2.000000e+00 : f32
    %212 = vector.broadcast %cst_183 : f32 to vector<8x648xf32>
    %213 = arith.addf %210, %212 : vector<8x648xf32>
    %214 = tpu.reciprocal %213 {approx = true} : vector<8x648xf32> -> vector<8x648xf32>
    %215 = arith.mulf %211, %214 : vector<8x648xf32>
    %c0_184 = arith.constant 0 : index
    %c0_185 = arith.constant 0 : index
    %216 = vector.load %arg9[%c0_184, %c0_185] : memref<16x1xf32, #tpu.memory_space<vmem>>, vector<16x1xf32>
    %c0_186 = arith.constant 0 : index
    %c0_187 = arith.constant 0 : index
    %217 = vector.load %arg10[%c0_186, %c0_187] : memref<16x1xf32, #tpu.memory_space<vmem>>, vector<16x1xf32>
    %218 = arith.addf %149, %215 : vector<8x648xf32>
    %219 = vector.extract_strided_slice %216 {offsets = [0, 0], sizes = [8, 1], strides = [1, 1]} : vector<16x1xf32> to vector<8x1xf32>
    %220 = vector.extract_strided_slice %217 {offsets = [0, 0], sizes = [8, 1], strides = [1, 1]} : vector<16x1xf32> to vector<8x1xf32>
    %cst_188 = arith.constant 0.000000e+00 : f32
    %221 = vector.shape_cast %2 : vector<1x648xi1> to vector<1x648xi1>
    %222 = vector.broadcast %221 : vector<1x648xi1> to vector<8x648xi1>
    %223 = vector.broadcast %cst_188 : f32 to vector<8x648xf32>
    %224 = arith.select %222, %218, %223 : vector<8x648xi1>, vector<8x648xf32>
    %cst_189 = arith.constant dense<0.000000e+00> : vector<8xf32>
    %225 = vector.multi_reduction <add>, %224, %cst_189 [1] : vector<8x648xf32> to vector<8xf32>
    %226 = vector.shape_cast %225 : vector<8xf32> to vector<8x1xf32>
    %cst_190 = arith.constant 0.001953125 : f32
    %227 = vector.broadcast %cst_190 : f32 to vector<8x1xf32>
    %228 = arith.mulf %226, %227 : vector<8x1xf32>
    %229 = vector.broadcast %228 : vector<8x1xf32> to vector<8x648xf32>
    %230 = arith.subf %218, %229 : vector<8x648xf32>
    %231 = arith.mulf %230, %230 : vector<8x648xf32>
    %cst_191 = arith.constant 0.000000e+00 : f32
    %232 = vector.shape_cast %2 : vector<1x648xi1> to vector<1x648xi1>
    %233 = vector.broadcast %232 : vector<1x648xi1> to vector<8x648xi1>
    %234 = vector.broadcast %cst_191 : f32 to vector<8x648xf32>
    %235 = arith.select %233, %231, %234 : vector<8x648xi1>, vector<8x648xf32>
    %cst_192 = arith.constant dense<0.000000e+00> : vector<8xf32>
    %236 = vector.multi_reduction <add>, %235, %cst_192 [1] : vector<8x648xf32> to vector<8xf32>
    %237 = vector.shape_cast %236 : vector<8xf32> to vector<8x1xf32>
    %cst_193 = arith.constant 0.001953125 : f32
    %238 = vector.broadcast %cst_193 : f32 to vector<8x1xf32>
    %239 = arith.mulf %237, %238 : vector<8x1xf32>
    %240 = vector.broadcast %219 : vector<8x1xf32> to vector<8x648xf32>
    %241 = arith.mulf %240, %230 : vector<8x648xf32>
    %cst_194 = arith.constant 9.99999974E-6 : f32
    %242 = vector.broadcast %cst_194 : f32 to vector<8x1xf32>
    %243 = arith.addf %239, %242 : vector<8x1xf32>
    %244 = math.rsqrt %243 : vector<8x1xf32>
    %245 = vector.broadcast %244 : vector<8x1xf32> to vector<8x648xf32>
    %246 = arith.mulf %241, %245 : vector<8x648xf32>
    %247 = vector.broadcast %220 : vector<8x1xf32> to vector<8x648xf32>
    %248 = arith.addf %246, %247 : vector<8x648xf32>
    %249 = arith.addf %193, %204 : vector<8x648xf32>
    %250 = vector.extract_strided_slice %216 {offsets = [8, 0], sizes = [8, 1], strides = [1, 1]} : vector<16x1xf32> to vector<8x1xf32>
    %251 = vector.extract_strided_slice %217 {offsets = [8, 0], sizes = [8, 1], strides = [1, 1]} : vector<16x1xf32> to vector<8x1xf32>
    %cst_195 = arith.constant 0.000000e+00 : f32
    %252 = vector.shape_cast %2 : vector<1x648xi1> to vector<1x648xi1>
    %253 = vector.broadcast %252 : vector<1x648xi1> to vector<8x648xi1>
    %254 = vector.broadcast %cst_195 : f32 to vector<8x648xf32>
    %255 = arith.select %253, %249, %254 : vector<8x648xi1>, vector<8x648xf32>
    %cst_196 = arith.constant dense<0.000000e+00> : vector<8xf32>
    %256 = vector.multi_reduction <add>, %255, %cst_196 [1] : vector<8x648xf32> to vector<8xf32>
    %257 = vector.shape_cast %256 : vector<8xf32> to vector<8x1xf32>
    %cst_197 = arith.constant 0.001953125 : f32
    %258 = vector.broadcast %cst_197 : f32 to vector<8x1xf32>
    %259 = arith.mulf %257, %258 : vector<8x1xf32>
    %260 = vector.broadcast %259 : vector<8x1xf32> to vector<8x648xf32>
    %261 = arith.subf %249, %260 : vector<8x648xf32>
    %262 = arith.mulf %261, %261 : vector<8x648xf32>
    %cst_198 = arith.constant 0.000000e+00 : f32
    %263 = vector.shape_cast %2 : vector<1x648xi1> to vector<1x648xi1>
    %264 = vector.broadcast %263 : vector<1x648xi1> to vector<8x648xi1>
    %265 = vector.broadcast %cst_198 : f32 to vector<8x648xf32>
    %266 = arith.select %264, %262, %265 : vector<8x648xi1>, vector<8x648xf32>
    %cst_199 = arith.constant dense<0.000000e+00> : vector<8xf32>
    %267 = vector.multi_reduction <add>, %266, %cst_199 [1] : vector<8x648xf32> to vector<8xf32>
    %268 = vector.shape_cast %267 : vector<8xf32> to vector<8x1xf32>
    %cst_200 = arith.constant 0.001953125 : f32
    %269 = vector.broadcast %cst_200 : f32 to vector<8x1xf32>
    %270 = arith.mulf %268, %269 : vector<8x1xf32>
    %271 = vector.broadcast %250 : vector<8x1xf32> to vector<8x648xf32>
    %272 = arith.mulf %271, %261 : vector<8x648xf32>
    %cst_201 = arith.constant 9.99999974E-6 : f32
    %273 = vector.broadcast %cst_201 : f32 to vector<8x1xf32>
    %274 = arith.addf %270, %273 : vector<8x1xf32>
    %275 = math.rsqrt %274 : vector<8x1xf32>
    %276 = vector.broadcast %275 : vector<8x1xf32> to vector<8x648xf32>
    %277 = arith.mulf %272, %276 : vector<8x648xf32>
    %278 = vector.broadcast %251 : vector<8x1xf32> to vector<8x648xf32>
    %279 = arith.addf %277, %278 : vector<8x648xf32>
    %280 = arith.addf %248, %279 : vector<8x648xf32>
    %cst_202 = arith.constant 0.000000e+00 : f32
    %281 = vector.shape_cast %2 : vector<1x648xi1> to vector<1x648xi1>
    %282 = vector.broadcast %281 : vector<1x648xi1> to vector<8x648xi1>
    %283 = vector.broadcast %cst_202 : f32 to vector<8x648xf32>
    %284 = arith.select %282, %280, %283 : vector<8x648xi1>, vector<8x648xf32>
    %c0_203 = arith.constant 0 : index
    %c0_204 = arith.constant 0 : index
    %285 = vector.load %arg5[%c0_203, %c0_204] : memref<16x8xbf16, #tpu.memory_space<vmem>>, vector<16x8xbf16>
    %286 = arith.truncf %284 : vector<8x648xf32> to vector<8x648xbf16>
    %cst_205 = arith.constant dense<0.000000e+00> : vector<16x648xf32>
    %287 = tpu.matmul %285, %286, %cst_205 {dimension_numbers = #tpu.dot_dimension_numbers<[1], [0], [0], [1], [0, 0, 1, 1], [], []>} : vector<16x8xbf16>, vector<8x648xbf16>, vector<16x648xf32> -> vector<16x648xf32>
    %cst_206 = arith.constant 2.000000e+01 : f32
    %288 = vector.broadcast %cst_206 : f32 to vector<16x648xf32>
    %289 = arith.minimumf %287, %288 : vector<16x648xf32>
    %290 = math.exp %289 : vector<16x648xf32>
    %cst_207 = arith.constant 2.000000e+00 : f32
    %291 = vector.broadcast %cst_207 : f32 to vector<16x648xf32>
    %292 = arith.addf %290, %291 : vector<16x648xf32>
    %293 = arith.mulf %290, %292 : vector<16x648xf32>
    %294 = arith.mulf %287, %293 : vector<16x648xf32>
    %cst_208 = arith.constant 2.000000e+00 : f32
    %295 = vector.broadcast %cst_208 : f32 to vector<16x648xf32>
    %296 = arith.addf %293, %295 : vector<16x648xf32>
    %297 = tpu.reciprocal %296 {approx = true} : vector<16x648xf32> -> vector<16x648xf32>
    %298 = arith.mulf %294, %297 : vector<16x648xf32>
    %cst_209 = arith.constant dense<0.000000e+00> : vector<16xf32>
    %299 = vector.multi_reduction <add>, %298, %cst_209 [1] : vector<16x648xf32> to vector<16xf32>
    %300 = vector.shape_cast %299 : vector<16xf32> to vector<16x1xf32>
    %cst_210 = arith.constant 0.00154320989 : f32
    %301 = vector.broadcast %cst_210 : f32 to vector<16x1xf32>
    %302 = arith.mulf %300, %301 : vector<16x1xf32>
    %303 = vector.broadcast %302 : vector<16x1xf32> to vector<16x648xf32>
    %304 = arith.subf %298, %303 : vector<16x648xf32>
    %305 = arith.mulf %304, %304 : vector<16x648xf32>
    %cst_211 = arith.constant dense<0.000000e+00> : vector<16xf32>
    %306 = vector.multi_reduction <add>, %305, %cst_211 [1] : vector<16x648xf32> to vector<16xf32>
    %307 = vector.shape_cast %306 : vector<16xf32> to vector<16x1xf32>
    %cst_212 = arith.constant 0.00154320989 : f32
    %308 = vector.broadcast %cst_212 : f32 to vector<16x1xf32>
    %309 = arith.mulf %307, %308 : vector<16x1xf32>
    %c0_213 = arith.constant 0 : index
    %c0_214 = arith.constant 0 : index
    %310 = vector.load %arg11[%c0_213, %c0_214] : memref<16x1xf32, #tpu.memory_space<vmem>>, vector<16x1xf32>
    %311 = vector.broadcast %310 : vector<16x1xf32> to vector<16x648xf32>
    %312 = arith.mulf %311, %304 : vector<16x648xf32>
    %cst_215 = arith.constant 9.99999974E-6 : f32
    %313 = vector.broadcast %cst_215 : f32 to vector<16x1xf32>
    %314 = arith.addf %309, %313 : vector<16x1xf32>
    %315 = math.rsqrt %314 : vector<16x1xf32>
    %316 = vector.broadcast %315 : vector<16x1xf32> to vector<16x648xf32>
    %317 = arith.mulf %312, %316 : vector<16x648xf32>
    %c0_216 = arith.constant 0 : index
    %c0_217 = arith.constant 0 : index
    %318 = vector.load %arg12[%c0_216, %c0_217] : memref<16x1xf32, #tpu.memory_space<vmem>>, vector<16x1xf32>
    %319 = vector.broadcast %318 : vector<16x1xf32> to vector<16x648xf32>
    %320 = arith.addf %317, %319 : vector<16x648xf32>
    %c0_218 = arith.constant 0 : index
    %c0_219 = arith.constant 0 : index
    %321 = vector.load %arg14[%c0_218, %c0_219] : memref<16x648xf32, #tpu.memory_space<vmem>>, vector<16x648xf32>
    tpu.vector_store %arg14[%c0_218, %c0_219], %320 {strides = array<i32>} : memref<16x648xf32, #tpu.memory_space<vmem>>, vector<16x648xf32>,
    return
  }
  func.func @transform_0(%arg0: i32) -> (i32, i32) {
    %c0_i32 = arith.constant 0 : i32
    %c0_i32_0 = arith.constant 0 : i32
    %c0_i32_1 = arith.constant 0 : i32
    return %c0_i32, %c0_i32_0 : i32, i32
  }
  func.func @transform_1(%arg0: i32) -> (i32, i32, i32) {
    %c0_i32 = arith.constant 0 : i32
    %c0_i32_0 = arith.constant 0 : i32
    %c0_i32_1 = arith.constant 0 : i32
    %c0_i32_2 = arith.constant 0 : i32
    return %c0_i32, %c0_i32_0, %c0_i32_1 : i32, i32, i32
  }
  func.func @transform_2(%arg0: i32) -> (i32, i32, i32) {
    %c0_i32 = arith.constant 0 : i32
    %c0_i32_0 = arith.constant 0 : i32
    %c0_i32_1 = arith.constant 0 : i32
    %c0_i32_2 = arith.constant 0 : i32
    return %c0_i32, %c0_i32_0, %c0_i32_1 : i32, i32, i32
  }
  func.func @transform_3(%arg0: i32) -> (i32, i32, i32) {
    %c0_i32 = arith.constant 0 : i32
    %c0_i32_0 = arith.constant 0 : i32
    %c0_i32_1 = arith.constant 0 : i32
    %c0_i32_2 = arith.constant 0 : i32
    return %c0_i32, %c0_i32_0, %c0_i32_1 : i32, i32, i32
  }
  func.func @transform_4(%arg0: i32) -> (i32, i32) {
    %c0_i32 = arith.constant 0 : i32
    %c0_i32_0 = arith.constant 0 : i32
    %c0_i32_1 = arith.constant 0 : i32
    return %c0_i32, %c0_i32_0 : i32, i32
  }
  func.func @transform_5(%arg0: i32) -> (i32, i32) {
    %c0_i32 = arith.constant 0 : i32
    %c0_i32_0 = arith.constant 0 : i32
    %c0_i32_1 = arith.constant 0 : i32
    return %c0_i32, %c0_i32_0 : i32, i32
  }
  func.func @transform_6(%arg0: i32) -> (i32, i32) {
    %c0_i32 = arith.constant 0 : i32
    %c0_i32_0 = arith.constant 0 : i32
    %c0_i32_1 = arith.constant 0 : i32
    return %c0_i32, %c0_i32_0 : i32, i32
  }
  func.func @transform_7(%arg0: i32) -> (i32, i32) {
    %c0_i32 = arith.constant 0 : i32
    %c0_i32_0 = arith.constant 0 : i32
    %c0_i32_1 = arith.constant 0 : i32
    return %c0_i32, %c0_i32_0 : i32, i32
  }
  func.func @transform_8(%arg0: i32) -> (i32, i32) {
    %c0_i32 = arith.constant 0 : i32
    %c0_i32_0 = arith.constant 0 : i32
    %c0_i32_1 = arith.constant 0 : i32
    return %c0_i32, %c0_i32_0 : i32, i32
  }
  func.func @transform_9(%arg0: i32) -> (i32, i32) {
    %c0_i32 = arith.constant 0 : i32
    %c0_i32_0 = arith.constant 0 : i32
    %c0_i32_1 = arith.constant 0 : i32
    return %c0_i32, %c0_i32_0 : i32, i32
  }
  func.func @transform_10(%arg0: i32) -> (i32, i32) {
    %c0_i32 = arith.constant 0 : i32
    %c0_i32_0 = arith.constant 0 : i32
    %c0_i32_1 = arith.constant 0 : i32
    return %c0_i32, %c0_i32_0 : i32, i32
  }
  func.func @transform_11(%arg0: i32) -> (i32, i32) {
    %c0_i32 = arith.constant 0 : i32
    %c0_i32_0 = arith.constant 0 : i32
    %c0_i32_1 = arith.constant 0 : i32
    return %c0_i32, %c0_i32_0 : i32, i32
  }
  func.func @transform_12(%arg0: i32) -> (i32, i32) {
    %c0_i32 = arith.constant 0 : i32
    %c0_i32_0 = arith.constant 0 : i32
    %c0_i32_1 = arith.constant 0 : i32
    return %c0_i32, %c0_i32_0 : i32, i32
  }
  func.func @transform_13(%arg0: i32) -> (i32, i32) {
    %c0_i32 = arith.constant 0 : i32
    %c0_i32_0 = arith.constant 0 : i32
    %c0_i32_1 = arith.constant 0 : i32
    return %c0_i32, %c0_i32_0 : i32, i32
  }
}

</mosaic_0001>

<bundles_post_ra>
// kernel: basic_link2_block.1
= control target key start
LH: loop header
LB: loop body
LE: loop exit
PB: predicated region body
PF: predicated region fallthrough
CT: control target
= control target key end

     0   :  { %s5061_s14 = smov 122   ;;  %s5063_s15 = smov 121   ;;  %vm7031_vm0 = vcmask 998400   ;;  %vm103_vm1 = vcmask 1043456   ;;  %vm99_vm2 = vcmask 64512   ;;  %vm7030_vm3 = vcmask 1006592   ;;  %s7007_s0 = inlined_call_operand.vmem [shape: bf16[8,696], index: 0, kind: input, shape index: {}]   ;;  %s7008_s1 = inlined_call_operand.vmem [shape: bf16[9,16,8], index: 1, kind: input, shape index: {}]   ;;  %s7009_s5 = inlined_call_operand.vmem [shape: f32[16,1], index: 5, kind: input, shape index: {}]   ;;  %s7010_s6 = inlined_call_operand.vmem [shape: f32[16,1], index: 6, kind: input, shape index: {}]   ;;  %s7011_s7 = inlined_call_operand.vmem [shape: f32[16,1], index: 7, kind: input, shape index: {}]   ;;  %s7012_s12 = inlined_call_operand.vmem [shape: f32[1,648], index: 12, kind: input, shape index: {}]   ;;  %s7013_s2 = inlined_call_operand.vmem [shape: bf16[9,8,8], index: 2, kind: input, shape index: {}]   ;;  %s7014_s3 = inlined_call_operand.vmem [shape: bf16[9,8,8], index: 3, kind: input, shape index: {}]   ;;  %s7015_s8 = inlined_call_operand.vmem [shape: f32[16,1], index: 8, kind: input, shape index: {}]   ;;  %s7016_s9 = inlined_call_operand.vmem [shape: f32[16,1], index: 9, kind: input, shape index: {}]   ;;  %s7017_s4 = inlined_call_operand.vmem [shape: bf16[16,8], index: 4, kind: input, shape index: {}]   ;;  %s7018_s10 = inlined_call_operand.vmem [shape: f32[16,1], index: 10, kind: input, shape index: {}]   ;;  %s7019_s11 = inlined_call_operand.vmem [shape: f32[16,1], index: 11, kind: input, shape index: {}]   ;;  %s7020_s13 = inlined_call_operand.vmem [shape: f32[16,648], index: 13, kind: output, shape index: {}]  }
   0x1   :  { %v54_v0 = vld [vmem:[%s7007_s0 + $0x8] sm:$0xff]  ;;  %v53_v1 = vld [vmem:[%s7007_s0] sm:$0xff]  ;;  %v55_v2 = vld [vmem:[%s7007_s0 + $0x10] sm:$0xff]  ;;  %s5062_s0 = smov 123   ;;  %s5064_s16 = smov 105   ;;  %vm7029_vm4 = vcmask 990208  }
   0x2   :  { %v71_v3 = vunpack.c.l.b16 %v54_v0  ;;  %v69_v4 = vunpack.c.l.b16 %v53_v1  ;;  %v73_v5 = vunpack.c.l.b16 %v55_v2  ;;  %v72_v9 = vunpack.c.h.b16 %v54_v0  ;;  %s5065_s17 = smov 104   ;;  %s5066_s18 = smov 103   ;;  %v4882_v33 = vld [vmem:[%s7008_s1 + $0x8] sm:$0xff]  ;;  %v4881_v51 = vld [vmem:[%s7008_s1] sm:$0xff] }
   0x3   :  { %v70_v10 = vunpack.c.h.b16 %v53_v1  ;;  %v74_v11 = vunpack.c.h.b16 %v55_v2  ;;  %s5067_s19 = smov 87   ;;  %s5068_s20 = smov 86   ;;  %vm7028_vm5 = vcmask 859136   ;;  %vm7027_vm6 = vcmask 850944  }
   0x4   :  { %v5151_v6 = vpack.c.b16 %v71_v3, %v71_v3  ;;  %v5153_v7 = vpack.c.b16 %v69_v4, %v69_v4  ;;  %v5155_v8 = vpack.c.b16 %v73_v5, %v73_v5  ;;  %v5163_v12 = vpack.c.b16 %v72_v9, %v72_v9  ;;  %s5069_s23 = smov 85  }
   0x5   :  { %v5165_v13 = vpack.c.b16 %v70_v10, %v70_v10  ;;  %v5167_v14 = vpack.c.b16 %v74_v11, %v74_v11  ;;  %vm7026_vm7 = vcmask 842752   ;;  %vm7025_vm8 = vcmask 711680  }
   0x6   :  { %85 = vrot.lane.b32.xlu1 %v5151_v6, %s5061_s14  ;;  %81 = vrot.lane.b32.xlu0 %v5153_v7, %s5061_s14  ;;  %vm7024_vm9 = vcmask 703488   ;;  %vm7023_vm10 = vcmask 695296  }
   0x7   :  { %89 = vrot.lane.b32.xlu2 %v5155_v8, %s5061_s14 }
   0xe   :  { %87 = vrot.lane.b32.xlu1 %v5163_v12, %s5061_s14  ;;  %83 = vrot.lane.b32.xlu0 %v5165_v13, %s5061_s14 }
   0xf   :  { %91 = vrot.lane.b32.xlu2 %v5167_v14, %s5061_s14 }
  0x16   :  { %213 = vrot.lane.b32.xlu1 %v5165_v13, %s5062_s0  ;;  %211 = vrot.lane.b32.xlu0 %v5153_v7, %s5062_s0 }
  0x17   :  { %215 = vrot.lane.b32.xlu2 %v5151_v6, %s5062_s0 }
  0x1e   :  { %217 = vrot.lane.b32.xlu0 %v5163_v12, %s5062_s0  ;;  %219 = vrot.lane.b32.xlu1 %v5155_v8, %s5062_s0 }
  0x1f   :  { %221 = vrot.lane.b32.xlu2 %v5167_v14, %s5062_s0 }
  0x26   :  { %344 = vrot.lane.b32.xlu1 %v5165_v13, %s5063_s15  ;;  %342 = vrot.lane.b32.xlu0 %v5153_v7, %s5063_s15 }
  0x27   :  { %346 = vrot.lane.b32.xlu2 %v5151_v6, %s5063_s15 }
  0x2e   :  { %350 = vrot.lane.b32.xlu1 %v5155_v8, %s5063_s15  ;;  %348 = vrot.lane.b32.xlu0 %v5163_v12, %s5063_s15 }
  0x2f   :  { %352 = vrot.lane.b32.xlu2 %v5167_v14, %s5063_s15 }
  0x36   :  { %487 = vrot.lane.b32.xlu1 %v5165_v13, %s5064_s16  ;;  %485 = vrot.lane.b32.xlu0 %v5153_v7, %s5064_s16 }
  0x37   :  { %489 = vrot.lane.b32.xlu2 %v5151_v6, %s5064_s16 }
  0x3e   :  { %491 = vrot.lane.b32.xlu0 %v5163_v12, %s5064_s16  ;;  %493 = vrot.lane.b32.xlu1 %v5155_v8, %s5064_s16 }
  0x3f   :  { %495 = vrot.lane.b32.xlu2 %v5167_v14, %s5064_s16 }
  0x46   :  { %630 = vrot.lane.b32.xlu1 %v5165_v13, %s5065_s17  ;;  %628 = vrot.lane.b32.xlu0 %v5153_v7, %s5065_s17 }
  0x47   :  { %632 = vrot.lane.b32.xlu2 %v5151_v6, %s5065_s17 }
  0x4e   :  { %636 = vrot.lane.b32.xlu1 %v5155_v8, %s5065_s17  ;;  %634 = vrot.lane.b32.xlu0 %v5163_v12, %s5065_s17 }
  0x4f   :  { %638 = vrot.lane.b32.xlu2 %v5167_v14, %s5065_s17 }
  0x56   :  { %773 = vrot.lane.b32.xlu1 %v5165_v13, %s5066_s18  ;;  %771 = vrot.lane.b32.xlu0 %v5153_v7, %s5066_s18 }
  0x57   :  { %775 = vrot.lane.b32.xlu2 %v5151_v6, %s5066_s18 }
  0x5e   :  { %777 = vrot.lane.b32.xlu0 %v5163_v12, %s5066_s18  ;;  %779 = vrot.lane.b32.xlu1 %v5155_v8, %s5066_s18 }
  0x5f   :  { %781 = vrot.lane.b32.xlu2 %v5167_v14, %s5066_s18 }
  0x61   :  { %v90_v15 = vpop.permute.xlu2 %89 }
  0x66   :  { %916 = vrot.lane.b32.xlu1 %v5165_v13, %s5067_s19  ;;  %914 = vrot.lane.b32.xlu0 %v5153_v7, %s5067_s19 }
  0x67   :  { %918 = vrot.lane.b32.xlu2 %v5151_v6, %s5067_s19 }
  0x69   :  { %v92_v16 = vpop.permute.xlu2 %91 }
  0x6a   :  { %v98_v19 = vsel %vm7031_vm0, %v90_v15, %v92_v16  ;;  %v120_v24 = vsel %vm103_vm1, %v92_v16, 0 }
  0x6b   :  { %v117_v23 = vsel %vm103_vm1, %v98_v19, 0 }
  0x6e   :  { %922 = vrot.lane.b32.xlu1 %v5155_v8, %s5067_s19  ;;  %920 = vrot.lane.b32.xlu0 %v5163_v12, %s5067_s19 }
  0x6f   :  { %924 = vrot.lane.b32.xlu2 %v5167_v14, %s5067_s19 }
  0x71   :  { %v216_v20 = vpop.permute.xlu2 %215 }
  0x76   :  { %1059 = vrot.lane.b32.xlu1 %v5165_v13, %s5068_s20  ;;  %1057 = vrot.lane.b32.xlu0 %v5153_v7, %s5068_s20 }
  0x77   :  { %1061 = vrot.lane.b32.xlu2 %v5151_v6, %s5068_s20 }
  0x78   :  { %v86_v17 = vpop.permute.xlu1 %85  ;;  %v82_v18 = vpop.permute.xlu0 %81 }
  0x79   :  { %v222_v34 = vpop.permute.xlu2 %221 }
  0x7a   :  { %v248_v39 = vsel %vm103_vm1, %v222_v34, 0 }
  0x7e   :  { %1063 = vrot.lane.b32.xlu0 %v5163_v12, %s5068_s20  ;;  %1065 = vrot.lane.b32.xlu1 %v5155_v8, %s5068_s20 }
  0x7f   :  { %1067 = vrot.lane.b32.xlu2 %v5167_v14, %s5068_s20 }
  0x80   :  { %v88_v21 = vpop.permute.xlu1 %87  ;;  %v84_v22 = vpop.permute.xlu0 %83 }
  0x81   :  { %v94_v25 = vsel %vm7031_vm0, %v82_v18, %v84_v22  ;;  %v95_v26 = vsel %vm7031_vm0, %v84_v22, %v86_v17  ;;  %v96_v27 = vsel %vm7031_vm0, %v86_v17, %v88_v21  ;;  %v97_v28 = vsel %vm7031_vm0, %v88_v21, %v90_v15  ;;  %v347_v50 = vpop.permute.xlu2 %346 }
  0x82   :  { %v105_v29 = vsel %vm103_vm1, %v94_v25, 0  ;;  %v108_v30 = vsel %vm103_vm1, %v95_v26, 0  ;;  %v111_v31 = vsel %vm103_vm1, %v96_v27, 0  ;;  %v114_v32 = vsel %vm103_vm1, %v97_v28, 0 }
  0x83   :  { %129 = vmatpush.bf16.msra.mxu0 %v105_v29  ;;  %143 = vmatpush.bf16.msra.mxu1 %v108_v30  ;;  %v4884_v29 = vld [vmem:[%s7008_s1 + $0x18] sm:$0xff] }
  0x84   :  { %157 = vmatpush.bf16.msra.mxu2 %v111_v31  ;;  %171 = vmatpush.bf16.msra.mxu3 %v114_v32 }
  0x86   :  { %4647 = vmatmul.msk.bf16.vlgmr.msra.gmra.mxu0 %vm99_vm2, %v4882_v33  ;;  %4648 = vmatmul.msk.bf16.vlgmr.msra.gmra.mxu1 %vm99_vm2, %v4882_v33 }
  0x87   :  { %185 = vmatpush.bf16.msrb.mxu0 %v117_v23  ;;  %199 = vmatpush.bf16.msrb.mxu1 %v120_v24 }
  0x88   :  { %4649 = vmatmul.msk.bf16.vlgmr.msra.gmra.mxu2 %vm99_vm2, %v4882_v33  ;;  %4650 = vmatmul.msk.bf16.vlgmr.msra.gmra.mxu3 %vm99_vm2, %v4882_v33  ;;  %v214_v35 = vpop.permute.xlu1 %213  ;;  %v212_v36 = vpop.permute.xlu0 %211 }
  0x89   :  { %1202 = vrot.lane.b32.xlu1 %v5165_v13, %s5069_s23  ;;  %1200 = vrot.lane.b32.xlu0 %v5153_v7, %s5069_s23  ;;  %v224_v37 = vsel %vm7030_vm3, %v212_v36, %v214_v35  ;;  %v225_v38 = vsel %vm7030_vm3, %v214_v35, %v216_v20  ;;  %v353_v58 = vpop.permute.xlu2 %352 }
  0x8a   :  { %1204 = vrot.lane.b32.xlu2 %v5151_v6, %s5069_s23  ;;  %v233_v40 = vsel %vm103_vm1, %v224_v37, 0  ;;  %v236_v41 = vsel %vm103_vm1, %v225_v38, 0  ;;  %v379_v3 = vsel %vm103_vm1, %v353_v58, 0 }
  0x8b   :  { %257 = vmatpush.bf16.msrb.mxu2 %v233_v40  ;;  %271 = vmatpush.bf16.msrb.mxu3 %v236_v41 }
  0x8f   :  { %327 = vmatpush.bf16.msra.mxu3 %v248_v39 }
  0x90   :  { %v218_v42 = vpop.permute.xlu0 %217  ;;  %v220_v43 = vpop.permute.xlu1 %219 }
  0x91   :  { %1208 = vrot.lane.b32.xlu1 %v5155_v8, %s5069_s23  ;;  %1206 = vrot.lane.b32.xlu0 %v5163_v12, %s5069_s23  ;;  %v226_v44 = vsel %vm7030_vm3, %v216_v20, %v218_v42  ;;  %v227_v45 = vsel %vm7030_vm3, %v218_v42, %v220_v43  ;;  %v228_v46 = vsel %vm7030_vm3, %v220_v43, %v222_v34  ;;  %v490_v4 = vpop.permute.xlu2 %489 }
  0x92   :  { %1210 = vrot.lane.b32.xlu2 %v5167_v14, %s5069_s23  ;;  %v239_v47 = vsel %vm103_vm1, %v226_v44, 0  ;;  %v242_v48 = vsel %vm103_vm1, %v227_v45, 0  ;;  %v245_v49 = vsel %vm103_vm1, %v228_v46, 0  ;;  %v4883_v14 = vld [vmem:[%s7008_s1 + $0x10] sm:$0xff] }
  0x93   :  { %285 = vmatpush.bf16.msra.mxu0 %v239_v47  ;;  %299 = vmatpush.bf16.msra.mxu1 %v242_v48 }
  0x94   :  { %313 = vmatpush.bf16.msra.mxu2 %v245_v49 }
  0x96   :  { %4651 = vmatmul.msk.bf16.vlgmr.msrb.gmra.mxu0 %vm99_vm2, %v4882_v33  ;;  %4652 = vmatmul.msk.bf16.vlgmr.msrb.gmra.mxu1 %vm99_vm2, %v4882_v33 }
  0x98   :  { %4658 = vmatmul.msk.bf16.vlgmr.msrb.gmra.mxu3 %vm99_vm2, %v4881_v51  ;;  %4657 = vmatmul.msk.bf16.vlgmr.msrb.gmra.mxu2 %vm99_vm2, %v4881_v51  ;;  %v345_v52 = vpop.permute.xlu1 %344  ;;  %v343_v53 = vpop.permute.xlu0 %342 }
  0x99   :  { %v355_v54 = vsel %vm7029_vm4, %v343_v53, %v345_v52  ;;  %v356_v55 = vsel %vm7029_vm4, %v345_v52, %v347_v50  ;;  %v496_v11 = vpop.permute.xlu2 %495 }
  0x9a   :  { %v364_v56 = vsel %vm103_vm1, %v355_v54, 0  ;;  %v367_v57 = vsel %vm103_vm1, %v356_v55, 0  ;;  %v522_v21 = vsel %vm103_vm1, %v496_v11, 0 }
  0x9b   :  { %388 = vmatpush.bf16.msrb.mxu0 %v364_v56  ;;  %402 = vmatpush.bf16.msrb.mxu1 %v367_v57 }
  0xa0   :  { %v351_v59 = vpop.permute.xlu1 %350  ;;  %v349_v60 = vpop.permute.xlu0 %348 }
  0xa1   :  { %v357_v61 = vsel %vm7029_vm4, %v347_v50, %v349_v60  ;;  %v358_v62 = vsel %vm7029_vm4, %v349_v60, %v351_v59  ;;  %v359_v1 = vsel %vm7029_vm4, %v351_v59, %v353_v58  ;;  %v633_v24 = vpop.permute.xlu2 %632  ;;  %v4885_v50 = vld [vmem:[%s7008_s1 + $0x20] sm:$0xff] }
  0xa2   :  { %v370_v63 = vsel %vm103_vm1, %v357_v61, 0  ;;  %v373_v0 = vsel %vm103_vm1, %v358_v62, 0  ;;  %v376_v2 = vsel %vm103_vm1, %v359_v1, 0  ;;  %v4886_v1 = vld [vmem:[%s7008_s1 + $0x28] sm:$0xff] }
  0xa3   :  { %416 = vmatpush.bf16.msrb.mxu2 %v370_v63  ;;  %430 = vmatpush.bf16.msrb.mxu3 %v373_v0 }
  0xa6   :  { %4659 = vmatmul.msk.bf16.vlgmr.msra.gmra.mxu0 %vm99_vm2, %v4881_v51  ;;  %4660 = vmatmul.msk.bf16.vlgmr.msra.gmra.mxu1 %vm99_vm2, %v4881_v51 }
  0xa7   :  { %444 = vmatpush.bf16.msra.mxu0 %v376_v2  ;;  %458 = vmatpush.bf16.msra.mxu1 %v379_v3 }
  0xa8   :  { %4661 = vmatmul.msk.bf16.vlgmr.msra.gmra.mxu2 %vm99_vm2, %v4881_v51  ;;  %4662 = vmatmul.msk.bf16.vlgmr.msra.gmra.mxu3 %vm99_vm2, %v4881_v51  ;;  %v488_v5 = vpop.permute.xlu1 %487  ;;  %v486_v6 = vpop.permute.xlu0 %485 }
  0xa9   :  { %v499_v7 = vsel %vm7028_vm5, %v488_v5, %v490_v4  ;;  %v498_v8 = vsel %vm7028_vm5, %v486_v6, %v488_v5  ;;  %v639_v36 = vpop.permute.xlu2 %638 }
  0xaa   :  { %v507_v9 = vsel %vm103_vm1, %v498_v8, 0  ;;  %v510_v10 = vsel %vm103_vm1, %v499_v7, 0  ;;  %v665_v44 = vsel %vm103_vm1, %v639_v36, 0 }
  0xab   :  { %531 = vmatpush.bf16.msra.mxu2 %v507_v9  ;;  %545 = vmatpush.bf16.msra.mxu3 %v510_v10 }
  0xb0   :  { %v492_v12 = vpop.permute.xlu0 %491  ;;  %v494_v13 = vpop.permute.xlu1 %493 }
  0xb1   :  { %v500_v15 = vsel %vm7028_vm5, %v490_v4, %v492_v12  ;;  %v501_v16 = vsel %vm7028_vm5, %v492_v12, %v494_v13  ;;  %v502_v17 = vsel %vm7028_vm5, %v494_v13, %v496_v11  ;;  %v776_v38 = vpop.permute.xlu2 %775  ;;  %vm1673_vm5 = vcmask 195584  }
  0xb2   :  { %v513_v18 = vsel %vm103_vm1, %v500_v15, 0  ;;  %v516_v19 = vsel %vm103_vm1, %v501_v16, 0  ;;  %v519_v20 = vsel %vm103_vm1, %v502_v17, 0 }
  0xb6   :  { %4669 = vmatmul.msk.bf16.vlgmr.msrb.gmra.mxu0 %vm99_vm2, %v4883_v14  ;;  %4670 = vmatmul.msk.bf16.vlgmr.msrb.gmra.mxu1 %vm99_vm2, %v4883_v14 }
  0xb7   :  { %559 = vmatpush.bf16.msrb.mxu0 %v513_v18  ;;  %573 = vmatpush.bf16.msrb.mxu1 %v516_v19 }
  0xb8   :  { %4671 = vmatmul.msk.bf16.vlgmr.msrb.gmra.mxu2 %vm99_vm2, %v4883_v14  ;;  %4672 = vmatmul.msk.bf16.vlgmr.msrb.gmra.mxu3 %vm99_vm2, %v4883_v14  ;;  %v631_v22 = vpop.permute.xlu1 %630  ;;  %v629_v23 = vpop.permute.xlu0 %628 }
  0xb9   :  { %587 = vmatpush.bf16.msrb.mxu2 %v519_v20  ;;  %601 = vmatpush.bf16.msrb.mxu3 %v522_v21  ;;  %v641_v27 = vsel %vm7027_vm6, %v629_v23, %v631_v22  ;;  %v642_v28 = vsel %vm7027_vm6, %v631_v22, %v633_v24  ;;  %v782_v49 = vpop.permute.xlu2 %781 }
  0xba   :  { %v650_v32 = vsel %vm103_vm1, %v641_v27, 0  ;;  %v653_v33 = vsel %vm103_vm1, %v642_v28, 0  ;;  %v808_v57 = vsel %vm103_vm1, %v782_v49, 0 }
  0xc0   :  { %v637_v25 = vpop.permute.xlu1 %636  ;;  %v635_v26 = vpop.permute.xlu0 %634 }
  0xc1   :  { %v643_v30 = vsel %vm7027_vm6, %v633_v24, %v635_v26  ;;  %v644_v31 = vsel %vm7027_vm6, %v635_v26, %v637_v25  ;;  %v645_v40 = vsel %vm7027_vm6, %v637_v25, %v639_v36  ;;  %v919_v60 = vpop.permute.xlu2 %918  ;;  %vm1684_vm6 = vcmask 1047556  }
  0xc2   :  { %v656_v34 = vsel %vm103_vm1, %v643_v30, 0  ;;  %v659_v35 = vsel %vm103_vm1, %v644_v31, 0  ;;  %v662_v43 = vsel %vm103_vm1, %v645_v40, 0  ;;  %v4887_v30 = vld [vmem:[%s7008_s1 + $0x30] sm:$0xff] }
  0xc6   :  { %4673 = vmatmul.msk.bf16.vlgmr.msra.gmra.mxu0 %vm99_vm2, %v4883_v14  ;;  %4674 = vmatmul.msk.bf16.vlgmr.msra.gmra.mxu1 %vm99_vm2, %v4883_v14 }
  0xc7   :  { %674 = vmatpush.bf16.msra.mxu0 %v650_v32  ;;  %688 = vmatpush.bf16.msra.mxu1 %v653_v33 }
  0xc8   :  { %4681 = vmatmul.msk.bf16.vlgmr.msra.gmra.mxu2 %vm99_vm2, %v4884_v29  ;;  %4682 = vmatmul.msk.bf16.vlgmr.msra.gmra.mxu3 %vm99_vm2, %v4884_v29  ;;  %v774_v37 = vpop.permute.xlu1 %773  ;;  %v772_v39 = vpop.permute.xlu0 %771 }
  0xc9   :  { %702 = vmatpush.bf16.msra.mxu2 %v656_v34  ;;  %716 = vmatpush.bf16.msra.mxu3 %v659_v35  ;;  %v785_v41 = vsel %vm7026_vm7, %v774_v37, %v776_v38  ;;  %v784_v42 = vsel %vm7026_vm7, %v772_v39, %v774_v37  ;;  %v925_v8 = vpop.permute.xlu2 %924 }
  0xca   :  { %v793_v45 = vsel %vm103_vm1, %v784_v42, 0  ;;  %v796_v46 = vsel %vm103_vm1, %v785_v41, 0  ;;  %v951_v18 = vsel %vm103_vm1, %v925_v8, 0 }
  0xd0   :  { %v780_v47 = vpop.permute.xlu1 %779  ;;  %v778_v48 = vpop.permute.xlu0 %777 }
  0xd1   :  { %v786_v51 = vsel %vm7026_vm7, %v776_v38, %v778_v48  ;;  %v787_v52 = vsel %vm7026_vm7, %v778_v48, %v780_v47  ;;  %v788_v53 = vsel %vm7026_vm7, %v780_v47, %v782_v49  ;;  %v1062_v10 = vpop.permute.xlu2 %1061 }
  0xd2   :  { %v799_v54 = vsel %vm103_vm1, %v786_v51, 0  ;;  %v802_v55 = vsel %vm103_vm1, %v787_v52, 0  ;;  %v805_v56 = vsel %vm103_vm1, %v788_v53, 0 }
  0xd6   :  { %4683 = vmatmul.msk.bf16.vlgmr.msrb.gmra.mxu0 %vm99_vm2, %v4884_v29  ;;  %4684 = vmatmul.msk.bf16.vlgmr.msrb.gmra.mxu1 %vm99_vm2, %v4884_v29 }
  0xd7   :  { %730 = vmatpush.bf16.msrb.mxu0 %v662_v43  ;;  %744 = vmatpush.bf16.msrb.mxu1 %v665_v44 }
  0xd8   :  { %4685 = vmatmul.msk.bf16.vlgmr.msrb.gmra.mxu2 %vm99_vm2, %v4884_v29  ;;  %4686 = vmatmul.msk.bf16.vlgmr.msrb.gmra.mxu3 %vm99_vm2, %v4884_v29  ;;  %v917_v58 = vpop.permute.xlu1 %916  ;;  %v915_v59 = vpop.permute.xlu0 %914 }
  0xd9   :  { %817 = vmatpush.bf16.msrb.mxu2 %v793_v45  ;;  %831 = vmatpush.bf16.msrb.mxu3 %v796_v46  ;;  %v927_v63 = vsel %vm7025_vm8, %v915_v59, %v917_v58  ;;  %v928_v0 = vsel %vm7025_vm8, %v917_v58, %v919_v60  ;;  %v1068_v27 = vpop.permute.xlu2 %1067 }
  0xda   :  { %v936_v4 = vsel %vm103_vm1, %v927_v63, 0  ;;  %v939_v5 = vsel %vm103_vm1, %v928_v0, 0  ;;  %v1094_v38 = vsel %vm103_vm1, %v1068_v27, 0 }
  0xe0   :  { %v923_v61 = vpop.permute.xlu1 %922  ;;  %v921_v62 = vpop.permute.xlu0 %920 }
  0xe1   :  { %v929_v2 = vsel %vm7025_vm8, %v919_v60, %v921_v62  ;;  %v930_v3 = vsel %vm7025_vm8, %v921_v62, %v923_v61  ;;  %v931_v12 = vsel %vm7025_vm8, %v923_v61, %v925_v8  ;;  %v1335_v8 = vld [vmem:[%s7009_s5] sm:$0xff] }
  0xe2   :  { %v942_v6 = vsel %vm103_vm1, %v929_v2, 0  ;;  %v945_v7 = vsel %vm103_vm1, %v930_v3, 0  ;;  %v948_v17 = vsel %vm103_vm1, %v931_v12, 0 }
  0xe4   :  { %v1205_v48 = vpop.permute.xlu2 %1204 }
  0xe6   :  { %4693 = vmatmul.msk.bf16.vlgmr.msra.gmra.mxu0 %vm99_vm2, %v4885_v50  ;;  %4694 = vmatmul.msk.bf16.vlgmr.msra.gmra.mxu1 %vm99_vm2, %v4885_v50 }
  0xe7   :  { %845 = vmatpush.bf16.msra.mxu0 %v799_v54  ;;  %859 = vmatpush.bf16.msra.mxu1 %v802_v55 }
  0xe8   :  { %4695 = vmatmul.msk.bf16.vlgmr.msra.gmra.mxu2 %vm99_vm2, %v4885_v50  ;;  %4696 = vmatmul.msk.bf16.vlgmr.msra.gmra.mxu3 %vm99_vm2, %v4885_v50  ;;  %v1060_v9 = vpop.permute.xlu1 %1059  ;;  %v1058_v11 = vpop.permute.xlu0 %1057 }
  0xe9   :  { %873 = vmatpush.bf16.msra.mxu2 %v805_v56  ;;  %887 = vmatpush.bf16.msra.mxu3 %v808_v57  ;;  %v1071_v15 = vsel %vm7024_vm9, %v1060_v9, %v1062_v10  ;;  %v1070_v16 = vsel %vm7024_vm9, %v1058_v11, %v1060_v9  ;;  %v4888_v57 = vld [vmem:[%s7008_s1 + $0x38] sm:$0xff]  ;;  %v7021_v9 = vmov 0  }
  0xea   :  { %v1079_v19 = vsel %vm103_vm1, %v1070_v16, 0  ;;  %v1082_v20 = vsel %vm103_vm1, %v1071_v15, 0  ;;  %4902 = vset.pattern.permute.xlu0 %v7021_v9  ;;  %4903 = vset.pattern.permute.xlu1 %v7021_v9 }
  0xeb   :  { %1339 = vperm.xlu0 %4902, %v1335_v8   ;;  %4904 = vset.pattern.permute.xlu2 %v7021_v9 }
  0xf0   :  { %v1066_v25 = vpop.permute.xlu1 %1065  ;;  %v1064_v26 = vpop.permute.xlu0 %1063 }
  0xf1   :  { %v1072_v31 = vsel %vm7024_vm9, %v1062_v10, %v1064_v26  ;;  %v1073_v32 = vsel %vm7024_vm9, %v1064_v26, %v1066_v25  ;;  %v1074_v35 = vsel %vm7024_vm9, %v1066_v25, %v1068_v27  ;;  %v1211_v10 = vpop.permute.xlu2 %1210 }
  0xf2   :  { %v1085_v36 = vsel %vm103_vm1, %v1072_v31, 0  ;;  %v1088_v37 = vsel %vm103_vm1, %v1073_v32, 0  ;;  %v1091_v39 = vsel %vm103_vm1, %v1074_v35, 0  ;;  %v1469_v31 = vld [vmem:[%s7011_s7] sm:$0xff] }
  0xf6   :  { %4697 = vmatmul.msk.bf16.vlgmr.msrb.gmra.mxu0 %vm99_vm2, %v4885_v50  ;;  %4698 = vmatmul.msk.bf16.vlgmr.msrb.gmra.mxu1 %vm99_vm2, %v4885_v50 }
  0xf7   :  { %960 = vmatpush.bf16.msrb.mxu0 %v936_v4  ;;  %974 = vmatpush.bf16.msrb.mxu1 %v939_v5 }
  0xf8   :  { %4705 = vmatmul.msk.bf16.vlgmr.msrb.gmra.mxu2 %vm99_vm2, %v4886_v1  ;;  %4706 = vmatmul.msk.bf16.vlgmr.msrb.gmra.mxu3 %vm99_vm2, %v4886_v1 }
  0xf9   :  { %988 = vmatpush.bf16.msrb.mxu2 %v942_v6  ;;  %1002 = vmatpush.bf16.msrb.mxu3 %v945_v7 }
  0xfb   :  { %v1203_v40 = vpop.permute.xlu1 %1202  ;;  %v1201_v41 = vpop.permute.xlu0 %1200 }
  0xfc   :  { %v1213_v53 = vsel %vm7023_vm10, %v1201_v41, %v1203_v40  ;;  %v1214_v54 = vsel %vm7023_vm10, %v1203_v40, %v1205_v48 }
  0xfd   :  { %v1222_v62 = vsel %vm103_vm1, %v1213_v53, 0  ;;  %v1225_v63 = vsel %vm103_vm1, %v1214_v54, 0 }
 0x103   :  { %v131_v13 = vpop.f32.mrf.mxu0  ;;  %v145_v14 = vpop.f32.mrf.mxu1 }
 0x104   :  { %v1209_v49 = vpop.permute.xlu1 %1208  ;;  %v1207_v50 = vpop.permute.xlu0 %1206 }
 0x105   :  { %v1215_v58 = vsel %vm7023_vm10, %v1205_v48, %v1207_v50  ;;  %v1216_v59 = vsel %vm7023_vm10, %v1207_v50, %v1209_v49 }
 0x106   :  { %4707 = vmatmul.msk.bf16.vlgmr.msra.gmra.mxu0 %vm99_vm2, %v4886_v1  ;;  %4708 = vmatmul.msk.bf16.vlgmr.msra.gmra.mxu1 %vm99_vm2, %v4886_v1  ;;  %v1228_v0 = vsel %vm103_vm1, %v1215_v58, 0 }
 0x107   :  { %1016 = vmatpush.bf16.msra.mxu0 %v948_v17  ;;  %1030 = vmatpush.bf16.msra.mxu1 %v951_v18 }
 0x108   :  { %4709 = vmatmul.msk.bf16.vlgmr.msra.gmra.mxu2 %vm99_vm2, %v4886_v1  ;;  %4710 = vmatmul.msk.bf16.vlgmr.msra.gmra.mxu3 %vm99_vm2, %v4886_v1  ;;  %v1231_v1 = vsel %vm103_vm1, %v1216_v59, 0 }
 0x109   :  { %1103 = vmatpush.bf16.msra.mxu2 %v1079_v19  ;;  %1117 = vmatpush.bf16.msra.mxu3 %v1082_v20  ;;  %v1237_v19 = vsel %vm103_vm1, %v1211_v10, 0  ;;  %v1467_v20 = vld [vmem:[%s7010_s6] sm:$0xff] }
 0x10a   :  { %1570 = vperm.xlu0 %4902, %v1467_v20  }
 0x10b   :  { %v159_v21 = vpop.f32.mrf.mxu2  ;;  %v173_v22 = vpop.f32.mrf.mxu3 }
 0x10c   :  { %v5406_v23 = vpop.f32.mrf.mxu0  ;;  %v5408_v24 = vpop.f32.mrf.mxu1 }
 0x112   :  { %1626 = vperm.xlu0 %4902, %v1469_v31  }
 0x113   :  { %v5410_v28 = vpop.f32.mrf.mxu2  ;;  %v5412_v29 = vpop.f32.mrf.mxu3 }
 0x114   :  { %v187_v33 = vpop.f32.mrf.mxu0  ;;  %v201_v34 = vpop.f32.mrf.mxu1 }
 0x116   :  { %4717 = vmatmul.msk.bf16.vlgmr.msrb.gmra.mxu0 %vm99_vm2, %v4887_v30  ;;  %4718 = vmatmul.msk.bf16.vlgmr.msrb.gmra.mxu1 %vm99_vm2, %v4887_v30 }
 0x117   :  { %1131 = vmatpush.bf16.msrb.mxu0 %v1085_v36  ;;  %1145 = vmatpush.bf16.msrb.mxu1 %v1088_v37 }
 0x118   :  { %4719 = vmatmul.msk.bf16.vlgmr.msrb.gmra.mxu2 %vm99_vm2, %v4887_v30  ;;  %4720 = vmatmul.msk.bf16.vlgmr.msrb.gmra.mxu3 %vm99_vm2, %v4887_v30 }
 0x119   :  { %1159 = vmatpush.bf16.msrb.mxu2 %v1091_v39  ;;  %1173 = vmatpush.bf16.msrb.mxu3 %v1094_v38 }
 0x11b   :  { %v259_v42 = vpop.f32.mrf.mxu2  ;;  %v273_v43 = vpop.f32.mrf.mxu3 }
 0x11c   :  { %v260_v44 = vadd.f32 %v259_v42, %v131_v13  ;;  %v274_v45 = vadd.f32 %v273_v43, %v145_v14  ;;  %v5428_v46 = vpop.f32.mrf.mxu0  ;;  %v5430_v47 = vpop.f32.mrf.mxu1  ;;  %v1217_v13 = vsel %vm7023_vm10, %v1209_v49, %v1211_v10 }
 0x11d   :  { %v1234_v18 = vsel %vm103_vm1, %v1217_v13, 0 }
 0x123   :  { %v5432_v51 = vpop.f32.mrf.mxu2  ;;  %v5434_v52 = vpop.f32.mrf.mxu3 }
 0x124   :  { %v287_v55 = vpop.f32.mrf.mxu0  ;;  %v301_v56 = vpop.f32.mrf.mxu1 }
 0x125   :  { %v288_v60 = vadd.f32 %v287_v55, %v159_v21  ;;  %v302_v61 = vadd.f32 %v301_v56, %v173_v22 }
 0x126   :  { %4721 = vmatmul.msk.bf16.vlgmr.msra.gmra.mxu0 %vm99_vm2, %v4887_v30  ;;  %4722 = vmatmul.msk.bf16.vlgmr.msra.gmra.mxu1 %vm99_vm2, %v4887_v30 }
 0x127   :  { %1246 = vmatpush.bf16.msra.mxu0 %v1222_v62  ;;  %1260 = vmatpush.bf16.msra.mxu1 %v1225_v63 }
 0x128   :  { %4729 = vmatmul.msk.bf16.vlgmr.msra.gmra.mxu2 %vm99_vm2, %v4888_v57  ;;  %4730 = vmatmul.msk.bf16.vlgmr.msra.gmra.mxu3 %vm99_vm2, %v4888_v57 }
 0x129   :  { %1274 = vmatpush.bf16.msra.mxu2 %v1228_v0  ;;  %1288 = vmatpush.bf16.msra.mxu3 %v1231_v1 }
 0x12b   :  { %v315_v2 = vpop.f32.mrf.mxu2  ;;  %v329_v3 = vpop.f32.mrf.mxu3 }
 0x12c   :  { %v316_v4 = vadd.f32 %v315_v2, %v187_v33  ;;  %v330_v5 = vadd.f32 %v329_v3, %v201_v34  ;;  %v5451_v6 = vpop.f32.mrf.mxu0  ;;  %v5453_v7 = vpop.f32.mrf.mxu1  ;;  %v4889_v34 = vld [vmem:[%s7008_s1 + $0x40] sm:$0xff] }
 0x133   :  { %v5461_v11 = vpop.f32.mrf.mxu2  ;;  %v5463_v12 = vpop.f32.mrf.mxu3 }
 0x134   :  { %v390_v14 = vpop.f32.mrf.mxu0  ;;  %v404_v15 = vpop.f32.mrf.mxu1 }
 0x135   :  { %v465_v16 = vadd.f32 %v390_v14, %v260_v44  ;;  %v466_v17 = vadd.f32 %v404_v15, %v274_v45 }
 0x136   :  { %4731 = vmatmul.msk.bf16.vlgmr.msrb.gmra.mxu0 %vm99_vm2, %v4888_v57  ;;  %4732 = vmatmul.msk.bf16.vlgmr.msrb.gmra.mxu1 %vm99_vm2, %v4888_v57 }
 0x137   :  { %1302 = vmatpush.bf16.msrb.mxu0 %v1234_v18  ;;  %1316 = vmatpush.bf16.msrb.mxu1 %v1237_v19 }
 0x138   :  { %4733 = vmatmul.msk.bf16.vlgmr.msrb.gmra.mxu2 %vm99_vm2, %v4888_v57  ;;  %4734 = vmatmul.msk.bf16.vlgmr.msrb.gmra.mxu3 %vm99_vm2, %v4888_v57 }
 0x13b   :  { %v418_v21 = vpop.f32.mrf.mxu2  ;;  %v432_v22 = vpop.f32.mrf.mxu3 }
 0x13c   :  { %v467_v25 = vadd.f32 %v418_v21, %v288_v60  ;;  %v468_v26 = vadd.f32 %v432_v22, %v302_v61  ;;  %v5475_v27 = vpop.f32.mrf.mxu0  ;;  %v5477_v30 = vpop.f32.mrf.mxu1 }
 0x143   :  { %v5482_v32 = vpop.f32.mrf.mxu2  ;;  %v5484_v33 = vpop.f32.mrf.mxu3 }
 0x144   :  { %v446_v35 = vpop.f32.mrf.mxu0  ;;  %v460_v36 = vpop.f32.mrf.mxu1 }
 0x145   :  { %v469_v37 = vadd.f32 %v446_v35, %v316_v4  ;;  %v470_v38 = vadd.f32 %v460_v36, %v330_v5 }
 0x146   :  { %4741 = vmatmul.msk.bf16.vlgmr.msra.gmra.mxu0 %vm99_vm2, %v4889_v34  ;;  %4742 = vmatmul.msk.bf16.vlgmr.msra.gmra.mxu1 %vm99_vm2, %v4889_v34 }
 0x148   :  { %4743 = vmatmul.msk.bf16.vlgmr.msra.gmra.mxu2 %vm99_vm2, %v4889_v34  ;;  %4744 = vmatmul.msk.bf16.vlgmr.msra.gmra.mxu3 %vm99_vm2, %v4889_v34 }
 0x14b   :  { %v533_v39 = vpop.f32.mrf.mxu2  ;;  %v547_v40 = vpop.f32.mrf.mxu3 }
 0x14c   :  { %v608_v41 = vadd.f32 %v533_v39, %v465_v16  ;;  %v609_v42 = vadd.f32 %v547_v40, %v466_v17  ;;  %v5493_v43 = vpop.f32.mrf.mxu0  ;;  %v5495_v44 = vpop.f32.mrf.mxu1 }
 0x14d   :  { %7032 = vst [vmem:[#allocation4_spill] sm:$0xff] %v5493_v43 }
 0x14e   :  { %7033 = vst [vmem:[#allocation5_spill] sm:$0xff] %v5495_v44 }
 0x153   :  { %v5497_v45 = vpop.f32.mrf.mxu2  ;;  %v5499_v48 = vpop.f32.mrf.mxu3 }
 0x154   :  { %v561_v49 = vpop.f32.mrf.mxu0  ;;  %v575_v50 = vpop.f32.mrf.mxu1 }
 0x155   :  { %v610_v53 = vadd.f32 %v561_v49, %v467_v25  ;;  %v611_v54 = vadd.f32 %v575_v50, %v468_v26 }
 0x156   :  { %4745 = vmatmul.msk.bf16.vlgmr.msrb.gmra.mxu0 %vm99_vm2, %v4889_v34  ;;  %4746 = vmatmul.msk.bf16.vlgmr.msrb.gmra.mxu1 %vm99_vm2, %v4889_v34 }
 0x15b   :  { %v589_v55 = vpop.f32.mrf.mxu2  ;;  %v603_v56 = vpop.f32.mrf.mxu3 }
 0x15c   :  { %v612_v57 = vadd.f32 %v589_v55, %v469_v37  ;;  %v613_v58 = vadd.f32 %v603_v56, %v470_v38  ;;  %v5503_v59 = vpop.f32.mrf.mxu0  ;;  %v5505_v60 = vpop.f32.mrf.mxu1 }
 0x15d   :  { %7034 = vst [vmem:[#allocation6_spill] sm:$0xff] %v5505_v60 }
 0x163   :  { %v5507_v61 = vpop.f32.mrf.mxu2  ;;  %v5509_v62 = vpop.f32.mrf.mxu3 }
 0x164   :  { %7035 = vst [vmem:[#allocation7_spill] sm:$0xff] %v5507_v61  ;;  %v676_v63 = vpop.f32.mrf.mxu0  ;;  %v690_v0 = vpop.f32.mrf.mxu1 }
 0x165   :  { %7036 = vst [vmem:[#allocation8_spill] sm:$0xff] %v5509_v62  ;;  %v751_v1 = vadd.f32 %v676_v63, %v608_v41  ;;  %v752_v2 = vadd.f32 %v690_v0, %v609_v42 }
 0x16b   :  { %v704_v3 = vpop.f32.mrf.mxu2  ;;  %v718_v4 = vpop.f32.mrf.mxu3 }
 0x16c   :  { %v753_v5 = vadd.f32 %v704_v3, %v610_v53  ;;  %v754_v8 = vadd.f32 %v718_v4, %v611_v54  ;;  %v5511_v10 = vpop.f32.mrf.mxu0  ;;  %v5513_v13 = vpop.f32.mrf.mxu1 }
 0x173   :  { %v5515_v14 = vpop.f32.mrf.mxu2  ;;  %v5517_v15 = vpop.f32.mrf.mxu3 }
 0x174   :  { %7037 = vst [vmem:[#allocation9_spill] sm:$0xff] %v5517_v15  ;;  %v732_v16 = vpop.f32.mrf.mxu0  ;;  %v746_v17 = vpop.f32.mrf.mxu1 }
 0x175   :  { %v5519_v18 = vadd.f32 %v732_v16, %v612_v57  ;;  %v5521_v19 = vadd.f32 %v746_v17, %v613_v58  ;;  %v1340_v15 = vpop.permute.xlu0 %1339 }
 0x17b   :  { %v819_v20 = vpop.f32.mrf.mxu2  ;;  %v833_v21 = vpop.f32.mrf.mxu3 }
 0x17c   :  { %v894_v22 = vadd.f32 %v819_v20, %v751_v1  ;;  %v895_v25 = vadd.f32 %v833_v21, %v752_v2  ;;  %v5523_v26 = vpop.f32.mrf.mxu0  ;;  %v5525_v31 = vpop.f32.mrf.mxu1 }
 0x17d   :  { %7038 = vst [vmem:[#allocation10_spill] sm:$0xff] %v5523_v26 }
 0x17e   :  { %7039 = vst [vmem:[#allocation11_spill] sm:$0xff] %v5525_v31 }
 0x183   :  { %v5527_v34 = vpop.f32.mrf.mxu2  ;;  %v5529_v35 = vpop.f32.mrf.mxu3 }
 0x184   :  { %v847_v36 = vpop.f32.mrf.mxu0  ;;  %v861_v37 = vpop.f32.mrf.mxu1 }
 0x185   :  { %v896_v38 = vadd.f32 %v847_v36, %v753_v5  ;;  %v897_v39 = vadd.f32 %v861_v37, %v754_v8 }
 0x18b   :  { %v875_v40 = vpop.f32.mrf.mxu2  ;;  %v889_v41 = vpop.f32.mrf.mxu3 }
 0x18c   :  { %v5531_v42 = vpop.f32.mrf.mxu0  ;;  %v5533_v49 = vpop.f32.mrf.mxu1 }
 0x18d   :  { %7040 = vst [vmem:[#allocation12_spill] sm:$0xff] %v5531_v42 }
 0x18e   :  { %7041 = vst [vmem:[#allocation13_spill] sm:$0xff] %v5533_v49 }
 0x193   :  { %v5535_v50 = vpop.f32.mrf.mxu2  ;;  %v5537_v53 = vpop.f32.mrf.mxu3 }
 0x194   :  { %7042 = vst [vmem:[#allocation14_spill] sm:$0xff] %v5535_v50  ;;  %v962_v54 = vpop.f32.mrf.mxu0  ;;  %v976_v55 = vpop.f32.mrf.mxu1 }
 0x195   :  { %7043 = vst [vmem:[#allocation15_spill] sm:$0xff] %v5537_v53  ;;  %v1037_v31 = vadd.f32 %v962_v54, %v894_v22 }
 0x19b   :  { %v990_v56 = vpop.f32.mrf.mxu2  ;;  %v1004_v57 = vpop.f32.mrf.mxu3 }
 0x19c   :  { %v5539_v58 = vpop.f32.mrf.mxu0  ;;  %v5541_v63 = vpop.f32.mrf.mxu1  ;;  %v1040_v60 = vadd.f32 %v1004_v57, %v897_v39  ;;  %v898_v39 = vadd.f32 %v875_v40, %v5519_v18 }
 0x1a3   :  { %v5543_v0 = vpop.f32.mrf.mxu2  ;;  %v5545_v1 = vpop.f32.mrf.mxu3 }
 0x1a4   :  { %7044 = vst [vmem:[#allocation16_spill] sm:$0xff] %v5543_v0  ;;  %v1018_v2 = vpop.f32.mrf.mxu0  ;;  %v1032_v3 = vpop.f32.mrf.mxu1 }
 0x1a5   :  { %7045 = vst [vmem:[#allocation17_spill] sm:$0xff] %v5545_v1  ;;  %v1038_v1 = vadd.f32 %v976_v55, %v895_v25  ;;  %v1041_v57 = vadd.f32 %v1018_v2, %v898_v39 }
 0x1ab   :  { %v1105_v4 = vpop.f32.mrf.mxu2  ;;  %v1119_v5 = vpop.f32.mrf.mxu3 }
 0x1ac   :  { %v5547_v8 = vpop.f32.mrf.mxu0  ;;  %v5549_v16 = vpop.f32.mrf.mxu1  ;;  %v1180_v26 = vadd.f32 %v1105_v4, %v1037_v31  ;;  %v1181_v62 = vadd.f32 %v1119_v5, %v1038_v1 }
 0x1ad   :  { %7046 = vst [vmem:[#allocation18_spill] sm:$0xff] %v5547_v8 }
 0x1ae   :  { %7047 = vst [vmem:[#allocation19_spill] sm:$0xff] %v5549_v16 }
 0x1b3   :  { %v5551_v17 = vpop.f32.mrf.mxu2  ;;  %v5553_v20 = vpop.f32.mrf.mxu3 }
 0x1b4   :  { %v1133_v21 = vpop.f32.mrf.mxu0  ;;  %v1147_v36 = vpop.f32.mrf.mxu1 }
 0x1b5   :  { %v1183_v54 = vadd.f32 %v1147_v36, %v1040_v60  ;;  %v899_v60 = vadd.f32 %v889_v41, %v5521_v19 }
 0x1bb   :  { %v1161_v37 = vpop.f32.mrf.mxu2  ;;  %v1175_v9 = vpop.f32.mrf.mxu3 }
 0x1bc   :  { %v5555_v53 = vpop.f32.mrf.mxu0  ;;  %v5557_v50 = vpop.f32.mrf.mxu1 }
 0x1bd   :  { %7048 = vst [vmem:[#allocation20_spill] sm:$0xff] %v5555_v53  ;;  %v1039_v53 = vadd.f32 %v990_v56, %v896_v38 }
 0x1be   :  { %7049 = vst [vmem:[#allocation21_spill] sm:$0xff] %v5557_v50 }
 0x1bf   :  { %v1182_v31 = vadd.f32 %v1133_v21, %v1039_v53 }
 0x1c3   :  { %v5559_v49 = vpop.f32.mrf.mxu2  ;;  %v5561_v8 = vpop.f32.mrf.mxu3 }
 0x1c4   :  { %7050 = vst [vmem:[#allocation22_spill] sm:$0xff] %v5559_v49  ;;  %v1248_v16 = vpop.f32.mrf.mxu0  ;;  %v1262_v61 = vpop.f32.mrf.mxu1 }
 0x1c5   :  { %7051 = vst [vmem:[#allocation23_spill] sm:$0xff] %v5561_v8  ;;  %v1323_v44 = vadd.f32 %v1248_v16, %v1180_v26  ;;  %v1324_v0 = vadd.f32 %v1262_v61, %v1181_v62 }
 0x1c7   :  { %v5563_v43 = vadd.f32 %v1340_v15, %v1323_v44  ;;  %v5565_v42 = vadd.f32 %v1340_v15, %v1324_v0  ;;  %v1042_v0 = vadd.f32 %v1032_v3, %v899_v60  ;;  %v45_v3 = vld [vmem:[%s7012_s12] sm:$0x3f] }
 0x1c8   :  { %vm46_vm11 = vcmp.gt.f32.partialorder %v45_v3, 0.5 }
 0x1c9   :  { %v1359_v22 = vmin.f32 %v5563_v43, 20.0  ;;  %v1360_v25 = vmin.f32 %v5565_v42, 20.0 }
 0x1cb   :  { %v1371_v55 = vmul.f32 1.442695, %v1359_v22  ;;  %v1373_v1 = vmul.f32 1.442695, %v1360_v25  ;;  %v1276_v4 = vpop.f32.mrf.mxu2  ;;  %v1290_v5 = vpop.f32.mrf.mxu3  ;;  %v1184_v22 = vadd.f32 %v1161_v37, %v1041_v57  ;;  %v1185_v25 = vadd.f32 %v1175_v9, %v1042_v0 }
 0x1cc   :  { %v1325_v8 = vadd.f32 %v1276_v4, %v1182_v31  ;;  %v1326_v26 = vadd.f32 %v1290_v5, %v1183_v54  ;;  %v5569_v61 = vpop.f32.mrf.mxu0  ;;  %v5571_v44 = vpop.f32.mrf.mxu1 }
 0x1cd   :  { %7052 = vst [vmem:[#allocation24_spill] sm:$0xff] %v5571_v44  ;;  %4905 = vpow2.f32 %v1371_v55 }
 0x1ce   :  { %4907 = vpow2.f32 %v1373_v1  ;;  %v5573_v62 = vadd.f32 %v1340_v15, %v1325_v8  ;;  %v5575_v38 = vadd.f32 %v1340_v15, %v1326_v26 }
 0x1d0   :  { %v1361_v53 = vmin.f32 %v5573_v62, 20.0  ;;  %v1362_v56 = vmin.f32 %v5575_v38, 20.0 }
 0x1d2   :  { %v1375_v16 = vmul.f32 1.442695, %v1361_v53  ;;  %v1377_v21 = vmul.f32 1.442695, %v1362_v56 }
 0x1d3   :  { %v4906_v36 = vpop.eup %4905 }
 0x1d4   :  { %v4908_v31 = vpop.eup %4907  ;;  %v1395_v8 = vadd.f32 2.0, %v4906_v36  ;;  %4909 = vpow2.f32 %v1375_v16  ;;  %v1304_v54 = vpop.f32.mrf.mxu0 }
 0x1d5   :  { %v1318_v55 = vpop.f32.mrf.mxu1  ;;  %v1396_v1 = vadd.f32 2.0, %v4908_v31  ;;  %4911 = vpow2.f32 %v1377_v21  ;;  %v1327_v18 = vadd.f32 %v1304_v54, %v1184_v22  ;;  %v7053_v21 = vmov 0  }
 0x1d6   :  { %v1328_v19 = vadd.f32 %v1318_v55, %v1185_v25  ;;  %v1407_v40 = vmul.f32 %v4906_v36, %v1395_v8  ;;  %v1471_v36 = vsel %vm46_vm11, 1, %v7053_v21 }
 0x1d7   :  { %v1408_v41 = vmul.f32 %v4908_v31, %v1396_v1  ;;  %v1351_v4 = vadd.f32 %v1340_v15, %v1327_v18  ;;  %v1472_v54 = vperm.slane %v1471_v36, 0  ;;  %v1473_v55 = vperm.slane %v1471_v36, 1 }
 0x1d8   :  { %v5581_v5 = vadd.f32 %v1340_v15, %v1328_v19  ;;  %v1431_v2 = vadd.f32 2.0, %v1407_v40  ;;  %v1419_v18 = vmul.f32 %v1407_v40, %v5563_v43 }
 0x1d9   :  { %v1432_v9 = vadd.f32 2.0, %v1408_v41  ;;  %v1363_v37 = vmin.f32 %v1351_v4, 20.0  ;;  %v1420_v19 = vmul.f32 %v1408_v41, %v5565_v42  ;;  %vm5590_vm12 = vcmp.eq.s32.totalorder %v1472_v54, 1 }
 0x1da   :  { %v1364_v26 = vmin.f32 %v5581_v5, 20.0  ;;  %v4910_v39 = vpop.eup %4909  ;;  %4913 = vrcp.f32 %v1431_v2  ;;  %vm5594_vm13 = vcmp.eq.s32.totalorder %v1473_v55, 1  ;;  %v1475_v54 = vperm.slane %v1471_v36, 3 }
 0x1db   :  { %v4912_v60 = vpop.eup %4911  ;;  %v1397_v53 = vadd.f32 2.0, %v4910_v39  ;;  %v1379_v56 = vmul.f32 1.442695, %v1363_v37  ;;  %4915 = vrcp.f32 %v1432_v9  ;;  %v1474_v9 = vperm.slane %v1471_v36, 2 }
 0x1dc   :  { %v1381_v57 = vmul.f32 1.442695, %v1364_v26  ;;  %v1398_v0 = vadd.f32 2.0, %v4912_v60  ;;  %v1476_v55 = vperm.slane %v1471_v36, 4  ;;  %vm5610_vm15 = vcmp.eq.s32.totalorder %v1475_v54, 1 }
 0x1dd   :  { %v1409_v15 = vmul.f32 %v4910_v39, %v1397_v53  ;;  %4917 = vpow2.f32 %v1379_v56  ;;  %vm5599_vm14 = vcmp.eq.s32.totalorder %v1474_v9, 1 }
 0x1de   :  { %v1410_v16 = vmul.f32 %v4912_v60, %v1398_v0  ;;  %4919 = vpow2.f32 %v1381_v57  ;;  %vm5615_vm11 = vcmp.eq.s32.totalorder %v1476_v55, 1 }
 0x1df   :  { %v1433_v22 = vadd.f32 2.0, %v1409_v15  ;;  %v1421_v56 = vmul.f32 %v1409_v15, %v5573_v62 }
 0x1e0   :  { %v1434_v25 = vadd.f32 2.0, %v1410_v16  ;;  %v4914_v31 = vpop.eup %4913  ;;  %v1422_v62 = vmul.f32 %v1410_v16, %v5575_v38 }
 0x1e1   :  { %4921 = vrcp.f32 %v1433_v22  ;;  %v4916_v8 = vpop.eup %4915  ;;  %v1455_v37 = vmul.f32 %v4914_v31, %v1419_v18 }
 0x1e2   :  { %4923 = vrcp.f32 %v1434_v25  ;;  %v1456_v26 = vmul.f32 %v4916_v8, %v1420_v19  ;;  %v1477_v19 = vperm.slane %v1471_v36, 5 }
 0x1e3   :  { %v4918_v1 = vpop.eup %4917  ;;  %v1484_v22 = vsel %vm5590_vm12, %v1455_v37, 0.0 }
 0x1e4   :  { %v4920_v2 = vpop.eup %4919  ;;  %v1399_v3 = vadd.f32 2.0, %v4918_v1  ;;  %v1485_v25 = vsel %vm5594_vm13, %v1456_v26, 0.0  ;;  %vm5619_vm10 = vcmp.eq.s32.totalorder %v1477_v19, 1 }
 0x1e5   :  { %v1400_v39 = vadd.f32 2.0, %v4920_v2 }
 0x1e6   :  { %v1411_v43 = vmul.f32 %v4918_v1, %v1399_v3  ;;  %v1496_v1 = vadd.f32 %v1485_v25, %v1484_v22 }
 0x1e7   :  { %v4922_v40 = vpop.eup %4921  ;;  %v1412_v42 = vmul.f32 %v4920_v2, %v1400_v39 }
 0x1e8   :  { %v1457_v41 = vmul.f32 %v4922_v40, %v1421_v56  ;;  %v1435_v57 = vadd.f32 2.0, %v1411_v43  ;;  %v4924_v8 = vpop.eup %4923  ;;  %v1423_v9 = vmul.f32 %v1411_v43, %v1351_v4  ;;  %v4890_v40 = vld [vmem:[%s7017_s4] sm:$0xff] }
 0x1e9   :  { %v1436_v31 = vadd.f32 2.0, %v1412_v42  ;;  %v1458_v18 = vmul.f32 %v4924_v8, %v1422_v62  ;;  %v1424_v56 = vmul.f32 %v1412_v42, %v5581_v5  ;;  %v1336_v8 = vld [vmem:[%s7009_s5 + $0x8] sm:$0xff]  ;;  %s5071_s5 = smov 24  }
 0x1ea   :  { %4925 = vrcp.f32 %v1435_v57  ;;  %v1486_v15 = vsel %vm5599_vm14, %v1457_v41, 0.0 }
 0x1eb   :  { %4927 = vrcp.f32 %v1436_v31  ;;  %v1497_v3 = vadd.f32 %v1496_v1, %v1486_v15  ;;  %v1487_v36 = vsel %vm5610_vm15, %v1458_v18, 0.0 }
 0x1ed   :  { %v1498_v25 = vadd.f32 %v1497_v3, %v1487_v36 }
 0x1f0   :  { %v4926_v39 = vpop.eup %4925 }
 0x1f1   :  { %v4928_v38 = vpop.eup %4927  ;;  %v1459_v16 = vmul.f32 %v4926_v39, %v1423_v9 }
 0x1f2   :  { %v1460_v22 = vmul.f32 %v4928_v38, %v1424_v56 }
 0x1f3   :  { %v1488_v4 = vsel %vm5615_vm11, %v1459_v16, 0.0 }
 0x1f4   :  { %v1489_v5 = vsel %vm5619_vm10, %v1460_v22, 0.0  ;;  %v1499_v43 = vadd.f32 %v1498_v25, %v1488_v4 }
 0x1f5   :  { %v1500_v42 = vsel %vm99_vm2, %v1489_v5, 0.0 }
 0x1f6   :  { %v1501_v31 = vadd.f32 %v1500_v42, %v1499_v43 }
 0x1f8   :  { %1502 = vadd.xlane.f32.xlu1 %v1501_v31 }
 0x211   :  { %1344 = vperm.xlu1 %4903, %v1336_v8  }
 0x26b   :  { %v1503_v54 = vpop.xlane.xlu1 %1502 }
 0x26c   :  { %v1512_v62 = vmul.f32 0.001953125, %v1503_v54 }
 0x26e   :  { %v1514_v15 = vsub.f32 %v1455_v37, %v1512_v62  ;;  %v1515_v55 = vsub.f32 %v1456_v26, %v1512_v62  ;;  %v1516_v1 = vsub.f32 %v1457_v41, %v1512_v62  ;;  %v1517_v19 = vsub.f32 %v1458_v18, %v1512_v62 }
 0x26f   :  { %v1519_v3 = vsub.f32 %v1460_v22, %v1512_v62  ;;  %v1518_v9 = vsub.f32 %v1459_v16, %v1512_v62 }
 0x270   :  { %v1526_v39 = vmul.f32 %v1514_v15, %v1514_v15  ;;  %v1527_v56 = vmul.f32 %v1515_v55, %v1515_v55  ;;  %v1528_v38 = vmul.f32 %v1516_v1, %v1516_v1  ;;  %v1529_v36 = vmul.f32 %v1517_v19, %v1517_v19 }
 0x271   :  { %v1531_v5 = vmul.f32 %v1519_v3, %v1519_v3  ;;  %v1530_v42 = vmul.f32 %v1518_v9, %v1518_v9 }
 0x272   :  { %v1538_v25 = vsel %vm5590_vm12, %v1526_v39, 0.0  ;;  %v1539_v4 = vsel %vm5594_vm13, %v1527_v56, 0.0  ;;  %v1540_v37 = vsel %vm5599_vm14, %v1528_v38, 0.0  ;;  %v1541_v41 = vsel %vm5610_vm15, %v1529_v36, 0.0 }
 0x273   :  { %v1550_v43 = vadd.f32 %v1539_v4, %v1538_v25  ;;  %v1543_v18 = vsel %vm5619_vm10, %v1531_v5, 0.0  ;;  %v1542_v22 = vsel %vm5615_vm11, %v1530_v42, 0.0  ;;  %v1571_v4 = vpop.permute.xlu0 %1570 }
 0x274   :  { %v1554_v8 = vsel %vm99_vm2, %v1543_v18, 0.0  ;;  %v1583_v42 = vmul.f32 %v1571_v4, %v1519_v3  ;;  %v1579_v18 = vmul.f32 %v1571_v4, %v1515_v55 }
 0x275   :  { %v1551_v26 = vadd.f32 %v1550_v43, %v1540_v37 }
 0x277   :  { %v1552_v16 = vadd.f32 %v1551_v26, %v1541_v41  ;;  %v1582_v26 = vmul.f32 %v1571_v4, %v1518_v9  ;;  %v1578_v41 = vmul.f32 %v1571_v4, %v1514_v15 }
 0x279   :  { %v1553_v31 = vadd.f32 %v1552_v16, %v1542_v22  ;;  %v1580_v22 = vmul.f32 %v1571_v4, %v1516_v1 }
 0x27b   :  { %v1555_v54 = vadd.f32 %v1554_v8, %v1553_v31  ;;  %v1581_v31 = vmul.f32 %v1571_v4, %v1517_v19  ;;  %v1627_v49 = vpop.permute.xlu0 %1626 }
 0x27d   :  { %1556 = vadd.xlane.f32.xlu2 %v1555_v54 }
 0x2f0   :  { %v1557_v62 = vpop.xlane.xlu2 %1556 }
 0x2f1   :  { %v1566_v39 = vmul.f32 0.001953125, %v1557_v62 }
 0x2f3   :  { %v1590_v56 = vadd.f32 1e-05, %v1566_v39 }
 0x2f5   :  { %4929 = vrsqrt.f32 %v1590_v56  ;;  %vm1598_vm8 = vweird.f32 %v1590_v56 }
 0x2fb   :  { %v4930_v38 = vpop.eup %4929 }
 0x2fc   :  { %v1593_v25 = vmul.f32 %v4930_v38, %v1590_v56  ;;  %vm1599_vm9 = vweird.f32 %v4930_v38 }
 0x2fd   :  { %vm1600_vm7 = vmor %vm1598_vm8, %vm1599_vm9  ;;  %vm49_vm8 = vcmask 453888   ;;  %vm1683_vm9 = vcmask 1043648  }
 0x2fe   :  { %v1594_v36 = vmul.f32 %v4930_v38, %v1593_v25  ;;  %50 = vst.msk [vmem:[#allocation2 + $0x14] sm:$0xf] %vm49_vm8, %v7053_v21  ;;  %vm5665_vm4 = vmor %vm1684_vm6, %vm1683_vm9 }
 0x2ff   :  { %52 = vst.msk [vmem:[#allocation3 + $0x14] sm:$0xf] %vm49_vm8, %v7053_v21  ;;  %vm7091_vm8 = vcmask 990208  }
 0x300   :  { %v1595_v43 = vmul.f32 0.5, %v1594_v36  ;;  %vm7092_vm9 = vmmov %vm7091_vm8 }
 0x302   :  { %v1596_v37 = vsub.f32 1.5, %v1595_v43 }
 0x304   :  { %v1597_v5 = vmul.f32 %v4930_v38, %v1596_v37 }
 0x306   :  { %v1601_v16 = vsel %vm1600_vm7, %v4930_v38, %v1597_v5  ;;  %vm47_vm7 = vcmask 191488  }
 0x307   :  { %v1616_v8 = vmul.f32 %v1601_v16, %v1582_v26  ;;  %v1617_v54 = vmul.f32 %v1601_v16, %v1583_v42  ;;  %v1612_v62 = vmul.f32 %v1601_v16, %v1578_v41  ;;  %v1613_v39 = vmul.f32 %v1601_v16, %v1579_v18  ;;  %48 = vst.msk [vmem:[#allocation2] sm:$0xf] %vm47_vm7, %v7053_v21 }
 0x308   :  { %v1614_v50 = vmul.f32 %v1601_v16, %v1580_v22  ;;  %v1615_v25 = vmul.f32 %v1601_v16, %v1581_v31  ;;  %51 = vst.msk [vmem:[#allocation3] sm:$0xf] %vm47_vm7, %v7053_v21  ;;  %v262_v41 = vadd.f32 %v5432_v51, %v5406_v23  ;;  %v276_v21 = vadd.f32 %v5434_v52, %v5408_v24 }
 0x309   :  { %v1638_v36 = vadd.f32 %v1627_v49, %v1616_v8  ;;  %v1639_v43 = vadd.f32 %v1627_v49, %v1617_v54  ;;  %v1634_v44 = vadd.f32 %v1627_v49, %v1612_v62  ;;  %v1635_v37 = vadd.f32 %v1627_v49, %v1613_v39 }
 0x30a   :  { %v1636_v56 = vadd.f32 %v1627_v49, %v1614_v50  ;;  %v1637_v9 = vadd.f32 %v1627_v49, %v1615_v25  ;;  %v471_v16 = vadd.f32 %v5475_v27, %v262_v41  ;;  %vm1688_vm7 = vcmask 261124  }
 0x30b   :  { %v1650_v15 = vsel %vm5615_vm11, %v1638_v36, 0.0  ;;  %v1651_v55 = vsel %vm5619_vm10, %v1639_v43, 0.0  ;;  %v1646_v1 = vsel %vm5590_vm12, %v1634_v44, 0.0  ;;  %v1647_v19 = vsel %vm5594_vm13, %v1635_v37, 0.0  ;;  %vm5681_vm6 = vmor %vm1688_vm7, %vm103_vm1 }
 0x30c   :  { %v1660_v3 = vpack.c.bf16 %v1651_v55, %v1650_v15  ;;  %v1658_v38 = vpack.c.bf16 %v1647_v19, %v1646_v1  ;;  %v1648_v4 = vsel %vm5599_vm14, %v1636_v56, 0.0  ;;  %v1649_v49 = vsel %vm5610_vm15, %v1637_v9, 0.0  ;;  %v1345_v1 = vpop.permute.xlu1 %1344  ;;  %vm7093_vm7 = vmmov %vm7091_vm8 }
 0x30d   :  { %v1659_v50 = vpack.c.bf16 %v1649_v49, %v1648_v4  ;;  %v472_v31 = vadd.f32 %v5477_v30, %v276_v21  ;;  %v614_v62 = vadd.f32 %v5497_v45, %v471_v16  ;;  %v290_v45 = vadd.f32 %v5451_v6, %v5410_v28  ;;  %v7077_v16 = vld [vmem:[#allocation7_spill] sm:$0xff] }
 0x30e   :  { %1668 = vrot.lane.b32.xlu2 %v1660_v3, %s5071_s5  ;;  %1664 = vrot.lane.b32.xlu0 %v1658_v38, %s5071_s5  ;;  %v304_v28 = vadd.f32 %v5453_v7, %v5412_v29  ;;  %v318_v19 = vadd.f32 %v5461_v11, %v5428_v46  ;;  %v332_v7 = vadd.f32 %v5463_v12, %v5430_v47  ;;  %v7072_v38 = vld [vmem:[#allocation24_spill] sm:$0xff] }
 0x30f   :  { %v615_v39 = vadd.f32 %v5499_v48, %v472_v31  ;;  %v757_v52 = vadd.f32 %v5511_v10, %v614_v62  ;;  %v473_v56 = vadd.f32 %v5482_v32, %v290_v45  ;;  %v7073_v46 = vld [vmem:[#allocation4_spill] sm:$0xff]  ;;  %v7078_v31 = vld [vmem:[#allocation13_spill] sm:$0xff] }
 0x310   :  { %v475_v11 = vadd.f32 %v7073_v46, %v318_v19 }
 0x311   :  { %v758_v48 = vadd.f32 %v5513_v13, %v615_v39  ;;  %v900_v43 = vadd.f32 %v5527_v34, %v757_v52  ;;  %v616_v6 = vadd.f32 %v5503_v59, %v473_v56  ;;  %v7070_v59 = vld [vmem:[#allocation6_spill] sm:$0xff]  ;;  %v7080_v39 = vld [vmem:[#allocation8_spill] sm:$0xff]  ;;  %v7083_v56 = vld [vmem:[#allocation11_spill] sm:$0xff] }
 0x312   :  { %v7081_v52 = vld [vmem:[#allocation10_spill] sm:$0xff] }
 0x313   :  { %v901_v10 = vadd.f32 %v5529_v35, %v758_v48  ;;  %v1043_v9 = vadd.f32 %v5539_v58, %v900_v43  ;;  %v474_v35 = vadd.f32 %v5484_v33, %v304_v28  ;;  %v759_v58 = vadd.f32 %v5515_v14, %v616_v6  ;;  %v7084_v28 = vld [vmem:[#allocation14_spill] sm:$0xff] }
 0x315   :  { %v1044_v13 = vadd.f32 %v5541_v63, %v901_v10  ;;  %v1186_v34 = vadd.f32 %v5551_v17, %v1043_v9  ;;  %v617_v63 = vadd.f32 %v7070_v59, %v474_v35  ;;  %v7071_v17 = vld [vmem:[#allocation12_spill] sm:$0xff]  ;;  %v1292_v9 = vpop.f32.mrf.mxu3  ;;  %v7088_v59 = vld [vmem:[#allocation19_spill] sm:$0xff] }
 0x316   :  { %1666 = vrot.lane.b32.xlu0 %v1659_v50, %s5071_s5  ;;  %v902_v3 = vadd.f32 %v7071_v17, %v759_v58  ;;  %v1306_v17 = vpop.f32.mrf.mxu0 }
 0x317   :  { %v1187_v55 = vadd.f32 %v5553_v20, %v1044_v13  ;;  %v1329_v29 = vadd.f32 %v5569_v61, %v1186_v34  ;;  %v7074_v61 = vld [vmem:[#allocation9_spill] sm:$0xff] }
 0x318   :  { %v7085_v13 = vld [vmem:[#allocation21_spill] sm:$0xff] }
 0x319   :  { %v1330_v4 = vadd.f32 %v7072_v38, %v1187_v55  ;;  %v5721_v49 = vadd.f32 %v1345_v1, %v1329_v29  ;;  %v7087_v55 = vld [vmem:[#allocation18_spill] sm:$0xff] }
 0x31b   :  { %v5730_v12 = vadd.f32 %v1345_v1, %v1330_v4  ;;  %v1320_v4 = vpop.f32.mrf.mxu1 }
 0x31d   :  { %v1366_v43 = vmin.f32 %v5730_v12, 20.0 }
 0x368   :  { %v1669_v18 = vpop.permute.xlu2 %1668 }
 0x369   :  { %v1672_v8 = vrot.slane %v1669_v18, 4 }
 0x380   :  { %v1665_v44 = vpop.permute.xlu0 %1664 }
 0x381   :  { %v1670_v26 = vrot.slane %v1665_v44, 4 }
 0x383   :  { %v1674_v42 = vsel %vm1673_vm5, %v1670_v26, %v1665_v44  ;;  %v760_v44 = vadd.f32 %v7074_v61, %v617_v63 }
 0x384   :  { %1686 = vst.msk [vmem:[#allocation2] sm:$0xff] %vm5665_vm4, %v1674_v42  ;;  %v7076_v42 = vld [vmem:[#allocation5_spill] sm:$0xff] }
 0x385   :  { %v476_v41 = vadd.f32 %v7076_v42, %v332_v7  ;;  %v1385_v7 = vmul.f32 1.442695, %v1366_v43 }
 0x388   :  { %v1667_v22 = vpop.permute.xlu0 %1666 }
 0x389   :  { %v1671_v54 = vrot.slane %v1667_v22, 4 }
 0x38b   :  { %v1717_v25 = vld [vmem:[#allocation2] sm:$0xff]  ;;  %v1676_v24 = vsel %vm103_vm1, %v1670_v26, %v1671_v54  ;;  %v1678_v51 = vsel %vm103_vm1, %v1671_v54, %v1672_v8  ;;  %v7075_v26 = vld [vmem:[#allocation16_spill] sm:$0xff]  ;;  %v903_v8 = vadd.f32 %v7078_v31, %v760_v44 }
 0x38c   :  { %v1726_v27 = vunpack.c.l.b16 %v1717_v25  ;;  %v1677_v30 = vsel %vm1673_vm5, %v1676_v24, %v1667_v22  ;;  %v1679_v36 = vsel %vm1673_vm5, %v1678_v51, %v1669_v18  ;;  %v1727_v32 = vunpack.c.h.b16 %v1717_v25  ;;  %v1278_v18 = vpop.f32.mrf.mxu2  ;;  %v7079_v54 = vld [vmem:[#allocation20_spill] sm:$0xff] }
 0x38d   :  { %1690 = vst.msk [vmem:[#allocation2 + $0x10] sm:$0xff] %vm5681_vm6, %v1679_v36  ;;  %v1729_v15 = vunpack.c.h.b16 %v1677_v30  ;;  %v1045_v47 = vadd.f32 %v7075_v26, %v902_v3  ;;  %v618_v22 = vadd.f32 %v7077_v16, %v475_v11  ;;  %v619_v25 = vadd.f32 %v7080_v39, %v476_v41  ;;  %v7082_v36 = vld [vmem:[#allocation17_spill] sm:$0xff]  ;;  %v7089_v3 = vld [vmem:[#allocation22_spill] sm:$0xff]  ;;  %v7090_v11 = vld [vmem:[#allocation23_spill] sm:$0xff] }
 0x38e   :  { %v5694_v37 = vpack.c.b16 %v1726_v27, %v1726_v27  ;;  %v5723_v14 = vpack.c.b16 %v1727_v32, %v1727_v32  ;;  %v1365_v24 = vmin.f32 %v5721_v49, 20.0  ;;  %v1728_v51 = vunpack.c.l.b16 %v1677_v30  ;;  %v7086_v30 = vld [vmem:[#allocation15_spill] sm:$0xff] }
 0x38f   :  { %v5725_v20 = vpack.c.b16 %v1729_v15, %v1729_v15  ;;  %v1188_v62 = vadd.f32 %v7079_v54, %v1045_v47  ;;  %v761_v27 = vadd.f32 %v7081_v52, %v618_v22  ;;  %v1046_v45 = vadd.f32 %v7082_v36, %v903_v8 }
 0x390   :  { %1854 = vrot.lane.b32.xlu2 %v5694_v37, %s5062_s0  ;;  %1738 = vrot.lane.b32.xlu0 %v5694_v37, %s5061_s14  ;;  %v762_v10 = vadd.f32 %v7083_v56, %v619_v25  ;;  %v1383_v35 = vmul.f32 1.442695, %v1365_v24  ;;  %v5755_v58 = vpack.c.b16 %v1728_v51, %v1728_v51 }
 0x391   :  { %v1331_v48 = vadd.f32 %v1278_v18, %v1188_v62  ;;  %v904_v6 = vadd.f32 %v7084_v28, %v761_v27  ;;  %v1189_v34 = vadd.f32 %v7085_v13, %v1046_v45 }
 0x392   :  { %v905_v15 = vadd.f32 %v7086_v30, %v762_v10  ;;  %4931 = vpow2.f32 %v1383_v35 }
 0x393   :  { %v5752_v32 = vadd.f32 %v1345_v1, %v1331_v48  ;;  %v1047_v19 = vadd.f32 %v7087_v55, %v904_v6  ;;  %v1332_v29 = vadd.f32 %v1292_v9, %v1189_v34  ;;  %4933 = vpow2.f32 %v1385_v7 }
 0x394   :  { %v1719_v33 = vld [vmem:[#allocation2 + $0x10] sm:$0xff]  ;;  %v1048_v63 = vadd.f32 %v7088_v59, %v905_v15 }
 0x395   :  { %v1730_v50 = vunpack.c.l.b16 %v1719_v33  ;;  %v1190_v38 = vadd.f32 %v7089_v3, %v1047_v19  ;;  %v1367_v46 = vmin.f32 %v5752_v32, 20.0  ;;  %v1731_v44 = vunpack.c.h.b16 %v1719_v33 }
 0x396   :  { %v1191_v61 = vadd.f32 %v7090_v11, %v1048_v63 }
 0x397   :  { %v5735_v21 = vpack.c.b16 %v1730_v50, %v1730_v50  ;;  %v5764_v50 = vadd.f32 %v1345_v1, %v1332_v29  ;;  %v1333_v26 = vadd.f32 %v1306_v17, %v1190_v38  ;;  %v1387_v41 = vmul.f32 1.442695, %v1367_v46 }
 0x398   :  { %1740 = vrot.lane.b32.xlu0 %v5723_v14, %s5061_s14  ;;  %1744 = vrot.lane.b32.xlu2 %v5725_v20, %s5061_s14  ;;  %v1334_v47 = vadd.f32 %v1320_v4, %v1191_v61  ;;  %v5773_v16 = vpack.c.b16 %v1731_v44, %v1731_v44  ;;  %v4932_v31 = vpop.eup %4931 }
 0x399   :  { %1746 = vrot.lane.b32.xlu1 %v5735_v21, %s5061_s14  ;;  %v1368_v42 = vmin.f32 %v5764_v50, 20.0  ;;  %v5771_v18 = vadd.f32 %v1345_v1, %v1333_v26  ;;  %v4934_v33 = vpop.eup %4933  ;;  %4935 = vpow2.f32 %v1387_v41  ;;  %v1401_v39 = vadd.f32 2.0, %v4932_v31 }
 0x39a   :  { %v5775_v22 = vadd.f32 %v1345_v1, %v1334_v47  ;;  %v1402_v1 = vadd.f32 2.0, %v4934_v33 }
 0x39b   :  { %v1389_v8 = vmul.f32 1.442695, %v1368_v42  ;;  %v1369_v54 = vmin.f32 %v5771_v18, 20.0  ;;  %v1413_v52 = vmul.f32 %v4932_v31, %v1401_v39 }
 0x39c   :  { %v1370_v62 = vmin.f32 %v5775_v22, 20.0  ;;  %v1414_v27 = vmul.f32 %v4934_v33, %v1402_v1 }
 0x39d   :  { %4937 = vpow2.f32 %v1389_v8  ;;  %v1391_v25 = vmul.f32 1.442695, %v1369_v54  ;;  %v1437_v48 = vadd.f32 2.0, %v1413_v52  ;;  %v1425_v29 = vmul.f32 %v1413_v52, %v5721_v49 }
 0x39e   :  { %v1393_v24 = vmul.f32 1.442695, %v1370_v62  ;;  %v1438_v43 = vadd.f32 2.0, %v1414_v27  ;;  %v1426_v7 = vmul.f32 %v1414_v27, %v5730_v12  ;;  %v1470_v27 = vld [vmem:[%s7011_s7 + $0x8] sm:$0xff] }
 0x39f   :  { %v4936_v51 = vpop.eup %4935  ;;  %4939 = vpow2.f32 %v1391_v25 }
 0x3a0   :  { %1742 = vrot.lane.b32.xlu0 %v5755_v58, %s5061_s14  ;;  %1974 = vrot.lane.b32.xlu2 %v5723_v14, %s5063_s15  ;;  %4941 = vpow2.f32 %v1393_v24  ;;  %v1403_v36 = vadd.f32 2.0, %v4936_v51 }
 0x3a1   :  { %1856 = vrot.lane.b32.xlu1 %v5723_v14, %s5062_s0  ;;  %4943 = vrcp.f32 %v1437_v48  ;;  %v1468_v48 = vld [vmem:[%s7010_s6 + $0x8] sm:$0xff] }
 0x3a2   :  { %v1415_v10 = vmul.f32 %v4936_v51, %v1403_v36  ;;  %4945 = vrcp.f32 %v1438_v43 }
 0x3a3   :  { %v4938_v45 = vpop.eup %4937 }
 0x3a4   :  { %v1404_v56 = vadd.f32 2.0, %v4938_v45  ;;  %v1439_v34 = vadd.f32 2.0, %v1415_v10  ;;  %v1427_v46 = vmul.f32 %v1415_v10, %v5752_v32 }
 0x3a5   :  { %v4940_v9 = vpop.eup %4939 }
 0x3a6   :  { %v4942_v28 = vpop.eup %4941  ;;  %v1405_v6 = vadd.f32 2.0, %v4940_v9  ;;  %v1416_v13 = vmul.f32 %v4938_v45, %v1404_v56  ;;  %4947 = vrcp.f32 %v1439_v34 }
 0x3a7   :  { %v1406_v30 = vadd.f32 2.0, %v4942_v28  ;;  %v4944_v15 = vpop.eup %4943 }
 0x3a8   :  { %1748 = vrot.lane.b32.xlu0 %v5773_v16, %s5061_s14  ;;  %1860 = vrot.lane.b32.xlu2 %v5725_v20, %s5062_s0  ;;  %v4946_v35 = vpop.eup %4945  ;;  %v1417_v55 = vmul.f32 %v4940_v9, %v1405_v6  ;;  %v1440_v19 = vadd.f32 2.0, %v1416_v13  ;;  %v5799_v63 = vmul.f32 %v4944_v15, %v1425_v29  ;;  %v1428_v26 = vmul.f32 %v1416_v13, %v5764_v50  ;;  %v4747_v13 = vld [vmem:[%s7013_s2 + $0x4] sm:$0xf] }
 0x3a9   :  { %1972 = vrot.lane.b32.xlu1 %v5694_v37, %s5063_s15  ;;  %v1418_v59 = vmul.f32 %v4942_v28, %v1406_v30  ;;  %v5801_v17 = vmul.f32 %v4946_v35, %v1426_v7 }
 0x3aa   :  { %v1441_v3 = vadd.f32 2.0, %v1417_v55  ;;  %4949 = vrcp.f32 %v1440_v19  ;;  %v1490_v49 = vsel %vm5590_vm12, %v5799_v63, 0.0  ;;  %v1429_v33 = vmul.f32 %v1417_v55, %v5771_v18 }
 0x3ab   :  { %v1442_v38 = vadd.f32 2.0, %v1418_v59  ;;  %v1491_v12 = vsel %vm5594_vm13, %v5801_v17, 0.0  ;;  %v1430_v8 = vmul.f32 %v1418_v59, %v5775_v22 }
 0x3ac   :  { %v4948_v4 = vpop.eup %4947  ;;  %4951 = vrcp.f32 %v1441_v3  ;;  %v1504_v44 = vadd.f32 %v1491_v12, %v1490_v49 }
 0x3ad   :  { %4953 = vrcp.f32 %v1442_v38  ;;  %v5812_v11 = vmul.f32 %v4948_v4, %v1427_v46 }
 0x3af   :  { %v1492_v47 = vsel %vm5599_vm14, %v5812_v11, 0.0 }
 0x3b0   :  { %1858 = vrot.lane.b32.xlu0 %v5755_v58, %s5062_s0  ;;  %2098 = vrot.lane.b32.xlu2 %v5723_v14, %s5064_s16  ;;  %v4950_v61 = vpop.eup %4949  ;;  %v1505_v41 = vadd.f32 %v1504_v44, %v1492_v47 }
 0x3b1   :  { %1862 = vrot.lane.b32.xlu1 %v5735_v21, %s5062_s0  ;;  %v5819_v32 = vmul.f32 %v4950_v61, %v1428_v26 }
 0x3b2   :  { %v4952_v42 = vpop.eup %4951 }
 0x3b3   :  { %v4954_v31 = vpop.eup %4953  ;;  %v5826_v54 = vmul.f32 %v4952_v42, %v1429_v33  ;;  %v1493_v50 = vsel %vm5610_vm15, %v5819_v32, 0.0 }
 0x3b4   :  { %v5833_v62 = vmul.f32 %v4954_v31, %v1430_v8  ;;  %v1506_v39 = vadd.f32 %v1505_v41, %v1493_v50 }
 0x3b5   :  { %v1494_v18 = vsel %vm5615_vm11, %v5826_v54, 0.0 }
 0x3b6   :  { %v1495_v22 = vsel %vm5619_vm10, %v5833_v62, 0.0  ;;  %v1507_v1 = vadd.f32 %v1506_v39, %v1494_v18 }
 0x3b7   :  { %v1508_v25 = vsel %vm99_vm2, %v1495_v22, 0.0 }
 0x3b8   :  { %1864 = vrot.lane.b32.xlu2 %v5773_v16, %s5062_s0  ;;  %v1509_v24 = vadd.f32 %v1508_v25, %v1507_v1  ;;  %v1720_v1 = vld [vmem:[%s7013_s2] sm:$0xf] }
 0x3b9   :  { %2096 = vrot.lane.b32.xlu1 %v5694_v37, %s5064_s16 }
 0x3c0   :  { %1978 = vrot.lane.b32.xlu2 %v5725_v20, %s5063_s15 }
 0x3c1   :  { %1976 = vrot.lane.b32.xlu1 %v5755_v58, %s5063_s15 }
 0x3c8   :  { %1982 = vrot.lane.b32.xlu2 %v5773_v16, %s5063_s15 }
 0x3c9   :  { %1980 = vrot.lane.b32.xlu1 %v5735_v21, %s5063_s15 }
 0x3d0   :  { %2102 = vrot.lane.b32.xlu2 %v5725_v20, %s5064_s16 }
 0x3d1   :  { %2100 = vrot.lane.b32.xlu1 %v5755_v58, %s5064_s16 }
 0x3d9   :  { %2220 = vrot.lane.b32.xlu1 %v5694_v37, %s5065_s17 }
 0x3da   :  { %1510 = vadd.xlane.f32.xlu0 %v1509_v24 }
 0x3e1   :  { %2222 = vrot.lane.b32.xlu1 %v5723_v14, %s5065_s17 }
 0x3e9   :  { %2106 = vrot.lane.b32.xlu1 %v5773_v16, %s5064_s16 }
 0x3ea   :  { %v1855_v51 = vpop.permute.xlu2 %1854 }
 0x3ee   :  { %2104 = vrot.lane.b32.xlu0 %v5735_v21, %s5064_s16 }
 0x3f1   :  { %2226 = vrot.lane.b32.xlu1 %v5725_v20, %s5065_s17 }
 0x3f2   :  { %v1745_v52 = vpop.permute.xlu2 %1744 }
 0x3f6   :  { %2224 = vrot.lane.b32.xlu0 %v5755_v58, %s5065_s17 }
 0x3f9   :  { %2230 = vrot.lane.b32.xlu1 %v5773_v16, %s5065_s17 }
 0x3fa   :  { %v5863_v45 = vpop.permute.xlu2 %1974 }
 0x3fe   :  { %2228 = vrot.lane.b32.xlu0 %v5735_v21, %s5065_s17 }
 0x401   :  { %1631 = vperm.xlu1 %4903, %v1470_v27  }
 0x402   :  { %v1739_v36 = vpop.permute.xlu0 %1738  ;;  %v1861_v28 = vpop.permute.xlu2 %1860 }
 0x406   :  { %1575 = vperm.xlu0 %4902, %v1468_v48  }
 0x409   :  { %2348 = vrot.lane.b32.xlu1 %v5755_v58, %s5066_s18 }
 0x40a   :  { %v1741_v43 = vpop.permute.xlu0 %1740  ;;  %v5891_v3 = vpop.permute.xlu2 %2098 }
 0x40b   :  { %v1750_v56 = vsel %vm7031_vm0, %v1739_v36, %v1741_v43  ;;  %v1747_v9 = vpop.permute.xlu1 %1746 }
 0x40c   :  { %v1759_v10 = vsel %vm103_vm1, %v1750_v56, 0  ;;  %v1753_v6 = vsel %vm7031_vm0, %v1745_v52, %v1747_v9 }
 0x40d   :  { %1783 = vmatpush.bf16.msrb.mxu2 %v1759_v10  ;;  %v1768_v34 = vsel %vm103_vm1, %v1753_v6, 0 }
 0x40e   :  { %2344 = vrot.lane.b32.xlu0 %v5694_v37, %s5066_s18  ;;  %1822 = vmatpush.bf16.msra.mxu1 %v1768_v34  ;;  %v4760_v34 = vld [vmem:[%s7013_s2 + $0x8] sm:$0xf] }
 0x410   :  { %4748 = vmatmul.msk.bf16.vlgmr.msrb.gmra.mxu2 %vm99_vm2, %v4747_v13 }
 0x411   :  { %2352 = vrot.lane.b32.xlu1 %v5735_v21, %s5066_s18  ;;  %4751 = vmatmul.msk.bf16.vlgmr.msra.gmra.mxu1 %vm99_vm2, %v4747_v13 }
 0x412   :  { %v1743_v30 = vpop.permute.xlu0 %1742  ;;  %v1865_v61 = vpop.permute.xlu2 %1864 }
 0x413   :  { %v1751_v15 = vsel %vm7031_vm0, %v1741_v43, %v1743_v30  ;;  %v1752_v35 = vsel %vm7031_vm0, %v1743_v30, %v1745_v52  ;;  %v1857_v29 = vpop.permute.xlu1 %1856  ;;  %v1890_v8 = vsel %vm103_vm1, %v1865_v61, 0 }
 0x414   :  { %v1762_v55 = vsel %vm103_vm1, %v1751_v15, 0  ;;  %v1765_v19 = vsel %vm103_vm1, %v1752_v35, 0  ;;  %v1866_v7 = vsel %vm7030_vm3, %v1855_v51, %v1857_v29 }
 0x415   :  { %1796 = vmatpush.bf16.msrb.mxu3 %v1762_v55  ;;  %1809 = vmatpush.bf16.msra.mxu0 %v1765_v19  ;;  %v1875_v59 = vsel %vm103_vm1, %v1866_v7, 0 }
 0x416   :  { %2350 = vrot.lane.b32.xlu0 %v5725_v20, %s5066_s18 }
 0x418   :  { %4749 = vmatmul.msk.bf16.vlgmr.msrb.gmra.mxu3 %vm99_vm2, %v4747_v13  ;;  %4750 = vmatmul.msk.bf16.vlgmr.msra.gmra.mxu0 %vm99_vm2, %v4747_v13 }
 0x419   :  { %1899 = vmatpush.bf16.msrb.mxu0 %v1875_v59  ;;  %2468 = vrot.lane.b32.xlu1 %v5694_v37, %s5067_s19 }
 0x41a   :  { %v1749_v38 = vpop.permute.xlu0 %1748  ;;  %v1979_v24 = vpop.permute.xlu2 %1978 }
 0x41b   :  { %v1754_v4 = vsel %vm7031_vm0, %v1747_v9, %v1749_v38  ;;  %v1774_v46 = vsel %vm103_vm1, %v1749_v38, 0  ;;  %v1973_v12 = vpop.permute.xlu1 %1972 }
 0x41c   :  { %v1771_v49 = vsel %vm103_vm1, %v1754_v4, 0  ;;  %1848 = vmatpush.bf16.msra.mxu3 %v1774_v46  ;;  %v1984_v42 = vsel %vm7091_vm8, %v1973_v12, %v5863_v45  ;;  %vm7094_vm8 = vcmask 859136  }
 0x41d   :  { %1835 = vmatpush.bf16.msra.mxu2 %v1771_v49  ;;  %v1993_v25 = vsel %vm103_vm1, %v1984_v42, 0 }
 0x41e   :  { %2354 = vrot.lane.b32.xlu0 %v5773_v16, %s5066_s18 }
 0x420   :  { %4752 = vmatmul.msk.bf16.vlgmr.msra.gmra.mxu2 %vm99_vm2, %v4747_v13 }
 0x421   :  { %2474 = vrot.lane.b32.xlu1 %v5725_v20, %s5067_s19 }
 0x422   :  { %v1859_v44 = vpop.permute.xlu0 %1858  ;;  %v1983_v27 = vpop.permute.xlu2 %1982 }
 0x423   :  { %v1867_v26 = vsel %vm7030_vm3, %v1857_v29, %v1859_v44  ;;  %v1868_v47 = vsel %vm7030_vm3, %v1859_v44, %v1861_v28  ;;  %v1863_v33 = vpop.permute.xlu1 %1862  ;;  %v2008_v9 = vsel %vm103_vm1, %v1983_v27, 0 }
 0x424   :  { %v1878_v41 = vsel %vm103_vm1, %v1867_v26, 0  ;;  %v1881_v31 = vsel %vm103_vm1, %v1868_v47, 0  ;;  %v1869_v50 = vsel %vm7030_vm3, %v1861_v28, %v1863_v33  ;;  %v1870_v39 = vsel %vm7030_vm3, %v1863_v33, %v1865_v61 }
 0x425   :  { %1912 = vmatpush.bf16.msrb.mxu1 %v1878_v41  ;;  %1925 = vmatpush.bf16.msrb.mxu2 %v1881_v31  ;;  %v1884_v18 = vsel %vm103_vm1, %v1869_v50, 0  ;;  %v1887_v22 = vsel %vm103_vm1, %v1870_v39, 0  ;;  %v4767_v39 = vld [vmem:[%s7013_s2 + $0xc] sm:$0xf] }
 0x426   :  { %2470 = vrot.lane.b32.xlu0 %v5723_v14, %s5067_s19  ;;  %1938 = vmatpush.bf16.msrb.mxu3 %v1884_v18 }
 0x427   :  { %1951 = vmatpush.bf16.msra.mxu0 %v1887_v22 }
 0x428   :  { %4753 = vmatmul.msk.bf16.vlgmr.msra.gmra.mxu3 %vm99_vm2, %v4747_v13  ;;  %4754 = vmatmul.msk.bf16.vlgmr.msrb.gmra.mxu0 %vm99_vm2, %v1720_v1 }
 0x429   :  { %1964 = vmatpush.bf16.msra.mxu1 %v1890_v8  ;;  %2017 = vmatpush.bf16.msra.mxu2 %v1993_v25 }
 0x42a   :  { %4755 = vmatmul.msk.bf16.vlgmr.msrb.gmra.mxu1 %vm99_vm2, %v1720_v1  ;;  %v2103_v35 = vpop.permute.xlu2 %2102 }
 0x42b   :  { %v2097_v51 = vpop.permute.xlu1 %2096 }
 0x42c   :  { %v2108_v43 = vsel %vm7094_vm8, %v2097_v51, %v5891_v3 }
 0x42d   :  { %v2117_v28 = vsel %vm103_vm1, %v2108_v43, 0 }
 0x42e   :  { %2476 = vrot.lane.b32.xlu0 %v5735_v21, %s5067_s19 }
 0x430   :  { %4756 = vmatmul.msk.bf16.vlgmr.msrb.gmra.mxu2 %vm99_vm2, %v1720_v1 }
 0x433   :  { %v1977_v52 = vpop.permute.xlu1 %1976 }
 0x434   :  { %v1985_v36 = vsel %vm7092_vm9, %v5863_v45, %v1977_v52  ;;  %v1986_v48 = vsel %vm7093_vm7, %v1977_v52, %v1979_v24  ;;  %vm7095_vm9 = vmmov %vm7093_vm7 }
 0x435   :  { %v1996_v56 = vsel %vm103_vm1, %v1985_v36, 0  ;;  %v1999_v10 = vsel %vm103_vm1, %v1986_v48, 0 }
 0x436   :  { %2030 = vmatpush.bf16.msra.mxu3 %v1996_v56  ;;  %2043 = vmatpush.bf16.msrb.mxu0 %v1999_v10 }
 0x438   :  { %4757 = vmatmul.msk.bf16.vlgmr.msrb.gmra.mxu3 %vm99_vm2, %v1720_v1  ;;  %4758 = vmatmul.msk.bf16.vlgmr.msra.gmra.mxu0 %vm99_vm2, %v1720_v1 }
 0x43a   :  { %2082 = vmatpush.bf16.msrb.mxu3 %v2008_v9  ;;  %2141 = vmatpush.bf16.msra.mxu0 %v2117_v28 }
 0x43b   :  { %4759 = vmatmul.msk.bf16.vlgmr.msra.gmra.mxu1 %vm99_vm2, %v1720_v1  ;;  %v1981_v45 = vpop.permute.xlu1 %1980 }
 0x43c   :  { %v1987_v6 = vsel %vm7095_vm9, %v1979_v24, %v1981_v45  ;;  %v1988_v13 = vsel %vm7093_vm7, %v1981_v45, %v1983_v27  ;;  %vm7096_vm9 = vmmov %vm7094_vm8  ;;  %vm7097_vm7 = vcmask 850944  }
 0x43d   :  { %v2002_v30 = vsel %vm103_vm1, %v1987_v6, 0  ;;  %v2005_v15 = vsel %vm103_vm1, %v1988_v13, 0  ;;  %vm7099_vm3 = vmmov %vm7097_vm7 }
 0x43e   :  { %2056 = vmatpush.bf16.msrb.mxu1 %v2002_v30  ;;  %2069 = vmatpush.bf16.msrb.mxu2 %v2005_v15 }
 0x440   :  { %4761 = vmatmul.msk.bf16.vlgmr.msra.gmra.mxu2 %vm99_vm2, %v4760_v34 }
 0x443   :  { %v2101_v55 = vpop.permute.xlu1 %2100 }
 0x444   :  { %v2109_v19 = vsel %vm7094_vm8, %v5891_v3, %v2101_v55  ;;  %v2110_v29 = vsel %vm7096_vm9, %v2101_v55, %v2103_v35  ;;  %vm7098_vm9 = vmmov %vm7094_vm8 }
 0x445   :  { %v2120_v7 = vsel %vm103_vm1, %v2109_v19, 0  ;;  %v2123_v59 = vsel %vm103_vm1, %v2110_v29, 0  ;;  %v4774_v19 = vld [vmem:[%s7013_s2 + $0x10] sm:$0xf] }
 0x446   :  { %2154 = vmatpush.bf16.msra.mxu1 %v2120_v7  ;;  %2167 = vmatpush.bf16.msra.mxu2 %v2123_v59 }
 0x448   :  { %4762 = vmatmul.msk.bf16.vlgmr.msra.gmra.mxu3 %vm99_vm2, %v4760_v34  ;;  %4763 = vmatmul.msk.bf16.vlgmr.msrb.gmra.mxu0 %vm99_vm2, %v4760_v34 }
 0x44b   :  { %4764 = vmatmul.msk.bf16.vlgmr.msrb.gmra.mxu1 %vm99_vm2, %v4760_v34  ;;  %v2221_v38 = vpop.permute.xlu1 %2220 }
 0x44d   :  { %v1511_v4 = vpop.xlane.xlu0 %1510 }
 0x44e   :  { %v1513_v46 = vmul.f32 0.001953125, %v1511_v4 }
 0x450   :  { %4765 = vmatmul.msk.bf16.vlgmr.msrb.gmra.mxu2 %vm99_vm2, %v4760_v34  ;;  %v5958_v3 = vsub.f32 %v5799_v63, %v1513_v46  ;;  %v5961_v49 = vsub.f32 %v5801_v17, %v1513_v46  ;;  %v5964_v12 = vsub.f32 %v5812_v11, %v1513_v46  ;;  %v5967_v61 = vsub.f32 %v5819_v32, %v1513_v46 }
 0x451   :  { %v5970_v44 = vsub.f32 %v5833_v62, %v1513_v46  ;;  %v5973_v26 = vsub.f32 %v5826_v54, %v1513_v46 }
 0x452   :  { %v1532_v47 = vmul.f32 %v5958_v3, %v5958_v3  ;;  %v1533_v63 = vmul.f32 %v5961_v49, %v5961_v49  ;;  %v1534_v17 = vmul.f32 %v5964_v12, %v5964_v12  ;;  %v1535_v32 = vmul.f32 %v5967_v61, %v5967_v61 }
 0x453   :  { %v2223_v11 = vpop.permute.xlu1 %2222  ;;  %v1537_v41 = vmul.f32 %v5970_v44, %v5970_v44  ;;  %v1536_v8 = vmul.f32 %v5973_v26, %v5973_v26 }
 0x454   :  { %v1544_v62 = vsel %vm5590_vm12, %v1532_v47, 0.0  ;;  %v1545_v54 = vsel %vm5594_vm13, %v1533_v63, 0.0  ;;  %v2232_v42 = vsel %vm7097_vm7, %v2221_v38, %v2223_v11  ;;  %v1546_v50 = vsel %vm5599_vm14, %v1534_v17, 0.0 }
 0x455   :  { %v1558_v31 = vadd.f32 %v1545_v54, %v1544_v62  ;;  %v2241_v33 = vsel %vm103_vm1, %v2232_v42, 0  ;;  %v1547_v22 = vsel %vm5610_vm15, %v1535_v32, 0.0  ;;  %v1549_v1 = vsel %vm5619_vm10, %v1537_v41, 0.0 }
 0x456   :  { %2265 = vmatpush.bf16.msrb.mxu2 %v2241_v33  ;;  %v1548_v24 = vsel %vm5615_vm11, %v1536_v8, 0.0  ;;  %v1562_v27 = vsel %vm99_vm2, %v1549_v1, 0.0 }
 0x457   :  { %v1559_v18 = vadd.f32 %v1558_v31, %v1546_v50 }
 0x458   :  { %4766 = vmatmul.msk.bf16.vlgmr.msrb.gmra.mxu3 %vm99_vm2, %v4760_v34  ;;  %4768 = vmatmul.msk.bf16.vlgmr.msra.gmra.mxu0 %vm99_vm2, %v4767_v39 }
 0x459   :  { %v1560_v25 = vadd.f32 %v1559_v18, %v1547_v22  ;;  %v6081_v22 = vld [vmem:[%s7013_s2 + $0x14] sm:$0xf] }
 0x45b   :  { %4769 = vmatmul.msk.bf16.vlgmr.msra.gmra.mxu1 %vm99_vm2, %v4767_v39  ;;  %v1561_v51 = vadd.f32 %v1560_v25, %v1548_v24  ;;  %v2107_v52 = vpop.permute.xlu1 %2106 }
 0x45c   :  { %v2132_v36 = vsel %vm103_vm1, %v2107_v52, 0 }
 0x45d   :  { %v1563_v48 = vadd.f32 %v1562_v27, %v1561_v51  ;;  %2206 = vmatpush.bf16.msrb.mxu1 %v2132_v36 }
 0x45f   :  { %1564 = vadd.xlane.f32.xlu2 %v1563_v48 }
 0x460   :  { %v2105_v43 = vpop.permute.xlu0 %2104  ;;  %4770 = vmatmul.msk.bf16.vlgmr.msra.gmra.mxu2 %vm99_vm2, %v4767_v39 }
 0x461   :  { %v2111_v56 = vsel %vm7094_vm8, %v2103_v35, %v2105_v43  ;;  %v2112_v10 = vsel %vm7098_vm9, %v2105_v43, %v2107_v52  ;;  %vm7100_vm8 = vmmov %vm7099_vm3  ;;  %vm7101_vm9 = vcmask 842752  }
 0x462   :  { %v2126_v9 = vsel %vm103_vm1, %v2111_v56, 0  ;;  %v2129_v28 = vsel %vm103_vm1, %v2112_v10, 0 }
 0x463   :  { %2180 = vmatpush.bf16.msra.mxu3 %v2126_v9  ;;  %2193 = vmatpush.bf16.msrb.mxu0 %v2129_v28  ;;  %v2227_v45 = vpop.permute.xlu1 %2226 }
 0x468   :  { %v2225_v6 = vpop.permute.xlu0 %2224  ;;  %4771 = vmatmul.msk.bf16.vlgmr.msra.gmra.mxu3 %vm99_vm2, %v4767_v39  ;;  %4772 = vmatmul.msk.bf16.vlgmr.msrb.gmra.mxu0 %vm99_vm2, %v4767_v39 }
 0x469   :  { %v2233_v13 = vsel %vm7097_vm7, %v2223_v11, %v2225_v6  ;;  %v2234_v34 = vsel %vm7099_vm3, %v2225_v6, %v2227_v45  ;;  %vm7102_vm7 = vmmov %vm7101_vm9 }
 0x46a   :  { %v2244_v30 = vsel %vm103_vm1, %v2233_v13, 0  ;;  %v2247_v15 = vsel %vm103_vm1, %v2234_v34, 0 }
 0x46b   :  { %4773 = vmatmul.msk.bf16.vlgmr.msrb.gmra.mxu1 %vm99_vm2, %v4767_v39  ;;  %2278 = vmatpush.bf16.msrb.mxu3 %v2244_v30  ;;  %v2231_v35 = vpop.permute.xlu1 %2230 }
 0x46c   :  { %2291 = vmatpush.bf16.msra.mxu0 %v2247_v15  ;;  %v2256_v55 = vsel %vm103_vm1, %v2231_v35, 0 }
 0x46f   :  { %2330 = vmatpush.bf16.msra.mxu3 %v2256_v55 }
 0x470   :  { %v2229_v29 = vpop.permute.xlu0 %2228  ;;  %4775 = vmatmul.msk.bf16.vlgmr.msrb.gmra.mxu2 %vm99_vm2, %v4774_v19 }
 0x471   :  { %v2235_v7 = vsel %vm7099_vm3, %v2227_v45, %v2229_v29  ;;  %v2236_v59 = vsel %vm7100_vm8, %v2229_v29, %v2231_v35  ;;  %vm7103_vm3 = vmmov %vm7102_vm7  ;;  %vm7104_vm8 = vcmask 711680  }
 0x472   :  { %v2250_v38 = vsel %vm103_vm1, %v2235_v7, 0  ;;  %v2253_v4 = vsel %vm103_vm1, %v2236_v59, 0 }
 0x473   :  { %2304 = vmatpush.bf16.msra.mxu1 %v2250_v38  ;;  %2317 = vmatpush.bf16.msra.mxu2 %v2253_v4  ;;  %v6030_v46 = vpop.permute.xlu1 %1631 }
 0x477   :  { %2346 = vrot.lane.b32.xlu2 %v5723_v14, %s5066_s18 }
 0x478   :  { %v1576_v47 = vpop.permute.xlu0 %1575  ;;  %4776 = vmatmul.msk.bf16.vlgmr.msrb.gmra.mxu3 %vm99_vm2, %v4774_v19  ;;  %4777 = vmatmul.msk.bf16.vlgmr.msra.gmra.mxu0 %vm99_vm2, %v4774_v19 }
 0x479   :  { %v6037_v63 = vmul.f32 %v1576_v47, %v5964_v12  ;;  %v6040_v17 = vmul.f32 %v1576_v47, %v5967_v61  ;;  %v6043_v11 = vmul.f32 %v1576_v47, %v5958_v3  ;;  %v6046_v32 = vmul.f32 %v1576_v47, %v5961_v49 }
 0x47a   :  { %v6050_v62 = vmul.f32 %v1576_v47, %v5973_v26  ;;  %v6053_v54 = vmul.f32 %v1576_v47, %v5970_v44 }
 0x47b   :  { %4778 = vmatmul.msk.bf16.vlgmr.msra.gmra.mxu1 %vm99_vm2, %v4774_v19  ;;  %v2349_v42 = vpop.permute.xlu1 %2348 }
 0x47f   :  { %2472 = vrot.lane.b32.xlu2 %v5755_v58, %s5067_s19 }
 0x480   :  { %v2345_v12 = vpop.permute.xlu0 %2344  ;;  %4779 = vmatmul.msk.bf16.vlgmr.msra.gmra.mxu2 %vm99_vm2, %v4774_v19 }
 0x483   :  { %v2353_v3 = vpop.permute.xlu1 %2352 }
 0x487   :  { %2478 = vrot.lane.b32.xlu2 %v5773_v16, %s5067_s19 }
 0x488   :  { %v2351_v49 = vpop.permute.xlu0 %2350  ;;  %4780 = vmatmul.msk.bf16.vlgmr.msra.gmra.mxu3 %vm99_vm2, %v4774_v19 }
 0x489   :  { %v2358_v61 = vsel %vm7101_vm9, %v2349_v42, %v2351_v49  ;;  %v2359_v26 = vsel %vm7102_vm7, %v2351_v49, %v2353_v3  ;;  %vm7105_vm9 = vmmov %vm7103_vm3 }
 0x48a   :  { %v2371_v44 = vsel %vm103_vm1, %v2358_v61, 0  ;;  %v2374_v41 = vsel %vm103_vm1, %v2359_v26, 0  ;;  %vm7106_vm7 = vmmov %vm7103_vm3 }
 0x48b   :  { %2415 = vmatpush.bf16.msrb.mxu2 %v2371_v44  ;;  %2428 = vmatpush.bf16.msrb.mxu3 %v2374_v41  ;;  %v2469_v8 = vpop.permute.xlu1 %2468 }
 0x48f   :  { %2592 = vrot.lane.b32.xlu2 %v5694_v37, %s5068_s20 }
 0x490   :  { %v2355_v31 = vpop.permute.xlu0 %2354  ;;  %4784 = vmatmul.msk.bf16.vlgmr.msrb.gmra.mxu2 %vm99_vm2, %v6081_v22 }
 0x491   :  { %v2360_v33 = vsel %vm7103_vm3, %v2353_v3, %v2355_v31  ;;  %v2380_v10 = vsel %vm103_vm1, %v2355_v31, 0  ;;  %vm7107_vm3 = vmmov %vm7104_vm8 }
 0x492   :  { %v2377_v56 = vsel %vm103_vm1, %v2360_v33, 0 }
 0x493   :  { %v2475_v27 = vpop.permute.xlu1 %2474  ;;  %v1785_v49 = vpop.f32.mrf.mxu2 }
 0x497   :  { %2596 = vrot.lane.b32.xlu2 %v5755_v58, %s5068_s20 }
 0x498   :  { %v2471_v50 = vpop.permute.xlu0 %2470  ;;  %4785 = vmatmul.msk.bf16.vlgmr.msrb.gmra.mxu3 %vm99_vm2, %v6081_v22 }
 0x499   :  { %v2480_v39 = vsel %vm7104_vm8, %v2469_v8, %v2471_v50  ;;  %vm7108_vm8 = vmmov %vm7107_vm3 }
 0x49a   :  { %v2489_v18 = vsel %vm103_vm1, %v2480_v39, 0 }
 0x49b   :  { %2513 = vmatpush.bf16.msra.mxu2 %v2489_v18 }
 0x49f   :  { %2602 = vrot.lane.b32.xlu2 %v5773_v16, %s5068_s20 }
 0x4a0   :  { %v2477_v51 = vpop.permute.xlu0 %2476 }
 0x4a1   :  { %v2483_v9 = vsel %vm7107_vm3, %v2475_v27, %v2477_v51 }
 0x4a2   :  { %v2498_v45 = vsel %vm103_vm1, %v2483_v9, 0 }
 0x4a7   :  { %2720 = vrot.lane.b32.xlu2 %v5755_v58, %s5069_s23 }
 0x4af   :  { %2726 = vrot.lane.b32.xlu2 %v5773_v16, %s5069_s23 }
 0x4d2   :  { %v1565_v1 = vpop.xlane.xlu2 %1564 }
 0x4d3   :  { %v1567_v25 = vmul.f32 0.001953125, %v1565_v1 }
 0x4d5   :  { %v1591_v24 = vadd.f32 1e-05, %v1567_v25 }
 0x4d7   :  { %4955 = vrsqrt.f32 %v1591_v24 }
 0x4da   :  { %v2347_v58 = vpop.permute.xlu2 %2346 }
 0x4db   :  { %v2356_v52 = vsel %vm7105_vm9, %v2345_v12, %v2347_v58  ;;  %v2357_v16 = vsel %vm7106_vm7, %v2347_v58, %v2349_v42  ;;  %vm7109_vm9 = vmmov %vm7107_vm3  ;;  %vm1608_vm3 = vweird.f32 %v1591_v24  ;;  %v1824_v58 = vpop.f32.mrf.mxu1 }
 0x4dc   :  { %v2365_v36 = vsel %vm103_vm1, %v2356_v52, 0  ;;  %v2368_v48 = vsel %vm103_vm1, %v2357_v16, 0  ;;  %v4788_v52 = vld [vmem:[%s7013_s2 + $0x18] sm:$0xf] }
 0x4dd   :  { %v4956_v43 = vpop.eup %4955  ;;  %2389 = vmatpush.bf16.msrb.mxu0 %v2365_v36  ;;  %2402 = vmatpush.bf16.msrb.mxu1 %v2368_v48 }
 0x4de   :  { %v1603_v28 = vmul.f32 %v4956_v43, %v1591_v24  ;;  %vm1609_vm7 = vweird.f32 %v4956_v43  ;;  %v1787_v24 = vpop.f32.mrf.mxu2  ;;  %4789 = vmatmul.msk.bf16.vlgmr.msra.gmra.mxu2 %vm99_vm2, %v4788_v52 }
 0x4df   :  { %vm1610_vm0 = vmor %vm1608_vm3, %vm1609_vm7  ;;  %vm7115_vm7 = vcmask 695296  }
 0x4e0   :  { %v1604_v6 = vmul.f32 %v4956_v43, %v1603_v28  ;;  %4783 = vmatmul.msk.bf16.vlgmr.msrb.gmra.mxu1 %vm99_vm2, %v6081_v22  ;;  %4782 = vmatmul.msk.bf16.vlgmr.msrb.gmra.mxu0 %vm99_vm2, %v6081_v22  ;;  %vm7116_vm3 = vmmov %vm7115_vm7 }
 0x4e1   :  { %2441 = vmatpush.bf16.msra.mxu0 %v2377_v56  ;;  %2454 = vmatpush.bf16.msra.mxu1 %v2380_v10 }
 0x4e2   :  { %v1605_v13 = vmul.f32 0.5, %v1604_v6  ;;  %v2473_v34 = vpop.permute.xlu2 %2472 }
 0x4e3   :  { %v2481_v30 = vsel %vm7108_vm8, %v2471_v50, %v2473_v34  ;;  %v2482_v15 = vsel %vm7109_vm9, %v2473_v34, %v2475_v27 }
 0x4e4   :  { %v1606_v35 = vsub.f32 1.5, %v1605_v13  ;;  %v2492_v55 = vsel %vm103_vm1, %v2481_v30, 0  ;;  %v2495_v19 = vsel %vm103_vm1, %v2482_v15, 0 }
 0x4e5   :  { %2552 = vmatpush.bf16.msrb.mxu1 %v2498_v45  ;;  %2526 = vmatpush.bf16.msra.mxu3 %v2492_v55 }
 0x4e6   :  { %2539 = vmatpush.bf16.msrb.mxu0 %v2495_v19  ;;  %v1607_v29 = vmul.f32 %v4956_v43, %v1606_v35  ;;  %v1837_v27 = vpop.f32.mrf.mxu2 }
 0x4e8   :  { %v1611_v7 = vsel %vm1610_vm0, %v4956_v43, %v1607_v29  ;;  %4790 = vmatmul.msk.bf16.vlgmr.msra.gmra.mxu3 %vm99_vm2, %v4788_v52  ;;  %vm7110_vm0 = vcmask 703488  }
 0x4e9   :  { %v1620_v59 = vmul.f32 %v1611_v7, %v6037_v63  ;;  %v1621_v38 = vmul.f32 %v1611_v7, %v6040_v17  ;;  %v1618_v4 = vmul.f32 %v1611_v7, %v6043_v11  ;;  %v1619_v47 = vmul.f32 %v1611_v7, %v6046_v32  ;;  %vm7111_vm9 = vmmov %vm7110_vm0 }
 0x4ea   :  { %v2479_v42 = vpop.permute.xlu2 %2478  ;;  %v1622_v12 = vmul.f32 %v1611_v7, %v6050_v62  ;;  %v1623_v3 = vmul.f32 %v1611_v7, %v6053_v54 }
 0x4eb   :  { %v2484_v61 = vsel %vm7108_vm8, %v2477_v51, %v2479_v42  ;;  %v2504_v26 = vsel %vm103_vm1, %v2479_v42, 0  ;;  %v1642_v44 = vadd.f32 %v6030_v46, %v1620_v59  ;;  %v1643_v63 = vadd.f32 %v6030_v46, %v1621_v38  ;;  %v1811_v51 = vpop.f32.mrf.mxu0  ;;  %vm7117_vm8 = vmmov %vm7116_vm3 }
 0x4ec   :  { %v2501_v17 = vsel %vm103_vm1, %v2484_v61, 0  ;;  %2578 = vmatpush.bf16.msrb.mxu3 %v2504_v26  ;;  %v1640_v11 = vadd.f32 %v6030_v46, %v1618_v4  ;;  %v1641_v32 = vadd.f32 %v6030_v46, %v1619_v47  ;;  %v1644_v62 = vadd.f32 %v6030_v46, %v1622_v12 }
 0x4ed   :  { %2565 = vmatpush.bf16.msrb.mxu2 %v2501_v17  ;;  %v1654_v54 = vsel %vm5599_vm14, %v1642_v44, 0.0  ;;  %v1655_v41 = vsel %vm5610_vm15, %v1643_v63, 0.0  ;;  %v1645_v31 = vadd.f32 %v6030_v46, %v1623_v3  ;;  %v1798_v46 = vpop.f32.mrf.mxu3 }
 0x4ee   :  { %v1692_v33 = vpack.c.bf16 %v1655_v41, %v1654_v54  ;;  %v1652_v8 = vsel %vm5590_vm12, %v1640_v11, 0.0  ;;  %v1653_v50 = vsel %vm5594_vm13, %v1641_v32, 0.0  ;;  %v1656_v39 = vsel %vm5615_vm11, %v1644_v62, 0.0  ;;  %v1839_v43 = vpop.f32.mrf.mxu2 }
 0x4ef   :  { %v1691_v18 = vpack.c.bf16 %v1653_v50, %v1652_v8  ;;  %v1657_v1 = vsel %vm5619_vm10, %v1645_v31, 0.0 }
 0x4f0   :  { %1699 = vrot.lane.b32.xlu0 %v1692_v33, %s5071_s5  ;;  %v1693_v25 = vpack.c.bf16 %v1657_v1, %v1656_v39  ;;  %4786 = vmatmul.msk.bf16.vlgmr.msra.gmra.mxu0 %vm99_vm2, %v6081_v22 }
 0x4f1   :  { %1697 = vrot.lane.b32.xlu1 %v1691_v18, %s5071_s5  ;;  %4787 = vmatmul.msk.bf16.vlgmr.msra.gmra.mxu1 %vm99_vm2, %v6081_v22  ;;  %v1826_v22 = vpop.f32.mrf.mxu1 }
 0x4f2   :  { %4793 = vmatmul.msk.bf16.vlgmr.msrb.gmra.mxu2 %vm99_vm2, %v4788_v52  ;;  %v2593_v43 = vpop.permute.xlu2 %2592 }
 0x4f3   :  { %v1813_v36 = vpop.f32.mrf.mxu0 }
 0x4f5   :  { %v1800_v16 = vpop.f32.mrf.mxu3 }
 0x4f6   :  { %v1927_v6 = vpop.f32.mrf.mxu2 }
 0x4f7   :  { %v1928_v30 = vadd.f32 %v1927_v6, %v1811_v51 }
 0x4f8   :  { %1701 = vrot.lane.b32.xlu0 %v1693_v25, %s5071_s5  ;;  %4794 = vmatmul.msk.bf16.vlgmr.msrb.gmra.mxu3 %vm99_vm2, %v4788_v52 }
 0x4f9   :  { %2594 = vrot.lane.b32.xlu1 %v5723_v14, %s5068_s20  ;;  %v1914_v10 = vpop.f32.mrf.mxu1 }
 0x4fa   :  { %v1915_v28 = vadd.f32 %v1914_v10, %v1798_v46 }
 0x4fb   :  { %v1901_v56 = vpop.f32.mrf.mxu0 }
 0x4fc   :  { %v1902_v9 = vadd.f32 %v1901_v56, %v1785_v49 }
 0x4fd   :  { %v1850_v48 = vpop.f32.mrf.mxu3 }
 0x4fe   :  { %v1929_v55 = vpop.f32.mrf.mxu2 }
 0x500   :  { %2600 = vrot.lane.b32.xlu0 %v5735_v21, %s5068_s20  ;;  %4791 = vmatmul.msk.bf16.vlgmr.msrb.gmra.mxu0 %vm99_vm2, %v4788_v52 }
 0x501   :  { %2598 = vrot.lane.b32.xlu1 %v5725_v20, %s5068_s20  ;;  %4792 = vmatmul.msk.bf16.vlgmr.msrb.gmra.mxu1 %vm99_vm2, %v4788_v52  ;;  %v1916_v34 = vpop.f32.mrf.mxu1 }
 0x503   :  { %v1903_v13 = vpop.f32.mrf.mxu0 }
 0x505   :  { %v1852_v45 = vpop.f32.mrf.mxu3 }
 0x508   :  { %2718 = vrot.lane.b32.xlu0 %v5723_v14, %s5069_s23 }
 0x509   :  { %2716 = vrot.lane.b32.xlu1 %v5694_v37, %s5069_s23  ;;  %v1966_v29 = vpop.f32.mrf.mxu1  ;;  %v2019_v37 = vpop.f32.mrf.mxu2 }
 0x50a   :  { %v1967_v7 = vadd.f32 %v1966_v29, %v1850_v48  ;;  %v2088_v47 = vadd.f32 %v2019_v37, %v1902_v9 }
 0x50b   :  { %v1953_v19 = vpop.f32.mrf.mxu0 }
 0x50c   :  { %v1954_v14 = vadd.f32 %v1953_v19, %v1837_v27 }
 0x50d   :  { %v1940_v15 = vpop.f32.mrf.mxu3 }
 0x50e   :  { %v1941_v35 = vadd.f32 %v1940_v15, %v1824_v58 }
 0x510   :  { %2724 = vrot.lane.b32.xlu0 %v5735_v21, %s5069_s23 }
 0x511   :  { %2722 = vrot.lane.b32.xlu1 %v5725_v20, %s5069_s23  ;;  %v1968_v4 = vpop.f32.mrf.mxu1  ;;  %v2021_v3 = vpop.f32.mrf.mxu2 }
 0x513   :  { %v1955_v38 = vpop.f32.mrf.mxu0 }
 0x515   :  { %v1942_v59 = vpop.f32.mrf.mxu3 }
 0x519   :  { %v2058_v21 = vpop.f32.mrf.mxu1  ;;  %v2071_v44 = vpop.f32.mrf.mxu2 }
 0x51a   :  { %v2091_v26 = vadd.f32 %v2058_v21, %v1941_v35  ;;  %v2092_v11 = vadd.f32 %v2071_v44, %v1954_v14 }
 0x51b   :  { %v2045_v49 = vpop.f32.mrf.mxu0 }
 0x51c   :  { %v2090_v61 = vadd.f32 %v2045_v49, %v1928_v30  ;;  %v2597_v30 = vpop.permute.xlu2 %2596 }
 0x51d   :  { %v2032_v42 = vpop.f32.mrf.mxu3 }
 0x51e   :  { %v2089_v12 = vadd.f32 %v2032_v42, %v1915_v28 }
 0x521   :  { %v2060_v17 = vpop.f32.mrf.mxu1  ;;  %v2073_v54 = vpop.f32.mrf.mxu2 }
 0x523   :  { %v2047_v63 = vpop.f32.mrf.mxu0 }
 0x524   :  { %v2603_v4 = vpop.permute.xlu2 %2602 }
 0x525   :  { %v2034_v20 = vpop.f32.mrf.mxu3 }
 0x529   :  { %v2156_v31 = vpop.f32.mrf.mxu1  ;;  %v2169_v39 = vpop.f32.mrf.mxu2 }
 0x52a   :  { %v2213_v8 = vadd.f32 %v2156_v31, %v2089_v12  ;;  %v2214_v25 = vadd.f32 %v2169_v39, %v2090_v61 }
 0x52b   :  { %v2143_v41 = vpop.f32.mrf.mxu0 }
 0x52c   :  { %v2212_v33 = vadd.f32 %v2143_v41, %v2088_v47 }
 0x52d   :  { %v2084_v32 = vpop.f32.mrf.mxu3 }
 0x52e   :  { %v2093_v62 = vadd.f32 %v2084_v32, %v1967_v7 }
 0x531   :  { %v2158_v1 = vpop.f32.mrf.mxu1  ;;  %v2171_v51 = vpop.f32.mrf.mxu2 }
 0x533   :  { %v2145_v18 = vpop.f32.mrf.mxu0 }
 0x534   :  { %v4795_v18 = vld [vmem:[%s7013_s2 + $0x1c] sm:$0xf] }
 0x535   :  { %v2086_v50 = vpop.f32.mrf.mxu3 }
 0x539   :  { %v2208_v52 = vpop.f32.mrf.mxu1  ;;  %v2267_v56 = vpop.f32.mrf.mxu2 }
 0x53a   :  { %v2217_v22 = vadd.f32 %v2208_v52, %v2093_v62  ;;  %v2336_v28 = vadd.f32 %v2267_v56, %v2212_v33 }
 0x53b   :  { %v2195_v58 = vpop.f32.mrf.mxu0 }
 0x53c   :  { %v2216_v36 = vadd.f32 %v2195_v58, %v2092_v11 }
 0x53d   :  { %v2182_v46 = vpop.f32.mrf.mxu3 }
 0x53e   :  { %v2215_v24 = vadd.f32 %v2182_v46, %v2091_v26 }
 0x541   :  { %v2210_v48 = vpop.f32.mrf.mxu1  ;;  %v2269_v15 = vpop.f32.mrf.mxu2 }
 0x543   :  { %v2197_v27 = vpop.f32.mrf.mxu0 }
 0x545   :  { %v2184_v16 = vpop.f32.mrf.mxu3 }
 0x549   :  { %v2306_v13 = vpop.f32.mrf.mxu1  ;;  %v2319_v37 = vpop.f32.mrf.mxu2 }
 0x54a   :  { %v6162_v34 = vadd.f32 %v2306_v13, %v2215_v24  ;;  %v6164_v38 = vadd.f32 %v2319_v37, %v2216_v36  ;;  %v6193_v24 = vpop.permute.xlu2 %2720 }
 0x54b   :  { %v2293_v9 = vpop.f32.mrf.mxu0 }
 0x54c   :  { %v6160_v6 = vadd.f32 %v2293_v9, %v2214_v25 }
 0x54d   :  { %v2280_v10 = vpop.f32.mrf.mxu3 }
 0x54e   :  { %v2337_v45 = vadd.f32 %v2280_v10, %v2213_v8  ;;  %v2628_v8 = vsel %vm103_vm1, %v2603_v4, 0 }
 0x551   :  { %v2308_v19 = vpop.f32.mrf.mxu1  ;;  %v2321_v54 = vpop.f32.mrf.mxu2 }
 0x552   :  { %v2727_v37 = vpop.permute.xlu2 %2726 }
 0x553   :  { %v2295_v55 = vpop.f32.mrf.mxu0 }
 0x555   :  { %v2282_v35 = vpop.f32.mrf.mxu3 }
 0x559   :  { %v2417_v10 = vpop.f32.mrf.mxu2 }
 0x55d   :  { %v2332_v12 = vpop.f32.mrf.mxu3  ;;  %v2391_v61 = vpop.f32.mrf.mxu0 }
 0x55e   :  { %v6171_v49 = vadd.f32 %v2332_v12, %v2217_v22  ;;  %v6173_v26 = vadd.f32 %v2391_v61, %v2336_v28  ;;  %v2404_v20 = vpop.f32.mrf.mxu1 }
 0x55f   :  { %v6177_v17 = vadd.f32 %v2404_v20, %v2337_v45  ;;  %v2462_v45 = vadd.f32 %v2417_v10, %v6160_v6 }
 0x562   :  { %v1700_v29 = vpop.permute.xlu0 %1699 }
 0x563   :  { %v1698_v14 = vpop.permute.xlu1 %1697  ;;  %v1704_v7 = vrot.slane %v1700_v29, 4 }
 0x564   :  { %v1703_v59 = vrot.slane %v1698_v14, 4 }
 0x565   :  { %v2334_v1 = vpop.f32.mrf.mxu3  ;;  %v2393_v51 = vpop.f32.mrf.mxu0 }
 0x566   :  { %v1706_v47 = vsel %vm1673_vm5, %v1703_v59, %v1698_v14  ;;  %v1707_v42 = vsel %vm103_vm1, %v1703_v59, %v1704_v7  ;;  %v2406_v16 = vpop.f32.mrf.mxu1 }
 0x567   :  { %1714 = vst.msk [vmem:[#allocation3] sm:$0xff] %vm5665_vm4, %v1706_v47  ;;  %v1708_v3 = vsel %vm1673_vm5, %v1707_v42, %v1700_v29  ;;  %vm7112_vm4 = vmmov %vm7110_vm0 }
 0x568   :  { %v2849_v21 = vunpack.c.l.b16 %v1708_v3  ;;  %v2850_v22 = vunpack.c.h.b16 %v1708_v3 }
 0x56a   :  { %v6175_v44 = vpack.c.b16 %v2849_v21, %v2849_v21  ;;  %v1702_v63 = vpop.permute.xlu0 %1701  ;;  %v6213_v19 = vpack.c.b16 %v2850_v22, %v2850_v22 }
 0x56b   :  { %v2595_v11 = vpop.permute.xlu1 %2594  ;;  %v1705_v32 = vrot.slane %v1702_v63, 4 }
 0x56c   :  { %v2604_v62 = vsel %vm7110_vm0, %v2593_v43, %v2595_v11  ;;  %v2605_v5 = vsel %vm7111_vm9, %v2595_v11, %v2597_v30  ;;  %2863 = vrot.lane.b32.xlu2 %v6175_v44, %s5061_s14 }
 0x56d   :  { %v2613_v41 = vsel %vm103_vm1, %v2604_v62, 0  ;;  %v2616_v31 = vsel %vm103_vm1, %v2605_v5, 0  ;;  %v1709_v33 = vsel %vm103_vm1, %v1704_v7, %v1705_v32  ;;  %v2430_v15 = vpop.f32.mrf.mxu3  ;;  %v2443_v29 = vpop.f32.mrf.mxu0 }
 0x56e   :  { %v2838_v50 = vld [vmem:[#allocation3] sm:$0xff]  ;;  %v1710_v39 = vsel %vm1673_vm5, %v1709_v33, %v1702_v63  ;;  %2637 = vmatpush.bf16.msra.mxu0 %v2613_v41  ;;  %2650 = vmatpush.bf16.msra.mxu1 %v2616_v31  ;;  %vm7113_vm5 = vmmov %vm7110_vm0  ;;  %v2464_v6 = vadd.f32 %v2443_v29, %v6164_v38  ;;  %v2456_v59 = vpop.f32.mrf.mxu1  ;;  %v2419_v38 = vpop.f32.mrf.mxu2  ;;  %v4809_v29 = vld [vmem:[%s7014_s3 + $0x4] sm:$0xf] }
 0x56f   :  { %v2847_v25 = vunpack.c.l.b16 %v2838_v50  ;;  %v2848_v46 = vunpack.c.h.b16 %v2838_v50  ;;  %1716 = vst.msk [vmem:[#allocation3 + $0x10] sm:$0xff] %vm5681_vm6, %v1710_v39  ;;  %vm7114_vm6 = vmmov %vm7110_vm0  ;;  %v2465_v47 = vadd.f32 %v2456_v59, %v6171_v49  ;;  %v2752_v49 = vsel %vm103_vm1, %v2727_v37, 0  ;;  %v4802_v39 = vld [vmem:[%s7013_s2 + $0x20] sm:$0xf] }
 0x570   :  { %vm7118_vm0 = vmmov %vm7116_vm3 }
 0x571   :  { %v6195_v58 = vpack.c.b16 %v2847_v25, %v2847_v25  ;;  %v6197_v52 = vpack.c.b16 %v2848_v46, %v2848_v46  ;;  %4796 = vmatmul.msk.bf16.vlgmr.msra.gmra.mxu0 %vm99_vm2, %v4795_v18  ;;  %4797 = vmatmul.msk.bf16.vlgmr.msra.gmra.mxu1 %vm99_vm2, %v4795_v18  ;;  %vm7119_vm9 = vmmov %vm7118_vm0 }
 0x572   :  { %2702 = vmatpush.bf16.msrb.mxu1 %v2628_v8  ;;  %v2601_v27 = vpop.permute.xlu0 %2600 }
 0x573   :  { %2861 = vrot.lane.b32.xlu0 %v6197_v52, %s5061_s14  ;;  %2859 = vrot.lane.b32.xlu1 %v6195_v58, %s5061_s14  ;;  %v2599_v23 = vpop.permute.xlu1 %2598  ;;  %v2608_v36 = vsel %vm7112_vm4, %v2601_v27, %v2603_v4  ;;  %vm7120_vm4 = vcmask 998400  }
 0x574   :  { %v2606_v48 = vsel %vm7113_vm5, %v2597_v30, %v2599_v23  ;;  %v2607_v43 = vsel %vm7114_vm6, %v2599_v23, %v2601_v27  ;;  %v2625_v56 = vsel %vm103_vm1, %v2608_v36, 0  ;;  %v2463_v30 = vadd.f32 %v2430_v15, %v6162_v34  ;;  %vm7121_vm5 = vmmov %vm7120_vm4 }
 0x575   :  { %v2619_v9 = vsel %vm103_vm1, %v2606_v48, 0  ;;  %v2622_v28 = vsel %vm103_vm1, %v2607_v43, 0  ;;  %2689 = vmatpush.bf16.msrb.mxu0 %v2625_v56  ;;  %v2432_v61 = vpop.f32.mrf.mxu3  ;;  %v2445_v20 = vpop.f32.mrf.mxu0  ;;  %vm7122_vm6 = vmmov %vm7120_vm4 }
 0x576   :  { %v2840_v13 = vld [vmem:[#allocation3 + $0x10] sm:$0xff]  ;;  %2663 = vmatpush.bf16.msra.mxu2 %v2619_v9  ;;  %2676 = vmatpush.bf16.msra.mxu3 %v2622_v28  ;;  %v2458_v63 = vpop.f32.mrf.mxu1  ;;  %v2515_v31 = vpop.f32.mrf.mxu2 }
 0x577   :  { %v2851_v35 = vunpack.c.l.b16 %v2840_v13  ;;  %v2852_v55 = vunpack.c.h.b16 %v2840_v13  ;;  %v6251_v50 = vadd.f32 %v2515_v31, %v6173_v26 }
 0x579   :  { %v6215_v14 = vpack.c.b16 %v2851_v35, %v2851_v35  ;;  %v6217_v7 = vpack.c.b16 %v2852_v55, %v2852_v55  ;;  %4798 = vmatmul.msk.bf16.vlgmr.msra.gmra.mxu2 %vm99_vm2, %v4795_v18  ;;  %4799 = vmatmul.msk.bf16.vlgmr.msra.gmra.mxu3 %vm99_vm2, %v4795_v18 }
 0x57a   :  { %v2719_v4 = vpop.permute.xlu0 %2718 }
 0x57b   :  { %v2717_v42 = vpop.permute.xlu1 %2716  ;;  %2865 = vrot.lane.b32.xlu1 %v6213_v19, %s5061_s14  ;;  %v2729_v34 = vsel %vm7115_vm7, %v2719_v4, %v6193_v24  ;;  %2869 = vrot.lane.b32.xlu2 %v6217_v7, %s5061_s14  ;;  %vm7123_vm7 = vmmov %vm7120_vm4 }
 0x57c   :  { %v2728_v12 = vsel %vm7116_vm3, %v2717_v42, %v2719_v4  ;;  %v2740_v3 = vsel %vm103_vm1, %v2729_v34, 0  ;;  %2867 = vrot.lane.b32.xlu0 %v6215_v14, %s5061_s14  ;;  %vm7124_vm3 = vmmov %vm7120_vm4 }
 0x57d   :  { %v2737_v21 = vsel %vm103_vm1, %v2728_v12, 0  ;;  %2774 = vmatpush.bf16.msrb.mxu3 %v2740_v3  ;;  %v2541_v25 = vpop.f32.mrf.mxu0 }
 0x57e   :  { %2761 = vmatpush.bf16.msrb.mxu2 %v2737_v21  ;;  %v6261_v46 = vadd.f32 %v2541_v25, %v2462_v45 }
 0x581   :  { %2826 = vmatpush.bf16.msra.mxu3 %v2752_v49  ;;  %4800 = vmatmul.msk.bf16.vlgmr.msrb.gmra.mxu0 %vm99_vm2, %v4795_v18 }
 0x582   :  { %4801 = vmatmul.msk.bf16.vlgmr.msrb.gmra.mxu1 %vm99_vm2, %v4795_v18  ;;  %v2725_v11 = vpop.permute.xlu0 %2724  ;;  %v2528_v18 = vpop.f32.mrf.mxu3 }
 0x583   :  { %v2723_v32 = vpop.permute.xlu1 %2722  ;;  %2975 = vrot.lane.b32.xlu1 %v6195_v58, %s5062_s0  ;;  %v2732_v62 = vsel %vm7117_vm8, %v2725_v11, %v2727_v37  ;;  %2979 = vrot.lane.b32.xlu2 %v6175_v44, %s5062_s0  ;;  %v6257_v1 = vadd.f32 %v2528_v18, %v6177_v17  ;;  %v2517_v17 = vpop.f32.mrf.mxu2  ;;  %vm7125_vm8 = vcmask 1006592  }
 0x584   :  { %v2730_v5 = vsel %vm7118_vm0, %v6193_v24, %v2723_v32  ;;  %v2731_v54 = vsel %vm7119_vm9, %v2723_v32, %v2725_v11  ;;  %v2749_v41 = vsel %vm103_vm1, %v2732_v62, 0  ;;  %2977 = vrot.lane.b32.xlu0 %v6197_v52, %s5062_s0  ;;  %v2554_v24 = vpop.f32.mrf.mxu1  ;;  %vm7126_vm0 = vmmov %vm7125_vm8 }
 0x585   :  { %v2743_v33 = vsel %vm103_vm1, %v2730_v5, 0  ;;  %v2746_v8 = vsel %vm103_vm1, %v2731_v54, 0  ;;  %2813 = vmatpush.bf16.msra.mxu2 %v2749_v41  ;;  %v6263_v26 = vadd.f32 %v2554_v24, %v2463_v30  ;;  %v2543_v16 = vpop.f32.mrf.mxu0  ;;  %vm7127_vm9 = vmmov %vm7126_vm0 }
 0x586   :  { %2787 = vmatpush.bf16.msra.mxu0 %v2743_v33  ;;  %2800 = vmatpush.bf16.msra.mxu1 %v2746_v8 }
 0x589   :  { %4803 = vmatmul.msk.bf16.vlgmr.msrb.gmra.mxu2 %vm99_vm2, %v4802_v39  ;;  %4804 = vmatmul.msk.bf16.vlgmr.msrb.gmra.mxu3 %vm99_vm2, %v4802_v39 }
 0x58a   :  { %v2530_v51 = vpop.f32.mrf.mxu3 }
 0x58b   :  { %2981 = vrot.lane.b32.xlu1 %v6213_v19, %s5062_s0  ;;  %2985 = vrot.lane.b32.xlu2 %v6217_v7, %s5062_s0  ;;  %v2567_v23 = vpop.f32.mrf.mxu2 }
 0x58c   :  { %2983 = vrot.lane.b32.xlu0 %v6215_v14, %s5062_s0  ;;  %v2556_v27 = vpop.f32.mrf.mxu1  ;;  %v6279_v36 = vadd.f32 %v2567_v23, %v2464_v6 }
 0x591   :  { %4805 = vmatmul.msk.bf16.vlgmr.msra.gmra.mxu0 %vm99_vm2, %v4802_v39 }
 0x592   :  { %4806 = vmatmul.msk.bf16.vlgmr.msra.gmra.mxu1 %vm99_vm2, %v4802_v39  ;;  %v2580_v22 = vpop.f32.mrf.mxu3 }
 0x593   :  { %3093 = vrot.lane.b32.xlu1 %v6195_v58, %s5063_s15  ;;  %3097 = vrot.lane.b32.xlu2 %v6175_v44, %s5063_s15  ;;  %v6281_v48 = vadd.f32 %v2580_v22, %v2465_v47  ;;  %v2569_v43 = vpop.f32.mrf.mxu2 }
 0x594   :  { %3095 = vrot.lane.b32.xlu0 %v6197_v52, %s5063_s15 }
 0x599   :  { %4807 = vmatmul.msk.bf16.vlgmr.msra.gmra.mxu2 %vm99_vm2, %v4802_v39  ;;  %4808 = vmatmul.msk.bf16.vlgmr.msra.gmra.mxu3 %vm99_vm2, %v4802_v39 }
 0x59a   :  { %v2582_v56 = vpop.f32.mrf.mxu3 }
 0x59b   :  { %3099 = vrot.lane.b32.xlu1 %v6213_v19, %s5063_s15  ;;  %3103 = vrot.lane.b32.xlu2 %v6217_v7, %s5063_s15 }
 0x59c   :  { %3101 = vrot.lane.b32.xlu0 %v6215_v14, %s5063_s15 }
 0x5a3   :  { %3217 = vrot.lane.b32.xlu1 %v6195_v58, %s5064_s16  ;;  %3221 = vrot.lane.b32.xlu2 %v6175_v44, %s5064_s16 }
 0x5a4   :  { %3219 = vrot.lane.b32.xlu0 %v6197_v52, %s5064_s16 }
 0x5ab   :  { %3223 = vrot.lane.b32.xlu1 %v6213_v19, %s5064_s16  ;;  %3227 = vrot.lane.b32.xlu2 %v6217_v7, %s5064_s16 }
 0x5ac   :  { %3225 = vrot.lane.b32.xlu0 %v6215_v14, %s5064_s16 }
 0x5b3   :  { %3341 = vrot.lane.b32.xlu1 %v6195_v58, %s5065_s17  ;;  %3345 = vrot.lane.b32.xlu2 %v6175_v44, %s5065_s17 }
 0x5b4   :  { %3343 = vrot.lane.b32.xlu0 %v6197_v52, %s5065_s17 }
 0x5bb   :  { %3347 = vrot.lane.b32.xlu1 %v6213_v19, %s5065_s17  ;;  %3351 = vrot.lane.b32.xlu2 %v6217_v7, %s5065_s17 }
 0x5bc   :  { %3349 = vrot.lane.b32.xlu0 %v6215_v14, %s5065_s17 }
 0x5c3   :  { %3465 = vrot.lane.b32.xlu1 %v6195_v58, %s5066_s18  ;;  %3469 = vrot.lane.b32.xlu2 %v6175_v44, %s5066_s18 }
 0x5c4   :  { %3467 = vrot.lane.b32.xlu0 %v6197_v52, %s5066_s18 }
 0x5c6   :  { %v2864_v10 = vpop.permute.xlu2 %2863 }
 0x5cb   :  { %3471 = vrot.lane.b32.xlu1 %v6213_v19, %s5066_s18  ;;  %3475 = vrot.lane.b32.xlu2 %v6217_v7, %s5066_s18 }
 0x5cc   :  { %3473 = vrot.lane.b32.xlu0 %v6215_v14, %s5066_s18 }
 0x5d3   :  { %3589 = vrot.lane.b32.xlu1 %v6195_v58, %s5067_s19  ;;  %3593 = vrot.lane.b32.xlu2 %v6175_v44, %s5067_s19 }
 0x5d4   :  { %3591 = vrot.lane.b32.xlu0 %v6197_v52, %s5067_s19 }
 0x5d5   :  { %v2870_v9 = vpop.permute.xlu2 %2869 }
 0x5d6   :  { %v2895_v30 = vsel %vm103_vm1, %v2870_v9, 0 }
 0x5db   :  { %3595 = vrot.lane.b32.xlu1 %v6213_v19, %s5067_s19  ;;  %3599 = vrot.lane.b32.xlu2 %v6217_v7, %s5067_s19 }
 0x5dc   :  { %3597 = vrot.lane.b32.xlu0 %v6215_v14, %s5067_s19 }
 0x5dd   :  { %v2980_v6 = vpop.permute.xlu2 %2979 }
 0x5e3   :  { %3713 = vrot.lane.b32.xlu1 %v6195_v58, %s5068_s20  ;;  %3717 = vrot.lane.b32.xlu2 %v6175_v44, %s5068_s20 }
 0x5e4   :  { %3715 = vrot.lane.b32.xlu0 %v6197_v52, %s5068_s20 }
 0x5e5   :  { %v2860_v28 = vpop.permute.xlu1 %2859  ;;  %v2862_v45 = vpop.permute.xlu0 %2861 }
 0x5e6   :  { %v2871_v13 = vsel %vm7120_vm4, %v2860_v28, %v2862_v45  ;;  %v2872_v15 = vsel %vm7121_vm5, %v2862_v45, %v2864_v10  ;;  %v2986_v20 = vpop.permute.xlu2 %2985  ;;  %vm7128_vm4 = vmmov %vm7126_vm0 }
 0x5e7   :  { %v2880_v35 = vsel %vm103_vm1, %v2871_v13, 0  ;;  %v2883_v55 = vsel %vm103_vm1, %v2872_v15, 0  ;;  %vm7129_vm5 = vmmov %vm7126_vm0 }
 0x5e8   :  { %2904 = vmatpush.bf16.msrb.mxu0 %v2880_v35  ;;  %2917 = vmatpush.bf16.msrb.mxu1 %v2883_v55 }
 0x5eb   :  { %3719 = vrot.lane.b32.xlu1 %v6213_v19, %s5068_s20  ;;  %4810 = vmatmul.msk.bf16.vlgmr.msrb.gmra.mxu0 %vm99_vm2, %v4809_v29 }
 0x5ec   :  { %2969 = vmatpush.bf16.msra.mxu1 %v2895_v30  ;;  %3723 = vrot.lane.b32.xlu2 %v6217_v7, %s5068_s20 }
 0x5ed   :  { %4811 = vmatmul.msk.bf16.vlgmr.msrb.gmra.mxu1 %vm99_vm2, %v4809_v29  ;;  %3721 = vrot.lane.b32.xlu0 %v6215_v14, %s5068_s20  ;;  %v2866_v59 = vpop.permute.xlu1 %2865 }
 0x5ee   :  { %v2873_v37 = vsel %vm7122_vm6, %v2864_v10, %v2866_v59  ;;  %v2639_v4 = vpop.f32.mrf.mxu0  ;;  %v2652_v47 = vpop.f32.mrf.mxu1  ;;  %vm7130_vm6 = vcmask 990208  }
 0x5ef   :  { %v2886_v42 = vsel %vm103_vm1, %v2873_v37, 0  ;;  %v6364_v34 = vadd.f32 %v2639_v4, %v6251_v50  ;;  %v6367_v12 = vadd.f32 %v2652_v47, %v6257_v1  ;;  %v2868_v3 = vpop.permute.xlu0 %2867  ;;  %v3098_v1 = vpop.permute.xlu2 %3097 }
 0x5f0   :  { %v2874_v38 = vsel %vm7123_vm7, %v2866_v59, %v2868_v3  ;;  %v2875_v49 = vsel %vm7124_vm3, %v2868_v3, %v2870_v9  ;;  %2930 = vmatpush.bf16.msrb.mxu2 %v2886_v42  ;;  %vm7131_vm7 = vmmov %vm7130_vm6 }
 0x5f1   :  { %v2889_v21 = vsel %vm103_vm1, %v2874_v38, 0  ;;  %v2892_v61 = vsel %vm103_vm1, %v2875_v49, 0  ;;  %vm7132_vm3 = vmmov %vm7130_vm6 }
 0x5f2   :  { %2943 = vmatpush.bf16.msrb.mxu3 %v2889_v21  ;;  %2956 = vmatpush.bf16.msra.mxu0 %v2892_v61 }
 0x5f3   :  { %3837 = vrot.lane.b32.xlu1 %v6195_v58, %s5069_s23  ;;  %4812 = vmatmul.msk.bf16.vlgmr.msrb.gmra.mxu2 %vm99_vm2, %v4809_v29 }
 0x5f4   :  { %3841 = vrot.lane.b32.xlu2 %v6175_v44, %s5069_s23  ;;  %v3011_v44 = vsel %vm103_vm1, %v2986_v20, 0 }
 0x5f5   :  { %3839 = vrot.lane.b32.xlu0 %v6197_v52, %s5069_s23  ;;  %4813 = vmatmul.msk.bf16.vlgmr.msrb.gmra.mxu3 %vm99_vm2, %v4809_v29  ;;  %v2976_v63 = vpop.permute.xlu1 %2975 }
 0x5f6   :  { %v2641_v11 = vpop.f32.mrf.mxu0  ;;  %v2654_v32 = vpop.f32.mrf.mxu1 }
 0x5f7   :  { %v2978_v62 = vpop.permute.xlu0 %2977  ;;  %v3104_v9 = vpop.permute.xlu2 %3103 }
 0x5f8   :  { %v2987_v5 = vsel %vm7125_vm8, %v2976_v63, %v2978_v62  ;;  %v2988_v54 = vsel %vm7126_vm0, %v2978_v62, %v2980_v6  ;;  %v3129_v13 = vsel %vm103_vm1, %v3104_v9, 0  ;;  %vm7133_vm8 = vmmov %vm7132_vm3 }
 0x5f9   :  { %v2996_v58 = vsel %vm103_vm1, %v2987_v5, 0  ;;  %v2999_v41 = vsel %vm103_vm1, %v2988_v54, 0  ;;  %vm7134_vm0 = vmmov %vm7132_vm3 }
 0x5fa   :  { %3020 = vmatpush.bf16.msra.mxu2 %v2996_v58  ;;  %3033 = vmatpush.bf16.msra.mxu3 %v2999_v41 }
 0x5fb   :  { %3843 = vrot.lane.b32.xlu1 %v6213_v19, %s5069_s23  ;;  %4814 = vmatmul.msk.bf16.vlgmr.msra.gmra.mxu0 %vm99_vm2, %v4809_v29 }
 0x5fc   :  { %v2665_v52 = vpop.f32.mrf.mxu2  ;;  %v2678_v31 = vpop.f32.mrf.mxu3  ;;  %3847 = vrot.lane.b32.xlu2 %v6217_v7, %s5069_s23 }
 0x5fd   :  { %4815 = vmatmul.msk.bf16.vlgmr.msra.gmra.mxu1 %vm99_vm2, %v4809_v29  ;;  %v2710_v33 = vadd.f32 %v2665_v52, %v6261_v46  ;;  %3845 = vrot.lane.b32.xlu0 %v6215_v14, %s5069_s23  ;;  %v2711_v8 = vadd.f32 %v2678_v31, %v6263_v26  ;;  %v2982_v50 = vpop.permute.xlu1 %2981  ;;  %v2841_v26 = vld [vmem:[%s7014_s3] sm:$0xf] }
 0x5fe   :  { %3085 = vmatpush.bf16.msrb.mxu3 %v3011_v44  ;;  %v2989_v39 = vsel %vm7127_vm9, %v2980_v6, %v2982_v50  ;;  %v2691_v18 = vpop.f32.mrf.mxu0  ;;  %vm7135_vm9 = vcmask 859136   ;;  %v4822_v44 = vld [vmem:[%s7014_s3 + $0x8] sm:$0xf] }
 0x5ff   :  { %v2704_v19 = vpop.f32.mrf.mxu1  ;;  %v3002_v25 = vsel %vm103_vm1, %v2989_v39, 0  ;;  %v6402_v46 = vadd.f32 %v2691_v18, %v6279_v36  ;;  %v2984_v7 = vpop.permute.xlu0 %2983 }
 0x600   :  { %v6399_v24 = vadd.f32 %v2704_v19, %v6281_v48  ;;  %v2990_v17 = vsel %vm7128_vm4, %v2982_v50, %v2984_v7  ;;  %v2991_v14 = vsel %vm7129_vm5, %v2984_v7, %v2986_v20  ;;  %3046 = vmatpush.bf16.msrb.mxu0 %v3002_v25  ;;  %v3222_v21 = vpop.permute.xlu2 %3221  ;;  %vm7136_vm4 = vmmov %vm7135_vm9 }
 0x601   :  { %v3005_v51 = vsel %vm103_vm1, %v2990_v17, 0  ;;  %v3008_v16 = vsel %vm103_vm1, %v2991_v14, 0  ;;  %vm7137_vm5 = vmmov %vm7136_vm4 }
 0x602   :  { %3059 = vmatpush.bf16.msrb.mxu1 %v3005_v51  ;;  %3072 = vmatpush.bf16.msrb.mxu2 %v3008_v16 }
 0x603   :  { %4816 = vmatmul.msk.bf16.vlgmr.msra.gmra.mxu2 %vm99_vm2, %v2841_v26 }
 0x604   :  { %v2667_v27 = vpop.f32.mrf.mxu2  ;;  %v2680_v23 = vpop.f32.mrf.mxu3 }
 0x605   :  { %4817 = vmatmul.msk.bf16.vlgmr.msra.gmra.mxu3 %vm99_vm2, %v2841_v26  ;;  %v3094_v36 = vpop.permute.xlu1 %3093 }
 0x606   :  { %v2693_v48 = vpop.f32.mrf.mxu0 }
 0x607   :  { %v2706_v22 = vpop.f32.mrf.mxu1  ;;  %v3096_v43 = vpop.permute.xlu0 %3095 }
 0x608   :  { %v3105_v56 = vsel %vm7130_vm6, %v3094_v36, %v3096_v43  ;;  %v3106_v10 = vsel %vm7131_vm7, %v3096_v43, %v3098_v1  ;;  %v3228_v39 = vpop.permute.xlu2 %3227  ;;  %vm7138_vm6 = vmmov %vm7136_vm4 }
 0x609   :  { %v3114_v28 = vsel %vm103_vm1, %v3105_v56, 0  ;;  %v3117_v45 = vsel %vm103_vm1, %v3106_v10, 0  ;;  %vm7139_vm7 = vmmov %vm7136_vm4 }
 0x60a   :  { %3138 = vmatpush.bf16.msra.mxu0 %v3114_v28  ;;  %3151 = vmatpush.bf16.msra.mxu1 %v3117_v45 }
 0x60b   :  { %4818 = vmatmul.msk.bf16.vlgmr.msrb.gmra.mxu0 %vm99_vm2, %v2841_v26 }
 0x60c   :  { %v2763_v15 = vpop.f32.mrf.mxu2  ;;  %v2776_v35 = vpop.f32.mrf.mxu3 }
 0x60d   :  { %4819 = vmatmul.msk.bf16.vlgmr.msrb.gmra.mxu1 %vm99_vm2, %v2841_v26  ;;  %v6421_v55 = vadd.f32 %v2763_v15, %v6364_v34  ;;  %v6424_v30 = vadd.f32 %v2776_v35, %v6367_v12  ;;  %v3100_v29 = vpop.permute.xlu1 %3099 }
 0x60e   :  { %3203 = vmatpush.bf16.msrb.mxu1 %v3129_v13  ;;  %v3107_v6 = vsel %vm7132_vm3, %v3098_v1, %v3100_v29  ;;  %v2789_v59 = vpop.f32.mrf.mxu0  ;;  %vm7140_vm3 = vcmask 850944  }
 0x60f   :  { %v2802_v37 = vpop.f32.mrf.mxu1  ;;  %v3120_v4 = vsel %vm103_vm1, %v3107_v6, 0  ;;  %v6428_v47 = vadd.f32 %v2789_v59, %v2710_v33  ;;  %v3102_v42 = vpop.permute.xlu0 %3101 }
 0x610   :  { %v6430_v3 = vadd.f32 %v2802_v37, %v2711_v8  ;;  %v3108_v38 = vsel %vm7133_vm8, %v3100_v29, %v3102_v42  ;;  %v3109_v34 = vsel %vm7134_vm0, %v3102_v42, %v3104_v9  ;;  %3164 = vmatpush.bf16.msra.mxu2 %v3120_v4  ;;  %v3346_v27 = vpop.permute.xlu2 %3345  ;;  %vm7141_vm8 = vmmov %vm7140_vm3  ;;  %v4829_v9 = vld [vmem:[%s7014_s3 + $0xc] sm:$0xf] }
 0x611   :  { %v3123_v12 = vsel %vm103_vm1, %v3108_v38, 0  ;;  %v3126_v49 = vsel %vm103_vm1, %v3109_v34, 0  ;;  %vm7142_vm0 = vmmov %vm7140_vm3 }
 0x612   :  { %3177 = vmatpush.bf16.msra.mxu3 %v3123_v12  ;;  %3190 = vmatpush.bf16.msrb.mxu0 %v3126_v49 }
 0x613   :  { %4820 = vmatmul.msk.bf16.vlgmr.msrb.gmra.mxu2 %vm99_vm2, %v2841_v26 }
 0x614   :  { %v2765_v61 = vpop.f32.mrf.mxu2  ;;  %v2778_v20 = vpop.f32.mrf.mxu3 }
 0x615   :  { %4821 = vmatmul.msk.bf16.vlgmr.msrb.gmra.mxu3 %vm99_vm2, %v2841_v26  ;;  %v3218_v63 = vpop.permute.xlu1 %3217  ;;  %v3253_v26 = vsel %vm103_vm1, %v3228_v39, 0 }
 0x616   :  { %v2791_v11 = vpop.f32.mrf.mxu0 }
 0x617   :  { %v2804_v32 = vpop.f32.mrf.mxu1  ;;  %v3220_v62 = vpop.permute.xlu0 %3219 }
 0x618   :  { %v3229_v5 = vsel %vm7135_vm9, %v3218_v63, %v3220_v62  ;;  %v3230_v54 = vsel %vm7136_vm4, %v3220_v62, %v3222_v21  ;;  %vm7143_vm9 = vmmov %vm7142_vm0  ;;  %v3352_v15 = vpop.permute.xlu2 %3351  ;;  %v4836_v63 = vld [vmem:[%s7014_s3 + $0x10] sm:$0xf] }
 0x619   :  { %v3238_v58 = vsel %vm103_vm1, %v3229_v5, 0  ;;  %v3241_v41 = vsel %vm103_vm1, %v3230_v54, 0  ;;  %vm7144_vm4 = vmmov %vm7142_vm0  ;;  %v3377_v29 = vsel %vm103_vm1, %v3352_v15, 0 }
 0x61a   :  { %3262 = vmatpush.bf16.msrb.mxu2 %v3238_v58  ;;  %3275 = vmatpush.bf16.msrb.mxu3 %v3241_v41 }
 0x61b   :  { %4823 = vmatmul.msk.bf16.vlgmr.msra.gmra.mxu0 %vm99_vm2, %v4822_v44 }
 0x61c   :  { %v2815_v52 = vpop.f32.mrf.mxu2  ;;  %v2828_v31 = vpop.f32.mrf.mxu3 }
 0x61d   :  { %4824 = vmatmul.msk.bf16.vlgmr.msra.gmra.mxu1 %vm99_vm2, %v4822_v44  ;;  %v6448_v33 = vadd.f32 %v2815_v52, %v6402_v46  ;;  %v6451_v8 = vadd.f32 %v2828_v31, %v6399_v24  ;;  %v3224_v50 = vpop.permute.xlu1 %3223 }
 0x61e   :  { %v3231_v19 = vsel %vm7137_vm5, %v3222_v21, %v3224_v50  ;;  %vm7145_vm5 = vcmask 842752  }
 0x61f   :  { %v3226_v18 = vpop.permute.xlu0 %3225  ;;  %v3244_v1 = vsel %vm103_vm1, %v3231_v19, 0 }
 0x620   :  { %v3232_v25 = vsel %vm7138_vm6, %v3224_v50, %v3226_v18  ;;  %v3233_v7 = vsel %vm7139_vm7, %v3226_v18, %v3228_v39  ;;  %3288 = vmatpush.bf16.msra.mxu0 %v3244_v1  ;;  %v3470_v42 = vpop.permute.xlu2 %3469  ;;  %vm7146_vm6 = vmmov %vm7145_vm5 }
 0x621   :  { %v3247_v17 = vsel %vm103_vm1, %v3232_v25, 0  ;;  %v3250_v46 = vsel %vm103_vm1, %v3233_v7, 0  ;;  %vm7147_vm7 = vmmov %vm7145_vm5  ;;  %v4843_v7 = vld [vmem:[%s7014_s3 + $0x14] sm:$0xf] }
 0x622   :  { %3301 = vmatpush.bf16.msra.mxu1 %v3247_v17 }
 0x623   :  { %4825 = vmatmul.msk.bf16.vlgmr.msra.gmra.mxu2 %vm99_vm2, %v4822_v44 }
 0x624   :  { %v2817_v24 = vpop.f32.mrf.mxu2  ;;  %v2830_v14 = vpop.f32.mrf.mxu3  ;;  %3314 = vmatpush.bf16.msra.mxu2 %v3250_v46 }
 0x625   :  { %4826 = vmatmul.msk.bf16.vlgmr.msra.gmra.mxu3 %vm99_vm2, %v4822_v44  ;;  %v3342_v51 = vpop.permute.xlu1 %3341 }
 0x626   :  { %3327 = vmatpush.bf16.msra.mxu3 %v3253_v26 }
 0x627   :  { %v3344_v16 = vpop.permute.xlu0 %3343 }
 0x628   :  { %v3353_v23 = vsel %vm7140_vm3, %v3342_v51, %v3344_v16  ;;  %v3354_v36 = vsel %vm7141_vm8, %v3344_v16, %v3346_v27  ;;  %vm7148_vm3 = vmmov %vm7145_vm5  ;;  %v3476_v62 = vpop.permute.xlu2 %3475 }
 0x629   :  { %v3362_v22 = vsel %vm103_vm1, %v3353_v23, 0  ;;  %v3365_v48 = vsel %vm103_vm1, %v3354_v36, 0  ;;  %vm7149_vm8 = vmmov %vm7148_vm3  ;;  %v3501_v41 = vsel %vm103_vm1, %v3476_v62, 0 }
 0x62b   :  { %4827 = vmatmul.msk.bf16.vlgmr.msrb.gmra.mxu0 %vm99_vm2, %v4822_v44 }
 0x62c   :  { %3386 = vmatpush.bf16.msrb.mxu0 %v3362_v22 }
 0x62d   :  { %4828 = vmatmul.msk.bf16.vlgmr.msrb.gmra.mxu1 %vm99_vm2, %v4822_v44  ;;  %v3348_v43 = vpop.permute.xlu1 %3347 }
 0x62e   :  { %3399 = vmatpush.bf16.msrb.mxu1 %v3365_v48  ;;  %v3355_v10 = vsel %vm7142_vm0, %v3346_v27, %v3348_v43  ;;  %vm7150_vm0 = vcmask 711680  }
 0x62f   :  { %v3350_v56 = vpop.permute.xlu0 %3349  ;;  %v3368_v45 = vsel %vm103_vm1, %v3355_v10, 0 }
 0x630   :  { %v3356_v28 = vsel %vm7143_vm9, %v3348_v43, %v3350_v56  ;;  %v3357_v35 = vsel %vm7144_vm4, %v3350_v56, %v3352_v15  ;;  %v3594_v52 = vpop.permute.xlu2 %3593  ;;  %vm7151_vm9 = vmmov %vm7150_vm0 }
 0x631   :  { %v3371_v13 = vsel %vm103_vm1, %v3356_v28, 0  ;;  %v3374_v6 = vsel %vm103_vm1, %v3357_v35, 0  ;;  %vm7152_vm4 = vmmov %vm7150_vm0 }
 0x633   :  { %4830 = vmatmul.msk.bf16.vlgmr.msrb.gmra.mxu2 %vm99_vm2, %v4829_v9 }
 0x634   :  { %3412 = vmatpush.bf16.msrb.mxu2 %v3368_v45 }
 0x635   :  { %4831 = vmatmul.msk.bf16.vlgmr.msrb.gmra.mxu3 %vm99_vm2, %v4829_v9  ;;  %v3466_v59 = vpop.permute.xlu1 %3465 }
 0x636   :  { %3425 = vmatpush.bf16.msrb.mxu3 %v3371_v13 }
 0x637   :  { %v3468_v37 = vpop.permute.xlu0 %3467 }
 0x638   :  { %v3477_v4 = vsel %vm7145_vm5, %v3466_v59, %v3468_v37  ;;  %v3478_v38 = vsel %vm7146_vm6, %v3468_v37, %v3470_v42  ;;  %vm7153_vm5 = vmmov %vm7150_vm0  ;;  %v3600_v14 = vpop.permute.xlu2 %3599 }
 0x639   :  { %v3486_v34 = vsel %vm103_vm1, %v3477_v4, 0  ;;  %v3489_v12 = vsel %vm103_vm1, %v3478_v38, 0  ;;  %vm7154_vm6 = vmmov %vm7150_vm0  ;;  %v3625_v23 = vsel %vm103_vm1, %v3600_v14, 0 }
 0x63b   :  { %4832 = vmatmul.msk.bf16.vlgmr.msra.gmra.mxu0 %vm99_vm2, %v4829_v9 }
 0x63c   :  { %3438 = vmatpush.bf16.msra.mxu0 %v3374_v6 }
 0x63d   :  { %4833 = vmatmul.msk.bf16.vlgmr.msra.gmra.mxu1 %vm99_vm2, %v4829_v9  ;;  %v3472_v49 = vpop.permute.xlu1 %3471 }
 0x63e   :  { %3451 = vmatpush.bf16.msra.mxu1 %v3377_v29  ;;  %v3479_v61 = vsel %vm7147_vm7, %v3470_v42, %v3472_v49  ;;  %vm7155_vm7 = vcmask 703488   ;;  %v4850_v42 = vld [vmem:[%s7014_s3 + $0x18] sm:$0xf] }
 0x63f   :  { %v3474_v21 = vpop.permute.xlu0 %3473  ;;  %v3492_v11 = vsel %vm103_vm1, %v3479_v61, 0 }
 0x640   :  { %v3480_v20 = vsel %vm7148_vm3, %v3472_v49, %v3474_v21  ;;  %v3481_v5 = vsel %vm7149_vm8, %v3474_v21, %v3476_v62  ;;  %v3718_v56 = vpop.permute.xlu2 %3717  ;;  %vm7156_vm3 = vmmov %vm7155_vm7 }
 0x641   :  { %v3495_v32 = vsel %vm103_vm1, %v3480_v20, 0  ;;  %v3498_v54 = vsel %vm103_vm1, %v3481_v5, 0  ;;  %vm7157_vm8 = vmmov %vm7156_vm3 }
 0x643   :  { %4834 = vmatmul.msk.bf16.vlgmr.msra.gmra.mxu2 %vm99_vm2, %v4829_v9 }
 0x644   :  { %3510 = vmatpush.bf16.msra.mxu2 %v3486_v34 }
 0x645   :  { %4835 = vmatmul.msk.bf16.vlgmr.msra.gmra.mxu3 %vm99_vm2, %v4829_v9  ;;  %v3590_v58 = vpop.permute.xlu1 %3589 }
 0x646   :  { %3523 = vmatpush.bf16.msra.mxu3 %v3489_v12 }
 0x647   :  { %v3592_v44 = vpop.permute.xlu0 %3591 }
 0x648   :  { %v3601_v31 = vsel %vm7150_vm0, %v3590_v58, %v3592_v44  ;;  %v3602_v50 = vsel %vm7151_vm9, %v3592_v44, %v3594_v52  ;;  %vm7158_vm0 = vmmov %vm7156_vm3  ;;  %v3724_v12 = vpop.permute.xlu2 %3723 }
 0x649   :  { %v3610_v39 = vsel %vm103_vm1, %v3601_v31, 0  ;;  %v3613_v19 = vsel %vm103_vm1, %v3602_v50, 0  ;;  %vm7159_vm9 = vmmov %vm7158_vm0  ;;  %v3749_v62 = vsel %vm103_vm1, %v3724_v12, 0 }
 0x64b   :  { %4837 = vmatmul.msk.bf16.vlgmr.msrb.gmra.mxu0 %vm99_vm2, %v4836_v63 }
 0x64c   :  { %3536 = vmatpush.bf16.msrb.mxu0 %v3492_v11 }
 0x64d   :  { %4838 = vmatmul.msk.bf16.vlgmr.msrb.gmra.mxu1 %vm99_vm2, %v4836_v63  ;;  %v3596_v18 = vpop.permute.xlu1 %3595 }
 0x64e   :  { %3549 = vmatpush.bf16.msrb.mxu1 %v3495_v32  ;;  %v3603_v25 = vsel %vm7152_vm4, %v3594_v52, %v3596_v18  ;;  %vm7160_vm4 = vcmask 695296  }
 0x64f   :  { %v3598_v1 = vpop.permute.xlu0 %3597  ;;  %v3616_v46 = vsel %vm103_vm1, %v3603_v25, 0 }
 0x650   :  { %v3604_v17 = vsel %vm7153_vm5, %v3596_v18, %v3598_v1  ;;  %v3605_v51 = vsel %vm7154_vm6, %v3598_v1, %v3600_v14  ;;  %vm7161_vm5 = vmmov %vm7160_vm4 }
 0x651   :  { %v3619_v24 = vsel %vm103_vm1, %v3604_v17, 0  ;;  %v3622_v36 = vsel %vm103_vm1, %v3605_v51, 0  ;;  %vm7162_vm6 = vmmov %vm7160_vm4  ;;  %v4857_v51 = vld [vmem:[%s7014_s3 + $0x1c] sm:$0xf] }
 0x653   :  { %4839 = vmatmul.msk.bf16.vlgmr.msrb.gmra.mxu2 %vm99_vm2, %v4836_v63 }
 0x654   :  { %3562 = vmatpush.bf16.msrb.mxu2 %v3498_v54 }
 0x655   :  { %4840 = vmatmul.msk.bf16.vlgmr.msrb.gmra.mxu3 %vm99_vm2, %v4836_v63  ;;  %v3714_v27 = vpop.permute.xlu1 %3713 }
 0x656   :  { %3575 = vmatpush.bf16.msrb.mxu3 %v3501_v41  ;;  %v3842_v41 = vpop.permute.xlu2 %3841 }
 0x657   :  { %v3716_v22 = vpop.permute.xlu0 %3715 }
 0x658   :  { %v3725_v48 = vsel %vm7155_vm7, %v3714_v27, %v3716_v22  ;;  %v3726_v9 = vsel %vm7156_vm3, %v3716_v22, %v3718_v56  ;;  %vm7163_vm7 = vmmov %vm7160_vm4 }
 0x659   :  { %v3734_v28 = vsel %vm103_vm1, %v3725_v48, 0  ;;  %v3737_v45 = vsel %vm103_vm1, %v3726_v9, 0  ;;  %vm7164_vm3 = vmmov %vm7160_vm4 }
 0x65b   :  { %4841 = vmatmul.msk.bf16.vlgmr.msra.gmra.mxu0 %vm99_vm2, %v4836_v63 }
 0x65c   :  { %3634 = vmatpush.bf16.msra.mxu0 %v3610_v39 }
 0x65d   :  { %4842 = vmatmul.msk.bf16.vlgmr.msra.gmra.mxu1 %vm99_vm2, %v4836_v63  ;;  %v3720_v13 = vpop.permute.xlu1 %3719 }
 0x65e   :  { %3647 = vmatpush.bf16.msra.mxu1 %v3613_v19  ;;  %v3727_v6 = vsel %vm7157_vm8, %v3718_v56, %v3720_v13  ;;  %v3848_v56 = vpop.permute.xlu2 %3847 }
 0x65f   :  { %v3722_v15 = vpop.permute.xlu0 %3721  ;;  %v3740_v38 = vsel %vm103_vm1, %v3727_v6, 0 }
 0x660   :  { %v3728_v59 = vsel %vm7158_vm0, %v3720_v13, %v3722_v15  ;;  %v3729_v21 = vsel %vm7159_vm9, %v3722_v15, %v3724_v12 }
 0x661   :  { %v3743_v34 = vsel %vm103_vm1, %v3728_v59, 0  ;;  %v3746_v11 = vsel %vm103_vm1, %v3729_v21, 0 }
 0x663   :  { %4844 = vmatmul.msk.bf16.vlgmr.msra.gmra.mxu2 %vm99_vm2, %v4843_v7 }
 0x664   :  { %3660 = vmatpush.bf16.msra.mxu2 %v3616_v46 }
 0x665   :  { %4845 = vmatmul.msk.bf16.vlgmr.msra.gmra.mxu3 %vm99_vm2, %v4843_v7  ;;  %v3838_v32 = vpop.permute.xlu1 %3837 }
 0x666   :  { %3673 = vmatpush.bf16.msra.mxu3 %v3619_v24 }
 0x667   :  { %v3840_v5 = vpop.permute.xlu0 %3839 }
 0x668   :  { %v2906_v26 = vpop.f32.mrf.mxu0  ;;  %v3849_v52 = vsel %vm7160_vm4, %v3838_v32, %v3840_v5  ;;  %v3850_v31 = vsel %vm7161_vm5, %v3840_v5, %v3842_v41 }
 0x669   :  { %v3858_v25 = vsel %vm103_vm1, %v3849_v52, 0 }
 0x66a   :  { %v2919_v16 = vpop.f32.mrf.mxu1 }
 0x66b   :  { %4846 = vmatmul.msk.bf16.vlgmr.msrb.gmra.mxu0 %vm99_vm2, %v4843_v7 }
 0x66c   :  { %3686 = vmatpush.bf16.msrb.mxu0 %v3622_v36 }
 0x66d   :  { %4847 = vmatmul.msk.bf16.vlgmr.msrb.gmra.mxu1 %vm99_vm2, %v4843_v7  ;;  %v3844_v17 = vpop.permute.xlu1 %3843 }
 0x66e   :  { %3699 = vmatpush.bf16.msrb.mxu1 %v3625_v23  ;;  %v3851_v14 = vsel %vm7162_vm6, %v3842_v41, %v3844_v17 }
 0x66f   :  { %v3846_v24 = vpop.permute.xlu0 %3845  ;;  %v3864_v36 = vsel %vm103_vm1, %v3851_v14, 0 }
 0x670   :  { %v2908_v43 = vpop.f32.mrf.mxu0  ;;  %v3852_v23 = vsel %vm7163_vm7, %v3844_v17, %v3846_v24  ;;  %v3853_v9 = vsel %vm7164_vm3, %v3846_v24, %v3848_v56 }
 0x671   :  { %v3867_v22 = vsel %vm103_vm1, %v3852_v23, 0  ;;  %v3870_v6 = vsel %vm103_vm1, %v3853_v9, 0 }
 0x672   :  { %v2921_v10 = vpop.f32.mrf.mxu1 }
 0x673   :  { %4848 = vmatmul.msk.bf16.vlgmr.msrb.gmra.mxu2 %vm99_vm2, %v4843_v7 }
 0x674   :  { %3758 = vmatpush.bf16.msrb.mxu2 %v3734_v28 }
 0x675   :  { %4849 = vmatmul.msk.bf16.vlgmr.msrb.gmra.mxu3 %vm99_vm2, %v4843_v7  ;;  %v3861_v7 = vsel %vm103_vm1, %v3850_v31, 0 }
 0x676   :  { %3771 = vmatpush.bf16.msrb.mxu3 %v3737_v45  ;;  %v2932_v35 = vpop.f32.mrf.mxu2 }
 0x678   :  { %v2945_v29 = vpop.f32.mrf.mxu3  ;;  %v2958_v37 = vpop.f32.mrf.mxu0 }
 0x67a   :  { %v2971_v4 = vpop.f32.mrf.mxu1 }
 0x67b   :  { %4851 = vmatmul.msk.bf16.vlgmr.msra.gmra.mxu0 %vm99_vm2, %v4850_v42 }
 0x67c   :  { %3784 = vmatpush.bf16.msra.mxu0 %v3740_v38 }
 0x67d   :  { %4852 = vmatmul.msk.bf16.vlgmr.msra.gmra.mxu1 %vm99_vm2, %v4850_v42 }
 0x67e   :  { %3797 = vmatpush.bf16.msra.mxu1 %v3743_v34  ;;  %v2934_v49 = vpop.f32.mrf.mxu2 }
 0x680   :  { %v2947_v61 = vpop.f32.mrf.mxu3  ;;  %v2960_v20 = vpop.f32.mrf.mxu0 }
 0x681   :  { %v4864_v20 = vld [vmem:[%s7014_s3 + $0x20] sm:$0xf] }
 0x682   :  { %v2973_v63 = vpop.f32.mrf.mxu1 }
 0x683   :  { %4853 = vmatmul.msk.bf16.vlgmr.msra.gmra.mxu2 %vm99_vm2, %v4850_v42 }
 0x684   :  { %3810 = vmatpush.bf16.msra.mxu2 %v3746_v11 }
 0x685   :  { %4854 = vmatmul.msk.bf16.vlgmr.msra.gmra.mxu3 %vm99_vm2, %v4850_v42 }
 0x686   :  { %3823 = vmatpush.bf16.msra.mxu3 %v3749_v62  ;;  %v3022_v54 = vpop.f32.mrf.mxu2 }
 0x687   :  { %v3023_v58 = vadd.f32 %v3022_v54, %v2906_v26 }
 0x688   :  { %v3035_v44 = vpop.f32.mrf.mxu3  ;;  %v3048_v39 = vpop.f32.mrf.mxu0 }
 0x689   :  { %v3036_v50 = vadd.f32 %v3035_v44, %v2919_v16  ;;  %v3049_v18 = vadd.f32 %v3048_v39, %v2932_v35 }
 0x68a   :  { %v3061_v19 = vpop.f32.mrf.mxu1 }
 0x68b   :  { %v3062_v1 = vadd.f32 %v3061_v19, %v2945_v29  ;;  %4855 = vmatmul.msk.bf16.vlgmr.msrb.gmra.mxu0 %vm99_vm2, %v4850_v42  ;;  %v3873_v29 = vsel %vm103_vm1, %v3848_v56, 0 }
 0x68c   :  { %3882 = vmatpush.bf16.msrb.mxu0 %v3858_v25 }
 0x68d   :  { %4856 = vmatmul.msk.bf16.vlgmr.msrb.gmra.mxu1 %vm99_vm2, %v4850_v42 }
 0x68e   :  { %3895 = vmatpush.bf16.msrb.mxu1 %v3861_v7  ;;  %v3024_v46 = vpop.f32.mrf.mxu2 }
 0x690   :  { %v3037_v26 = vpop.f32.mrf.mxu3  ;;  %v3050_v16 = vpop.f32.mrf.mxu0 }
 0x692   :  { %v3063_v27 = vpop.f32.mrf.mxu1 }
 0x693   :  { %4858 = vmatmul.msk.bf16.vlgmr.msrb.gmra.mxu2 %vm99_vm2, %v4857_v51 }
 0x694   :  { %3908 = vmatpush.bf16.msrb.mxu2 %v3864_v36 }
 0x695   :  { %4859 = vmatmul.msk.bf16.vlgmr.msrb.gmra.mxu3 %vm99_vm2, %v4857_v51 }
 0x696   :  { %3921 = vmatpush.bf16.msrb.mxu3 %v3867_v22  ;;  %v3074_v48 = vpop.f32.mrf.mxu2 }
 0x697   :  { %v3075_v43 = vadd.f32 %v3074_v48, %v2958_v37 }
 0x698   :  { %v3087_v10 = vpop.f32.mrf.mxu3  ;;  %v3140_v45 = vpop.f32.mrf.mxu0 }
 0x699   :  { %v3088_v28 = vadd.f32 %v3087_v10, %v2971_v4  ;;  %v3209_v15 = vadd.f32 %v3140_v45, %v3023_v58 }
 0x69a   :  { %v3153_v13 = vpop.f32.mrf.mxu1 }
 0x69b   :  { %v3210_v35 = vadd.f32 %v3153_v13, %v3036_v50  ;;  %4860 = vmatmul.msk.bf16.vlgmr.msra.gmra.mxu0 %vm99_vm2, %v4857_v51 }
 0x69c   :  { %3934 = vmatpush.bf16.msra.mxu0 %v3870_v6 }
 0x69d   :  { %4861 = vmatmul.msk.bf16.vlgmr.msra.gmra.mxu1 %vm99_vm2, %v4857_v51 }
 0x69e   :  { %3947 = vmatpush.bf16.msra.mxu1 %v3873_v29  ;;  %v3076_v59 = vpop.f32.mrf.mxu2 }
 0x6a0   :  { %v3089_v37 = vpop.f32.mrf.mxu3  ;;  %v3142_v42 = vpop.f32.mrf.mxu0 }
 0x6a2   :  { %v3155_v38 = vpop.f32.mrf.mxu1 }
 0x6a3   :  { %4862 = vmatmul.msk.bf16.vlgmr.msra.gmra.mxu2 %vm99_vm2, %v4857_v51 }
 0x6a5   :  { %4863 = vmatmul.msk.bf16.vlgmr.msra.gmra.mxu3 %vm99_vm2, %v4857_v51 }
 0x6a6   :  { %v3166_v4 = vpop.f32.mrf.mxu2 }
 0x6a7   :  { %v3211_v34 = vadd.f32 %v3166_v4, %v3049_v18 }
 0x6a8   :  { %v3179_v12 = vpop.f32.mrf.mxu3  ;;  %v3192_v21 = vpop.f32.mrf.mxu0 }
 0x6a9   :  { %v3212_v49 = vadd.f32 %v3179_v12, %v3062_v1  ;;  %v3213_v63 = vadd.f32 %v3192_v21, %v3075_v43 }
 0x6aa   :  { %v3205_v61 = vpop.f32.mrf.mxu1 }
 0x6ab   :  { %v3214_v11 = vadd.f32 %v3205_v61, %v3088_v28  ;;  %4865 = vmatmul.msk.bf16.vlgmr.msrb.gmra.mxu0 %vm99_vm2, %v4864_v20 }
 0x6ad   :  { %4866 = vmatmul.msk.bf16.vlgmr.msrb.gmra.mxu1 %vm99_vm2, %v4864_v20 }
 0x6ae   :  { %v3168_v32 = vpop.f32.mrf.mxu2 }
 0x6b0   :  { %v3181_v62 = vpop.f32.mrf.mxu3  ;;  %v3194_v5 = vpop.f32.mrf.mxu0 }
 0x6b2   :  { %v3207_v54 = vpop.f32.mrf.mxu1 }
 0x6b3   :  { %4867 = vmatmul.msk.bf16.vlgmr.msrb.gmra.mxu2 %vm99_vm2, %v4864_v20 }
 0x6b5   :  { %4868 = vmatmul.msk.bf16.vlgmr.msrb.gmra.mxu3 %vm99_vm2, %v4864_v20 }
 0x6b6   :  { %v3264_v58 = vpop.f32.mrf.mxu2 }
 0x6b7   :  { %v3333_v41 = vadd.f32 %v3264_v58, %v3209_v15 }
 0x6b8   :  { %v3277_v44 = vpop.f32.mrf.mxu3  ;;  %v3290_v31 = vpop.f32.mrf.mxu0 }
 0x6b9   :  { %v3334_v52 = vadd.f32 %v3277_v44, %v3210_v35  ;;  %v3335_v39 = vadd.f32 %v3290_v31, %v3211_v34 }
 0x6ba   :  { %v3303_v50 = vpop.f32.mrf.mxu1 }
 0x6bb   :  { %v3336_v19 = vadd.f32 %v3303_v50, %v3212_v49  ;;  %4869 = vmatmul.msk.bf16.vlgmr.msra.gmra.mxu0 %vm99_vm2, %v4864_v20  ;;  %v3959_v50 = vmin.f32 %v6421_v55, 20.0 }
 0x6bd   :  { %4870 = vmatmul.msk.bf16.vlgmr.msra.gmra.mxu1 %vm99_vm2, %v4864_v20 }
 0x6be   :  { %v3266_v18 = vpop.f32.mrf.mxu2 }
 0x6bf   :  { %v3965_v18 = vmul.f32 1.442695, %v3959_v50 }
 0x6c0   :  { %v3279_v1 = vpop.f32.mrf.mxu3  ;;  %v3292_v25 = vpop.f32.mrf.mxu0 }
 0x6c1   :  { %4957 = vpow2.f32 %v3965_v18 }
 0x6c2   :  { %v3305_v7 = vpop.f32.mrf.mxu1 }
 0x6c6   :  { %v3316_v17 = vpop.f32.mrf.mxu2 }
 0x6c7   :  { %v3337_v46 = vadd.f32 %v3316_v17, %v3213_v63 }
 0x6c8   :  { %v3329_v24 = vpop.f32.mrf.mxu3  ;;  %v3388_v26 = vpop.f32.mrf.mxu0 }
 0x6c9   :  { %v3338_v14 = vadd.f32 %v3329_v24, %v3214_v11  ;;  %v3457_v16 = vadd.f32 %v3388_v26, %v3333_v41  ;;  %v3962_v24 = vmin.f32 %v6430_v3, 20.0 }
 0x6ca   :  { %v3401_v51 = vpop.f32.mrf.mxu1 }
 0x6cb   :  { %v3458_v27 = vadd.f32 %v3401_v51, %v3334_v52 }
 0x6ce   :  { %v3318_v23 = vpop.f32.mrf.mxu2 }
 0x6d0   :  { %v3331_v36 = vpop.f32.mrf.mxu3  ;;  %v3390_v22 = vpop.f32.mrf.mxu0 }
 0x6d1   :  { %v3971_v22 = vmul.f32 1.442695, %v3962_v24 }
 0x6d2   :  { %v3403_v48 = vpop.f32.mrf.mxu1 }
 0x6d6   :  { %v3414_v43 = vpop.f32.mrf.mxu2 }
 0x6d7   :  { %v3459_v56 = vadd.f32 %v3414_v43, %v3335_v39  ;;  %v3960_v39 = vmin.f32 %v6424_v30, 20.0 }
 0x6d8   :  { %v3427_v10 = vpop.f32.mrf.mxu3  ;;  %v3440_v28 = vpop.f32.mrf.mxu0 }
 0x6d9   :  { %v3460_v9 = vadd.f32 %v3427_v10, %v3336_v19  ;;  %v3461_v13 = vadd.f32 %v3440_v28, %v3337_v46  ;;  %v3967_v1 = vmul.f32 1.442695, %v3960_v39  ;;  %v3961_v46 = vmin.f32 %v6428_v47, 20.0 }
 0x6da   :  { %v3453_v45 = vpop.f32.mrf.mxu1  ;;  %v3964_v10 = vmin.f32 %v6451_v8, 20.0 }
 0x6db   :  { %v6573_v15 = vadd.f32 %v3453_v45, %v3338_v14  ;;  %4959 = vpow2.f32 %v3967_v1  ;;  %v3969_v26 = vmul.f32 1.442695, %v3961_v46 }
 0x6dd   :  { %4961 = vpow2.f32 %v3969_v26 }
 0x6de   :  { %v3416_v35 = vpop.f32.mrf.mxu2  ;;  %4963 = vpow2.f32 %v3971_v22 }
 0x6e0   :  { %v3429_v29 = vpop.f32.mrf.mxu3  ;;  %v3442_v6 = vpop.f32.mrf.mxu0 }
 0x6e2   :  { %v3455_v59 = vpop.f32.mrf.mxu1 }
 0x6e6   :  { %v3512_v37 = vpop.f32.mrf.mxu2 }
 0x6e7   :  { %v6575_v42 = vadd.f32 %v3512_v37, %v3457_v16  ;;  %v4958_v16 = vpop.eup %4957  ;;  %v3975_v37 = vmul.f32 1.442695, %v3964_v10 }
 0x6e8   :  { %v3525_v38 = vpop.f32.mrf.mxu3  ;;  %v3538_v34 = vpop.f32.mrf.mxu0  ;;  %v3977_v48 = vadd.f32 2.0, %v4958_v16 }
 0x6e9   :  { %v6577_v4 = vadd.f32 %v3525_v38, %v3458_v27  ;;  %v6579_v49 = vadd.f32 %v3538_v34, %v3459_v56  ;;  %v4960_v36 = vpop.eup %4959  ;;  %v3963_v56 = vmin.f32 %v6448_v33, 20.0 }
 0x6ea   :  { %v3551_v12 = vpop.f32.mrf.mxu1  ;;  %v3978_v43 = vadd.f32 2.0, %v4960_v36  ;;  %v3983_v28 = vmul.f32 %v4958_v16, %v3977_v48  ;;  %v4962_v59 = vpop.eup %4961 }
 0x6eb   :  { %v6581_v21 = vadd.f32 %v3551_v12, %v3460_v9  ;;  %v3973_v35 = vmul.f32 1.442695, %v3963_v56  ;;  %v4964_v38 = vpop.eup %4963 }
 0x6ec   :  { %v3995_v34 = vadd.f32 2.0, %v3983_v28 }
 0x6ed   :  { %4965 = vpow2.f32 %v3973_v35 }
 0x6ee   :  { %v3514_v61 = vpop.f32.mrf.mxu2  ;;  %4967 = vpow2.f32 %v3975_v37 }
 0x6ef   :  { %v3979_v61 = vadd.f32 2.0, %v4962_v59  ;;  %4969 = vrcp.f32 %v3995_v34 }
 0x6f0   :  { %v3527_v20 = vpop.f32.mrf.mxu3  ;;  %v3540_v63 = vpop.f32.mrf.mxu0 }
 0x6f1   :  { %v3980_v63 = vadd.f32 2.0, %v4964_v38 }
 0x6f2   :  { %v3553_v11 = vpop.f32.mrf.mxu1 }
 0x6f6   :  { %v3564_v32 = vpop.f32.mrf.mxu2 }
 0x6f7   :  { %v6583_v62 = vadd.f32 %v3564_v32, %v3461_v13  ;;  %v3984_v13 = vmul.f32 %v4960_v36, %v3978_v43  ;;  %v3985_v32 = vmul.f32 %v4962_v59, %v3979_v61 }
 0x6f8   :  { %v6585_v5 = vpop.f32.mrf.mxu3  ;;  %v3636_v54 = vpop.f32.mrf.mxu0 }
 0x6f9   :  { %v3996_v12 = vadd.f32 2.0, %v3984_v13  ;;  %v3997_v39 = vadd.f32 2.0, %v3985_v32  ;;  %v3705_v46 = vadd.f32 %v3636_v54, %v6575_v42 }
 0x6fa   :  { %v3649_v58 = vpop.f32.mrf.mxu1 }
 0x6fb   :  { %4971 = vrcp.f32 %v3996_v12  ;;  %v3706_v24 = vadd.f32 %v3649_v58, %v6577_v4 }
 0x6fc   :  { %4973 = vrcp.f32 %v3997_v39  ;;  %v3586_v39 = vadd.f32 %v6585_v5, %v6573_v15 }
 0x6fe   :  { %v3566_v41 = vpop.f32.mrf.mxu2 }
 0x700   :  { %v3579_v44 = vpop.f32.mrf.mxu3  ;;  %v3638_v52 = vpop.f32.mrf.mxu0 }
 0x701   :  { %v4966_v52 = vpop.eup %4965 }
 0x702   :  { %v3651_v31 = vpop.f32.mrf.mxu1  ;;  %v4968_v50 = vpop.eup %4967  ;;  %v3981_v1 = vadd.f32 2.0, %v4966_v52 }
 0x703   :  { %v3986_v31 = vmul.f32 %v4964_v38, %v3980_v63  ;;  %v4970_v18 = vpop.eup %4969 }
 0x704   :  { %v4972_v26 = vpop.eup %4971  ;;  %v3987_v35 = vmul.f32 %v4966_v52, %v3981_v1 }
 0x705   :  { %v3998_v16 = vadd.f32 2.0, %v3986_v31  ;;  %v4974_v12 = vpop.eup %4973  ;;  %v3992_v52 = vmul.f32 %v3986_v31, %v6430_v3 }
 0x706   :  { %v6589_v19 = vpop.f32.mrf.mxu2 }
 0x707   :  { %4975 = vrcp.f32 %v3998_v16 }
 0x708   :  { %v6591_v25 = vpop.f32.mrf.mxu3  ;;  %v6593_v7 = vpop.f32.mrf.mxu0 }
 0x70a   :  { %v6595_v17 = vpop.f32.mrf.mxu1 }
 0x70b   :  { %v3710_v31 = vadd.f32 %v6595_v17, %v3586_v39 }
 0x70d   :  { %v4976_v63 = vpop.eup %4975 }
 0x70e   :  { %v3664_v14 = vpop.f32.mrf.mxu2 }
 0x710   :  { %v3677_v51 = vpop.f32.mrf.mxu3  ;;  %v3690_v27 = vpop.f32.mrf.mxu0 }
 0x711   :  { %v3989_v51 = vmul.f32 %v3983_v28, %v6421_v55  ;;  %v3982_v27 = vadd.f32 2.0, %v4968_v50 }
 0x712   :  { %v3703_v23 = vpop.f32.mrf.mxu1 }
 0x713   :  { %v3990_v23 = vmul.f32 %v3984_v13, %v6424_v30  ;;  %v4007_v56 = vmul.f32 %v4970_v18, %v3989_v51  ;;  %v3988_v54 = vmul.f32 %v4968_v50, %v3982_v27  ;;  %v3999_v13 = vadd.f32 2.0, %v3987_v35 }
 0x714   :  { %v3707_v50 = vadd.f32 %v6589_v19, %v6579_v49  ;;  %v3708_v18 = vadd.f32 %v6591_v25, %v6581_v21  ;;  %v3993_v51 = vmul.f32 %v3987_v35, %v6448_v33 }
 0x715   :  { %v4008_v4 = vmul.f32 %v4972_v26, %v3990_v23  ;;  %v4000_v61 = vadd.f32 2.0, %v3988_v54 }
 0x716   :  { %v3760_v9 = vpop.f32.mrf.mxu2 }
 0x717   :  { %v3829_v36 = vadd.f32 %v3760_v9, %v3705_v46 }
 0x718   :  { %v3773_v45 = vpop.f32.mrf.mxu3  ;;  %v6601_v29 = vpop.f32.mrf.mxu0 }
 0x719   :  { %v3830_v22 = vadd.f32 %v3773_v45, %v3706_v24  ;;  %v3831_v1 = vadd.f32 %v6601_v29, %v3707_v50  ;;  %v4010_v24 = vmul.f32 %v4976_v63, %v3992_v52 }
 0x71a   :  { %v6603_v6 = vpop.f32.mrf.mxu1 }
 0x71b   :  { %v3832_v49 = vadd.f32 %v6603_v6, %v3708_v18 }
 0x71e   :  { %v3762_v20 = vpop.f32.mrf.mxu2 }
 0x720   :  { %v3775_v11 = vpop.f32.mrf.mxu3  ;;  %v3788_v41 = vpop.f32.mrf.mxu0 }
 0x722   :  { %v3801_v44 = vpop.f32.mrf.mxu1 }
 0x723   :  { %v3991_v44 = vmul.f32 %v3985_v32, %v6428_v47  ;;  %v3709_v32 = vadd.f32 %v6593_v7, %v6583_v62  ;;  %v3994_v62 = vmul.f32 %v3988_v54, %v6451_v8 }
 0x725   :  { %v4009_v46 = vmul.f32 %v4974_v12, %v3991_v44 }
 0x726   :  { %v3812_v14 = vpop.f32.mrf.mxu2 }
 0x727   :  { %v3833_v7 = vadd.f32 %v3812_v14, %v3709_v32 }
 0x728   :  { %v3825_v48 = vpop.f32.mrf.mxu3  ;;  %v3884_v43 = vpop.f32.mrf.mxu0 }
 0x729   :  { %v6609_v59 = vadd.f32 %v3884_v43, %v3829_v36  ;;  %v3834_v17 = vadd.f32 %v3825_v48, %v3710_v31 }
 0x72a   :  { %v3897_v10 = vpop.f32.mrf.mxu1 }
 0x72b   :  { %v6611_v42 = vadd.f32 %v3897_v10, %v3830_v22  ;;  %v4013_v58 = vmin.f32 %v6609_v59, 20.0  ;;  %v6615_v28 = vadd.f32 %v4007_v56, %v6609_v59 }
 0x72d   :  { %v4014_v9 = vmin.f32 %v6611_v42, 20.0  ;;  %v6619_v45 = vadd.f32 %v4008_v4, %v6611_v42  ;;  %v4019_v37 = vmul.f32 1.442695, %v4013_v58  ;;  %v4164_v21 = vsel %vm5590_vm12, %v6615_v28, 0.0 }
 0x72e   :  { %v3814_v34 = vpop.f32.mrf.mxu2 }
 0x72f   :  { %v4021_v38 = vmul.f32 1.442695, %v4014_v9  ;;  %4977 = vpow2.f32 %v4019_v37  ;;  %v4165_v5 = vsel %vm5594_vm13, %v6619_v45, 0.0 }
 0x730   :  { %v3827_v20 = vpop.f32.mrf.mxu3  ;;  %v3886_v11 = vpop.f32.mrf.mxu0  ;;  %v4170_v58 = vadd.f32 %v4165_v5, %v4164_v21 }
 0x731   :  { %4979 = vpow2.f32 %v4021_v38 }
 0x732   :  { %v3899_v41 = vpop.f32.mrf.mxu1  ;;  %4981 = vrcp.f32 %v3999_v13 }
 0x733   :  { %4983 = vrcp.f32 %v4000_v61 }
 0x735   :  { %v4978_v26 = vpop.eup %4977 }
 0x736   :  { %v3910_v19 = vpop.f32.mrf.mxu2  ;;  %v4031_v15 = vadd.f32 2.0, %v4978_v26 }
 0x737   :  { %v4980_v16 = vpop.eup %4979  ;;  %v6641_v25 = vadd.f32 %v3910_v19, %v3831_v1 }
 0x738   :  { %v4982_v29 = vpop.eup %4981  ;;  %v4032_v27 = vadd.f32 2.0, %v4980_v16  ;;  %v3923_v6 = vpop.f32.mrf.mxu3  ;;  %v4037_v36 = vmul.f32 %v4978_v26, %v4031_v15 }
 0x739   :  { %v4984_v23 = vpop.eup %4983  ;;  %v4015_v22 = vmin.f32 %v6641_v25, 20.0  ;;  %v6646_v43 = vadd.f32 %v4009_v46, %v6641_v25  ;;  %v6648_v56 = vadd.f32 %v3923_v6, %v3832_v49  ;;  %v3936_v10 = vpop.f32.mrf.mxu0  ;;  %v4011_v37 = vmul.f32 %v4982_v29, %v3993_v51 }
 0x73a   :  { %v3949_v35 = vpop.f32.mrf.mxu1  ;;  %v4038_v4 = vmul.f32 %v4980_v16, %v4032_v27  ;;  %v6650_v9 = vadd.f32 %v3936_v10, %v3833_v7  ;;  %v4049_v14 = vadd.f32 2.0, %v4037_v36  ;;  %v4012_v61 = vmul.f32 %v4984_v23, %v3994_v62 }
 0x73b   :  { %v6652_v54 = vadd.f32 %v3949_v35, %v3834_v17  ;;  %v4023_v48 = vmul.f32 1.442695, %v4015_v22  ;;  %v4166_v13 = vsel %vm5599_vm14, %v6646_v43, 0.0  ;;  %v4016_v12 = vmin.f32 %v6648_v56, 20.0 }
 0x73c   :  { %v4050_v38 = vadd.f32 2.0, %v4038_v4  ;;  %v4171_v34 = vadd.f32 %v4170_v58, %v4166_v13  ;;  %4985 = vrcp.f32 %v4049_v14  ;;  %v6659_v20 = vadd.f32 %v4010_v24, %v6648_v56 }
 0x73d   :  { %v4017_v63 = vmin.f32 %v6650_v9, 20.0  ;;  %v6663_v11 = vadd.f32 %v4011_v37, %v6650_v9  ;;  %v4025_v41 = vmul.f32 1.442695, %v4016_v12  ;;  %v4018_v44 = vmin.f32 %v6652_v54, 20.0 }
 0x73e   :  { %4987 = vrcp.f32 %v4050_v38  ;;  %v6667_v52 = vadd.f32 %v4012_v61, %v6652_v54  ;;  %v3912_v50 = vpop.f32.mrf.mxu2  ;;  %v4167_v39 = vsel %vm5610_vm15, %v6659_v20, 0.0  ;;  %v4043_v49 = vmul.f32 %v4037_v36, %v6609_v59 }
 0x73f   :  { %4989 = vpow2.f32 %v4023_v48  ;;  %v4027_v18 = vmul.f32 1.442695, %v4017_v63  ;;  %v4029_v1 = vmul.f32 1.442695, %v4018_v44  ;;  %v4172_v26 = vadd.f32 %v4171_v34, %v4167_v39 }
 0x740   :  { %4991 = vpow2.f32 %v4025_v41  ;;  %v3925_v46 = vpop.f32.mrf.mxu3  ;;  %v4169_v24 = vsel %vm5619_vm10, %v6667_v52, 0.0  ;;  %v4168_v31 = vsel %vm5615_vm11, %v6663_v11, 0.0  ;;  %v4044_v15 = vmul.f32 %v4038_v4, %v6611_v42 }
 0x741   :  { %4993 = vpow2.f32 %v4027_v18  ;;  %v3938_v51 = vpop.f32.mrf.mxu0  ;;  %v4173_v19 = vadd.f32 %v4172_v26, %v4168_v31  ;;  %v4174_v21 = vsel %vm99_vm2, %v4169_v24, 0.0 }
 0x742   :  { %v3951_v32 = vpop.f32.mrf.mxu1  ;;  %4995 = vpow2.f32 %v4029_v1  ;;  %v4986_v16 = vpop.eup %4985 }
 0x743   :  { %v4061_v29 = vmul.f32 %v4986_v16, %v4043_v49  ;;  %v4175_v62 = vadd.f32 %v4174_v21, %v4173_v19  ;;  %v4067_v32 = vld [vmem:[%s7015_s8] sm:$0xff] }
 0x744   :  { %v4988_v5 = vpop.eup %4987 }
 0x745   :  { %v4990_v7 = vpop.eup %4989  ;;  %v4062_v17 = vmul.f32 %v4988_v5, %v4044_v15  ;;  %v6682_v6 = vadd.f32 %v4061_v29, %v6421_v55  ;;  %4176 = vadd.xlane.f32.xlu0 %v4175_v62 }
 0x746   :  { %v4992_v27 = vpop.eup %4991  ;;  %v4033_v23 = vadd.f32 2.0, %v4990_v7 }
 0x747   :  { %v4994_v22 = vpop.eup %4993  ;;  %v6685_v59 = vadd.f32 %v4062_v17, %v6424_v30  ;;  %v4034_v36 = vadd.f32 2.0, %v4992_v27  ;;  %v4077_v63 = vsel %vm5590_vm12, %v6682_v6, 0.0 }
 0x748   :  { %v4996_v10 = vpop.eup %4995  ;;  %v4039_v42 = vmul.f32 %v4990_v7, %v4033_v23  ;;  %v4035_v35 = vadd.f32 2.0, %v4994_v22 }
 0x749   :  { %v4040_v4 = vmul.f32 %v4992_v27, %v4034_v36  ;;  %v4036_v58 = vadd.f32 2.0, %v4996_v10  ;;  %v4078_v41 = vsel %vm5594_vm13, %v6685_v59, 0.0 }
 0x74a   :  { %v4051_v14 = vadd.f32 2.0, %v4039_v42  ;;  %v4041_v48 = vmul.f32 %v4994_v22, %v4035_v35  ;;  %v4045_v34 = vmul.f32 %v4039_v42, %v6641_v25  ;;  %v4083_v51 = vadd.f32 %v4078_v41, %v4077_v63 }
 0x74b   :  { %v4052_v13 = vadd.f32 2.0, %v4040_v4  ;;  %v4042_v37 = vmul.f32 %v4996_v10, %v4036_v58  ;;  %v4046_v12 = vmul.f32 %v4040_v4, %v6648_v56 }
 0x74c   :  { %4997 = vrcp.f32 %v4051_v14  ;;  %v4053_v38 = vadd.f32 2.0, %v4041_v48  ;;  %v4047_v50 = vmul.f32 %v4041_v48, %v6650_v9 }
 0x74d   :  { %4999 = vrcp.f32 %v4052_v13  ;;  %v4054_v55 = vadd.f32 2.0, %v4042_v37  ;;  %v4048_v1 = vmul.f32 %v4042_v37, %v6652_v54 }
 0x74e   :  { %5001 = vrcp.f32 %v4053_v38 }
 0x74f   :  { %5003 = vrcp.f32 %v4054_v55 }
 0x752   :  { %v4998_v30 = vpop.eup %4997 }
 0x753   :  { %v5000_v61 = vpop.eup %4999  ;;  %v4063_v44 = vmul.f32 %v4998_v30, %v4045_v34 }
 0x754   :  { %v5002_v39 = vpop.eup %5001  ;;  %v4064_v18 = vmul.f32 %v5000_v61, %v4046_v12 }
 0x755   :  { %v5004_v25 = vpop.eup %5003  ;;  %v4073_v46 = vadd.f32 %v4063_v44, %v6428_v47  ;;  %v4065_v56 = vmul.f32 %v5002_v39, %v4047_v50 }
 0x756   :  { %v4074_v24 = vadd.f32 %v4064_v18, %v6430_v3  ;;  %v4066_v26 = vmul.f32 %v5004_v25, %v4048_v1 }
 0x757   :  { %v4075_v31 = vadd.f32 %v4065_v56, %v6448_v33  ;;  %v4079_v9 = vsel %vm5599_vm14, %v4073_v46, 0.0 }
 0x758   :  { %v4076_v49 = vadd.f32 %v4066_v26, %v6451_v8  ;;  %v4080_v54 = vsel %vm5610_vm15, %v4074_v24, 0.0  ;;  %v4084_v47 = vadd.f32 %v4083_v51, %v4079_v9  ;;  %v4070_v8 = vld [vmem:[%s7016_s9 + $0x8] sm:$0xff] }
 0x759   :  { %4121 = vperm.xlu0 %4902, %v4067_v32   ;;  %v4081_v16 = vsel %vm5615_vm11, %v4075_v31, 0.0 }
 0x75a   :  { %v4082_v3 = vsel %vm5619_vm10, %v4076_v49, 0.0  ;;  %v4085_v19 = vadd.f32 %v4084_v47, %v4080_v54  ;;  %v4069_v54 = vld [vmem:[%s7016_s9] sm:$0xff] }
 0x75b   :  { %v4087_v33 = vsel %vm99_vm2, %v4082_v3, 0.0 }
 0x75c   :  { %v4086_v15 = vadd.f32 %v4085_v19, %v4081_v16  ;;  %v4068_v16 = vld [vmem:[%s7015_s8 + $0x8] sm:$0xff] }
 0x75e   :  { %v4088_v21 = vadd.f32 %v4087_v33, %v4086_v15 }
 0x760   :  { %4089 = vadd.xlane.f32.xlu1 %v4088_v21 }
 0x761   :  { %4236 = vperm.xlu0 %4902, %v4070_v8  }
 0x7b8   :  { %v4177_v5 = vpop.xlane.xlu0 %4176 }
 0x7b9   :  { %v4178_v29 = vmul.f32 0.001953125, %v4177_v5 }
 0x7bb   :  { %v6717_v62 = vsub.f32 %v6615_v28, %v4178_v29  ;;  %v6720_v7 = vsub.f32 %v6619_v45, %v4178_v29  ;;  %v6723_v17 = vsub.f32 %v6646_v43, %v4178_v29  ;;  %v6726_v27 = vsub.f32 %v6659_v20, %v4178_v29 }
 0x7bc   :  { %v6729_v23 = vsub.f32 %v6667_v52, %v4178_v29  ;;  %v6732_v22 = vsub.f32 %v6663_v11, %v4178_v29 }
 0x7bd   :  { %v4185_v36 = vmul.f32 %v6717_v62, %v6717_v62  ;;  %v4186_v28 = vmul.f32 %v6720_v7, %v6720_v7  ;;  %v4187_v45 = vmul.f32 %v6723_v17, %v6723_v17  ;;  %v4188_v43 = vmul.f32 %v6726_v27, %v6726_v27 }
 0x7be   :  { %v4190_v11 = vmul.f32 %v6729_v23, %v6729_v23  ;;  %v4189_v42 = vmul.f32 %v6732_v22, %v6732_v22 }
 0x7bf   :  { %v4191_v20 = vsel %vm5590_vm12, %v4185_v36, 0.0  ;;  %v4192_v52 = vsel %vm5594_vm13, %v4186_v28, 0.0  ;;  %v4193_v35 = vsel %vm5599_vm14, %v4187_v45, 0.0  ;;  %v4194_v58 = vsel %vm5610_vm15, %v4188_v43, 0.0 }
 0x7c0   :  { %v4197_v10 = vadd.f32 %v4192_v52, %v4191_v20  ;;  %v4196_v14 = vsel %vm5619_vm10, %v4190_v11, 0.0  ;;  %v4195_v13 = vsel %vm5615_vm11, %v4189_v42, 0.0 }
 0x7c1   :  { %v4201_v38 = vsel %vm99_vm2, %v4196_v14, 0.0 }
 0x7c2   :  { %v4198_v4 = vadd.f32 %v4197_v10, %v4193_v35 }
 0x7c4   :  { %v4199_v48 = vadd.f32 %v4198_v4, %v4194_v58 }
 0x7c6   :  { %v4200_v37 = vadd.f32 %v4199_v48, %v4195_v13 }
 0x7c8   :  { %v4202_v55 = vadd.f32 %v4201_v38, %v4200_v37 }
 0x7ca   :  { %4203 = vadd.xlane.f32.xlu1 %v4202_v55 }
 0x7cb   :  { %v4122_v11 = vpop.permute.xlu0 %4121 }
 0x7d3   :  { %v4090_v34 = vpop.xlane.xlu1 %4089 }
 0x7d4   :  { %v4091_v30 = vmul.f32 0.001953125, %v4090_v34 }
 0x7d6   :  { %v6760_v12 = vsub.f32 %v6682_v6, %v4091_v30  ;;  %v6763_v61 = vsub.f32 %v6685_v59, %v4091_v30  ;;  %v6765_v63 = vsub.f32 %v4073_v46, %v4091_v30  ;;  %v6767_v41 = vsub.f32 %v4074_v24, %v4091_v30 }
 0x7d7   :  { %v4097_v44 = vsub.f32 %v4076_v49, %v4091_v30  ;;  %v4096_v50 = vsub.f32 %v4075_v31, %v4091_v30 }
 0x7d8   :  { %v4098_v39 = vmul.f32 %v6760_v12, %v6760_v12  ;;  %v4099_v18 = vmul.f32 %v6763_v61, %v6763_v61  ;;  %v4100_v1 = vmul.f32 %v6765_v63, %v6765_v63  ;;  %v4101_v6 = vmul.f32 %v6767_v41, %v6767_v41 }
 0x7d9   :  { %v4103_v46 = vmul.f32 %v4097_v44, %v4097_v44  ;;  %v4102_v24 = vmul.f32 %v4096_v50, %v4096_v50 }
 0x7da   :  { %v4104_v59 = vsel %vm5590_vm12, %v4098_v39, 0.0  ;;  %v4105_v25 = vsel %vm5594_vm13, %v4099_v18, 0.0  ;;  %v4106_v26 = vsel %vm5599_vm14, %v4100_v1, 0.0  ;;  %v4107_v32 = vsel %vm5610_vm15, %v4101_v6, 0.0 }
 0x7db   :  { %v4110_v56 = vadd.f32 %v4105_v25, %v4104_v59  ;;  %v4109_v31 = vsel %vm5619_vm10, %v4103_v46, 0.0  ;;  %v4108_v49 = vsel %vm5615_vm11, %v4102_v24, 0.0  ;;  %v4128_v1 = vmul.f32 %v4122_v11, %v4096_v50 }
 0x7dc   :  { %v4114_v3 = vsel %vm99_vm2, %v4109_v31, 0.0 }
 0x7dd   :  { %v4111_v51 = vadd.f32 %v4110_v56, %v4106_v26 }
 0x7df   :  { %v4112_v9 = vadd.f32 %v4111_v51, %v4107_v32 }
 0x7e1   :  { %v4113_v47 = vadd.f32 %v4112_v9, %v4108_v49 }
 0x7e3   :  { %v4115_v19 = vadd.f32 %v4114_v3, %v4113_v47  ;;  %4149 = vperm.xlu1 %4903, %v4069_v54  }
 0x7e5   :  { %4116 = vadd.xlane.f32.xlu2 %v4115_v19 }
 0x7fd   :  { %4208 = vperm.xlu2 %4904, %v4068_v16  }
 0x83d   :  { %v4204_v15 = vpop.xlane.xlu1 %4203 }
 0x83e   :  { %v4205_v33 = vmul.f32 0.001953125, %v4204_v15 }
 0x840   :  { %v4217_v21 = vadd.f32 1e-05, %v4205_v33 }
 0x842   :  { %5005 = vrsqrt.f32 %v4217_v21  ;;  %vm4224_vm0 = vweird.f32 %v4217_v21 }
 0x848   :  { %v5006_v8 = vpop.eup %5005 }
 0x849   :  { %v4219_v5 = vmul.f32 %v5006_v8, %v4217_v21  ;;  %vm4225_vm8 = vweird.f32 %v5006_v8 }
 0x84a   :  { %vm4226_vm9 = vmor %vm4224_vm0, %vm4225_vm8 }
 0x84b   :  { %v4220_v36 = vmul.f32 %v5006_v8, %v4219_v5 }
 0x84d   :  { %v4221_v43 = vmul.f32 0.5, %v4220_v36 }
 0x84f   :  { %v4222_v20 = vsub.f32 1.5, %v4221_v43 }
 0x851   :  { %v4223_v35 = vmul.f32 %v5006_v8, %v4222_v20 }
 0x853   :  { %v4227_v38 = vsel %vm4226_vm9, %v5006_v8, %v4223_v35 }
 0x855   :  { %v4150_v31 = vpop.permute.xlu1 %4149 }
 0x858   :  { %v4117_v29 = vpop.xlane.xlu2 %4116 }
 0x859   :  { %v4118_v28 = vmul.f32 0.001953125, %v4117_v29 }
 0x85b   :  { %v4130_v45 = vadd.f32 1e-05, %v4118_v28 }
 0x85d   :  { %5007 = vrsqrt.f32 %v4130_v45  ;;  %vm4137_vm5 = vweird.f32 %v4130_v45 }
 0x860   :  { %v4209_v10 = vpop.permute.xlu2 %4208 }
 0x861   :  { %v4211_v58 = vmul.f32 %v4209_v10, %v6717_v62  ;;  %v4212_v14 = vmul.f32 %v4209_v10, %v6720_v7  ;;  %v4213_v13 = vmul.f32 %v4209_v10, %v6723_v17  ;;  %v4214_v37 = vmul.f32 %v4209_v10, %v6726_v27  ;;  %v4237_v17 = vpop.permute.xlu0 %4236 }
 0x862   :  { %v4215_v55 = vmul.f32 %v4209_v10, %v6732_v22  ;;  %v4216_v34 = vmul.f32 %v4209_v10, %v6729_v23  ;;  %v4129_v62 = vmul.f32 %v4122_v11, %v4097_v44  ;;  %v4124_v7 = vmul.f32 %v4122_v11, %v6760_v12 }
 0x863   :  { %v5008_v52 = vpop.eup %5007  ;;  %v4228_v39 = vmul.f32 %v4227_v38, %v4211_v58  ;;  %v4229_v18 = vmul.f32 %v4227_v38, %v4212_v14  ;;  %v4230_v59 = vmul.f32 %v4227_v38, %v4213_v13  ;;  %v4231_v25 = vmul.f32 %v4227_v38, %v4214_v37 }
 0x864   :  { %v4132_v42 = vmul.f32 %v5008_v52, %v4130_v45  ;;  %vm4138_vm4 = vweird.f32 %v5008_v52  ;;  %v4125_v27 = vmul.f32 %v4122_v11, %v6763_v61  ;;  %v4126_v22 = vmul.f32 %v4122_v11, %v6765_v63 }
 0x865   :  { %vm4139_vm6 = vmor %vm4137_vm5, %vm4138_vm4  ;;  %v4127_v23 = vmul.f32 %v4122_v11, %v6767_v41  ;;  %v4232_v46 = vmul.f32 %v4227_v38, %v4215_v55  ;;  %v4239_v24 = vadd.f32 %v4237_v17, %v4228_v39  ;;  %v4240_v26 = vadd.f32 %v4237_v17, %v4229_v18 }
 0x866   :  { %v4133_v4 = vmul.f32 %v5008_v52, %v4132_v42  ;;  %v4233_v50 = vmul.f32 %v4227_v38, %v4216_v34  ;;  %v4241_v9 = vadd.f32 %v4237_v17, %v4230_v59  ;;  %v4242_v49 = vadd.f32 %v4237_v17, %v4231_v25 }
 0x867   :  { %v4243_v41 = vadd.f32 %v4237_v17, %v4232_v46 }
 0x868   :  { %v4134_v48 = vmul.f32 0.5, %v4133_v4  ;;  %v4244_v33 = vadd.f32 %v4237_v17, %v4233_v50 }
 0x86a   :  { %v4135_v30 = vsub.f32 1.5, %v4134_v48 }
 0x86c   :  { %v4136_v6 = vmul.f32 %v5008_v52, %v4135_v30 }
 0x86e   :  { %v4140_v56 = vsel %vm4139_vm6, %v5008_v52, %v4136_v6 }
 0x86f   :  { %v4141_v44 = vmul.f32 %v4140_v56, %v4124_v7  ;;  %v4142_v51 = vmul.f32 %v4140_v56, %v4125_v27  ;;  %v4143_v12 = vmul.f32 %v4140_v56, %v4126_v22  ;;  %v4144_v32 = vmul.f32 %v4140_v56, %v4127_v23 }
 0x870   :  { %v4145_v54 = vmul.f32 %v4140_v56, %v4128_v1  ;;  %v4146_v47 = vmul.f32 %v4140_v56, %v4129_v62 }
 0x871   :  { %v4152_v3 = vadd.f32 %v4150_v31, %v4141_v44  ;;  %v4153_v61 = vadd.f32 %v4150_v31, %v4142_v51  ;;  %v4154_v19 = vadd.f32 %v4150_v31, %v4143_v12  ;;  %v4155_v63 = vadd.f32 %v4150_v31, %v4144_v32 }
 0x872   :  { %v4156_v16 = vadd.f32 %v4150_v31, %v4145_v54  ;;  %v4157_v15 = vadd.f32 %v4150_v31, %v4146_v47 }
 0x873   :  { %v4245_v21 = vadd.f32 %v4239_v24, %v4152_v3  ;;  %v4246_v8 = vadd.f32 %v4240_v26, %v4153_v61  ;;  %v4247_v5 = vadd.f32 %v4241_v9, %v4154_v19  ;;  %v4248_v29 = vadd.f32 %v4242_v49, %v4155_v63 }
 0x874   :  { %v4249_v36 = vadd.f32 %v4243_v41, %v4156_v16  ;;  %v4250_v28 = vadd.f32 %v4244_v33, %v4157_v15 }
 0x875   :  { %v4251_v45 = vsel %vm5590_vm12, %v4245_v21, 0.0  ;;  %v4252_v43 = vsel %vm5594_vm13, %v4246_v8, 0.0  ;;  %v4253_v20 = vsel %vm5599_vm14, %v4247_v5, 0.0  ;;  %v4254_v52 = vsel %vm5610_vm15, %v4248_v29, 0.0 }
 0x876   :  { %v4259_v11 = vpack.c.bf16 %v4251_v45, %v4251_v45  ;;  %v4260_v10 = vpack.c.bf16 %v4252_v43, %v4252_v43  ;;  %v4261_v42 = vpack.c.bf16 %v4253_v20, %v4253_v20  ;;  %v4262_v35 = vpack.c.bf16 %v4254_v52, %v4254_v52 }
 0x877   :  { %v4255_v4 = vsel %vm5615_vm11, %v4249_v36, 0.0  ;;  %v4256_v60 = vsel %vm5619_vm10, %v4250_v28, 0.0 }
 0x878   :  { %v4274_v58 = vsel %vm103_vm1, %v4259_v11, 0  ;;  %v4277_v53 = vsel %vm103_vm1, %v4260_v10, 0  ;;  %v4280_v0 = vsel %vm103_vm1, %v4261_v42, 0  ;;  %v4283_v14 = vsel %vm103_vm1, %v4262_v35, 0 }
 0x879   :  { %4298 = vmatpush.bf16.msra.mxu2 %v4274_v58  ;;  %4312 = vmatpush.bf16.msra.mxu3 %v4277_v53  ;;  %v4263_v2 = vpack.c.bf16 %v4255_v4, %v4255_v4  ;;  %v4264_v48 = vpack.c.bf16 %v4256_v60, %v4256_v60 }
 0x87a   :  { %4326 = vmatpush.bf16.msrb.mxu0 %v4280_v0  ;;  %4340 = vmatpush.bf16.msrb.mxu1 %v4283_v14 }
 0x87b   :  { %v4286_v57 = vsel %vm103_vm1, %v4263_v2, 0  ;;  %v4289_v13 = vsel %vm103_vm1, %v4264_v48, 0 }
 0x87c   :  { %4875 = vmatmul.msk.bf16.vlgmr.msra.gmra.mxu2 %vm99_vm2, %v4890_v40  ;;  %4876 = vmatmul.msk.bf16.vlgmr.msra.gmra.mxu3 %vm99_vm2, %v4890_v40 }
 0x87d   :  { %4354 = vmatpush.bf16.msrb.mxu2 %v4286_v57  ;;  %4368 = vmatpush.bf16.msrb.mxu3 %v4289_v13 }
 0x87e   :  { %4877 = vmatmul.msk.bf16.vlgmr.msrb.gmra.mxu0 %vm99_vm2, %v4890_v40  ;;  %4878 = vmatmul.msk.bf16.vlgmr.msrb.gmra.mxu1 %vm99_vm2, %v4890_v40 }
 0x88c   :  { %4879 = vmatmul.msk.bf16.vlgmr.msrb.gmra.mxu2 %vm99_vm2, %v4890_v40  ;;  %4880 = vmatmul.msk.bf16.vlgmr.msrb.gmra.mxu3 %vm99_vm2, %v4890_v40 }
 0x8fb   :  { %v6833_v37 = vpop.f32.mrf.mxu0  ;;  %v6836_v55 = vpop.f32.mrf.mxu1 }
 0x8fc   :  { %v4377_v38 = vmin.f32 %v6833_v37, 20.0  ;;  %v4378_v62 = vmin.f32 %v6836_v55, 20.0 }
 0x8fe   :  { %v4391_v34 = vmul.f32 1.442695, %v4377_v38  ;;  %v4393_v27 = vmul.f32 1.442695, %v4378_v62 }
 0x8ff   :  { %v6838_v30 = vpop.f32.mrf.mxu2  ;;  %v6840_v39 = vpop.f32.mrf.mxu3 }
 0x900   :  { %v4375_v18 = vmin.f32 %v6838_v30, 20.0  ;;  %v4376_v1 = vmin.f32 %v6840_v39, 20.0  ;;  %5009 = vpow2.f32 %v4391_v34 }
 0x902   :  { %v4387_v7 = vmul.f32 1.442695, %v4375_v18  ;;  %v4389_v6 = vmul.f32 1.442695, %v4376_v1 }
 0x903   :  { %v6845_v59 = vpop.f32.mrf.mxu0  ;;  %v6848_v17 = vpop.f32.mrf.mxu1 }
 0x904   :  { %5011 = vpow2.f32 %v4387_v7  ;;  %v4383_v25 = vmin.f32 %v6845_v59, 20.0  ;;  %v4384_v56 = vmin.f32 %v6848_v17, 20.0 }
 0x905   :  { %5013 = vpow2.f32 %v4389_v6 }
 0x906   :  { %v4403_v46 = vmul.f32 1.442695, %v4383_v25  ;;  %v5010_v50 = vpop.eup %5009  ;;  %5015 = vpow2.f32 %v4393_v27  ;;  %v4405_v49 = vmul.f32 1.442695, %v4384_v56 }
 0x907   :  { %v6850_v22 = vpop.f32.mrf.mxu2  ;;  %v6852_v23 = vpop.f32.mrf.mxu3  ;;  %v4413_v47 = vadd.f32 2.0, %v5010_v50 }
 0x908   :  { %v4381_v24 = vmin.f32 %v6850_v22, 20.0  ;;  %v4382_v26 = vmin.f32 %v6852_v23, 20.0  ;;  %5017 = vpow2.f32 %v4403_v46 }
 0x909   :  { %v4425_v8 = vmul.f32 %v5010_v50, %v4413_v47 }
 0x90a   :  { %v5012_v44 = vpop.eup %5011  ;;  %v4399_v51 = vmul.f32 1.442695, %v4381_v24  ;;  %v4401_v31 = vmul.f32 1.442695, %v4382_v26 }
 0x90b   :  { %v5014_v12 = vpop.eup %5013  ;;  %v4411_v32 = vadd.f32 2.0, %v5012_v44  ;;  %v4449_v11 = vadd.f32 2.0, %v4425_v8 }
 0x90c   :  { %v4412_v9 = vadd.f32 2.0, %v5014_v12  ;;  %5019 = vpow2.f32 %v4399_v51  ;;  %v5016_v63 = vpop.eup %5015 }
 0x90d   :  { %v4423_v54 = vmul.f32 %v5012_v44, %v4411_v32  ;;  %5021 = vpow2.f32 %v4401_v31  ;;  %v4414_v29 = vadd.f32 2.0, %v5016_v63 }
 0x90e   :  { %v4424_v3 = vmul.f32 %v5014_v12, %v4412_v9  ;;  %5023 = vpow2.f32 %v4405_v49  ;;  %v5018_v21 = vpop.eup %5017 }
 0x90f   :  { %v6857_v61 = vpop.f32.mrf.mxu2  ;;  %v6859_v19 = vpop.f32.mrf.mxu3  ;;  %v4447_v16 = vadd.f32 2.0, %v4423_v54  ;;  %v4419_v43 = vadd.f32 2.0, %v5018_v21  ;;  %v4426_v42 = vmul.f32 %v5016_v63, %v4414_v29  ;;  %v4435_v62 = vmul.f32 %v4423_v54, %v6838_v30 }
 0x910   :  { %v4379_v41 = vmin.f32 %v6857_v61, 20.0  ;;  %v4448_v15 = vadd.f32 2.0, %v4424_v3  ;;  %v4380_v33 = vmin.f32 %v6859_v19, 20.0  ;;  %v4436_v7 = vmul.f32 %v4424_v3, %v6840_v39 }
 0x911   :  { %5025 = vrcp.f32 %v4447_v16  ;;  %v4431_v14 = vmul.f32 %v5018_v21, %v4419_v43  ;;  %v4450_v18 = vadd.f32 2.0, %v4426_v42  ;;  %v4437_v30 = vmul.f32 %v4425_v8, %v6833_v37 }
 0x912   :  { %v4395_v5 = vmul.f32 1.442695, %v4379_v41  ;;  %v4397_v36 = vmul.f32 1.442695, %v4380_v33  ;;  %v5020_v28 = vpop.eup %5019  ;;  %5027 = vrcp.f32 %v4448_v15  ;;  %v4438_v8 = vmul.f32 %v4426_v42, %v6836_v55 }
 0x913   :  { %v5022_v45 = vpop.eup %5021  ;;  %v4417_v20 = vadd.f32 2.0, %v5020_v28  ;;  %v4455_v25 = vadd.f32 2.0, %v4431_v14 }
 0x914   :  { %v5024_v52 = vpop.eup %5023  ;;  %v4418_v10 = vadd.f32 2.0, %v5022_v45  ;;  %5029 = vpow2.f32 %v4395_v5 }
 0x915   :  { %v4429_v35 = vmul.f32 %v5020_v28, %v4417_v20  ;;  %5031 = vpow2.f32 %v4397_v36  ;;  %v4420_v2 = vadd.f32 2.0, %v5024_v52  ;;  %v4443_v20 = vmul.f32 %v4431_v14, %v6845_v59 }
 0x916   :  { %v4430_v58 = vmul.f32 %v5022_v45, %v4418_v10  ;;  %5033 = vrcp.f32 %v4449_v11 }
 0x917   :  { %v6863_v4 = vpop.f32.mrf.mxu2  ;;  %v6865_v60 = vpop.f32.mrf.mxu3  ;;  %v4453_v48 = vadd.f32 2.0, %v4429_v35  ;;  %v4432_v27 = vmul.f32 %v5024_v52, %v4420_v2  ;;  %v4441_v47 = vmul.f32 %v4429_v35, %v6850_v22 }
 0x918   :  { %v4385_v53 = vmin.f32 %v6863_v4, 20.0  ;;  %v4386_v0 = vmin.f32 %v6865_v60, 20.0  ;;  %v5026_v40 = vpop.eup %5025  ;;  %v4454_v57 = vadd.f32 2.0, %v4430_v58  ;;  %v4442_v3 = vmul.f32 %v4430_v58, %v6852_v23 }
 0x919   :  { %v5028_v34 = vpop.eup %5027  ;;  %5035 = vrcp.f32 %v4453_v48  ;;  %v6871_v56 = vmul.f32 %v5026_v40, %v4435_v62  ;;  %v4456_v9 = vadd.f32 2.0, %v4432_v27 }
 0x91a   :  { %v4407_v13 = vmul.f32 1.442695, %v4385_v53  ;;  %v4409_v38 = vmul.f32 1.442695, %v4386_v0  ;;  %v5030_v1 = vpop.eup %5029  ;;  %5037 = vrcp.f32 %v4454_v57  ;;  %v6873_v24 = vmul.f32 %v5028_v34, %v4436_v7 }
 0x91b   :  { %v5032_v6 = vpop.eup %5031  ;;  %v4415_v46 = vadd.f32 2.0, %v5030_v1 }
 0x91c   :  { %5039 = vpow2.f32 %v4407_v13  ;;  %v4416_v26 = vadd.f32 2.0, %v5032_v6  ;;  %v5034_v44 = vpop.eup %5033  ;;  %v4483_v31 = vadd.f32 %v6873_v24, %v6871_v56 }
 0x91d   :  { %5041 = vpow2.f32 %v4409_v38  ;;  %v4427_v50 = vmul.f32 %v5030_v1, %v4415_v46  ;;  %v4473_v16 = vmul.f32 %v5034_v44, %v4437_v30 }
 0x91e   :  { %5043 = vrcp.f32 %v4450_v18  ;;  %v4428_v51 = vmul.f32 %v5032_v6, %v4416_v26 }
 0x91f   :  { %v5036_v12 = vpop.eup %5035  ;;  %v4451_v39 = vadd.f32 2.0, %v4427_v50  ;;  %5045 = vrcp.f32 %v4455_v25  ;;  %v4484_v5 = vadd.f32 %v4483_v31, %v4473_v16  ;;  %v4439_v23 = vmul.f32 %v4427_v50, %v6857_v61 }
 0x920   :  { %v5038_v32 = vpop.eup %5037  ;;  %v4452_v49 = vadd.f32 2.0, %v4428_v51  ;;  %v6880_v37 = vmul.f32 %v5036_v12, %v4441_v47  ;;  %v4440_v11 = vmul.f32 %v4428_v51, %v6859_v19  ;;  %v4444_v61 = vmul.f32 %v4432_v27, %v6848_v17  ;;  %v4543_v17 = vld [vmem:[%s7018_s10] sm:$0xff] }
 0x921   :  { %5047 = vrcp.f32 %v4451_v39  ;;  %v6882_v33 = vmul.f32 %v5038_v32, %v4442_v3 }
 0x922   :  { %v5040_v54 = vpop.eup %5039  ;;  %5049 = vrcp.f32 %v4452_v49 }
 0x923   :  { %v5042_v63 = vpop.eup %5041  ;;  %v4421_v41 = vadd.f32 2.0, %v5040_v54  ;;  %5051 = vrcp.f32 %v4456_v9  ;;  %v4491_v52 = vadd.f32 %v6882_v33, %v6880_v37 }
 0x924   :  { %v5044_v15 = vpop.eup %5043  ;;  %v4422_v21 = vadd.f32 2.0, %v5042_v63 }
 0x925   :  { %v4433_v29 = vmul.f32 %v5040_v54, %v4421_v41  ;;  %v5046_v22 = vpop.eup %5045  ;;  %v4474_v28 = vmul.f32 %v5044_v15, %v4438_v8 }
 0x926   :  { %v4434_v36 = vmul.f32 %v5042_v63, %v4422_v21  ;;  %v4479_v58 = vmul.f32 %v5046_v22, %v4443_v20 }
 0x927   :  { %v4457_v45 = vadd.f32 2.0, %v4433_v29  ;;  %v5048_v43 = vpop.eup %5047  ;;  %v4485_v42 = vadd.f32 %v4484_v5, %v4474_v28  ;;  %v4445_v57 = vmul.f32 %v4433_v29, %v6863_v4  ;;  %v4602_v4 = vld [vmem:[%s7019_s11 + $0x8] sm:$0xff] }
 0x928   :  { %v4458_v10 = vadd.f32 2.0, %v4434_v36  ;;  %v5050_v35 = vpop.eup %5049  ;;  %v4475_v55 = vmul.f32 %v5048_v43, %v4439_v23  ;;  %v4492_v48 = vadd.f32 %v4491_v52, %v4479_v58  ;;  %v4446_v13 = vmul.f32 %v4434_v36, %v6865_v60 }
 0x929   :  { %5053 = vrcp.f32 %v4457_v45  ;;  %v4476_v53 = vmul.f32 %v5050_v35, %v4440_v11  ;;  %v5052_v0 = vpop.eup %5051  ;;  %v4544_v35 = vld [vmem:[%s7018_s10 + $0x8] sm:$0xff] }
 0x92a   :  { %5055 = vrcp.f32 %v4458_v10  ;;  %v4486_v2 = vadd.f32 %v4485_v42, %v4475_v55  ;;  %v4480_v40 = vmul.f32 %v5052_v0, %v4444_v61 }
 0x92b   :  { %v4487_v59 = vsel %vm99_vm2, %v4476_v53, 0.0 }
 0x92c   :  { %v4488_v14 = vadd.f32 %v4487_v59, %v4486_v2  ;;  %v4493_v18 = vadd.f32 %v4492_v48, %v4480_v40 }
 0x92e   :  { %4489 = vadd.xlane.f32.xlu2 %v4488_v14 }
 0x92f   :  { %v5054_v19 = vpop.eup %5053 }
 0x930   :  { %v5056_v38 = vpop.eup %5055  ;;  %v4481_v34 = vmul.f32 %v5054_v19, %v4445_v57 }
 0x931   :  { %v4482_v1 = vmul.f32 %v5056_v38, %v4446_v13 }
 0x932   :  { %v4494_v62 = vadd.f32 %v4493_v18, %v4481_v34 }
 0x933   :  { %v4495_v7 = vsel %vm99_vm2, %v4482_v1, 0.0 }
 0x934   :  { %v4496_v6 = vadd.f32 %v4495_v7, %v4494_v62 }
 0x936   :  { %4497 = vadd.xlane.f32.xlu0 %v4496_v6 }
 0x94a   :  { %4547 = vperm.xlu0 %4902, %v4543_v17  }
 0x952   :  { %4610 = vperm.xlu0 %4902, %v4602_v4  }
 0x9a1   :  { %v4490_v60 = vpop.xlane.xlu2 %4489 }
 0x9a2   :  { %v4499_v25 = vmul.f32 0.0015432099, %v4490_v60 }
 0x9a4   :  { %v6902_v27 = vsub.f32 %v6871_v56, %v4499_v25  ;;  %v6905_v46 = vsub.f32 %v6873_v24, %v4499_v25  ;;  %v6907_v26 = vsub.f32 %v4473_v16, %v4499_v25  ;;  %v6909_v50 = vsub.f32 %v4474_v28, %v4499_v25 }
 0x9a5   :  { %v6915_v12 = vsub.f32 %v4476_v53, %v4499_v25  ;;  %v4505_v39 = vsub.f32 %v4475_v55, %v4499_v25  ;;  %v4601_v55 = vld [vmem:[%s7019_s11] sm:$0xff] }
 0x9a6   :  { %v4513_v44 = vmul.f32 %v6902_v27, %v6902_v27  ;;  %v4514_v51 = vmul.f32 %v6905_v46, %v6905_v46  ;;  %v4515_v56 = vmul.f32 %v6907_v26, %v6907_v26  ;;  %v4516_v31 = vmul.f32 %v6909_v50, %v6909_v50 }
 0x9a7   :  { %v4518_v49 = vmul.f32 %v6915_v12, %v6915_v12  ;;  %v4517_v63 = vmul.f32 %v4505_v39, %v4505_v39 }
 0x9a8   :  { %v4525_v32 = vadd.f32 %v4514_v51, %v4513_v44 }
 0x9a9   :  { %v4498_v30 = vpop.xlane.xlu0 %4497 }
 0x9aa   :  { %v4500_v24 = vmul.f32 0.0015432099, %v4498_v30  ;;  %v4526_v9 = vadd.f32 %v4525_v32, %v4515_v56 }
 0x9ac   :  { %v6924_v54 = vsub.f32 %v6880_v37, %v4500_v24  ;;  %v6927_v47 = vsub.f32 %v6882_v33, %v4500_v24  ;;  %v6929_v3 = vsub.f32 %v4479_v58, %v4500_v24  ;;  %v4527_v16 = vadd.f32 %v4526_v9, %v4516_v31 }
 0x9ad   :  { %v6931_v41 = vsub.f32 %v4480_v40, %v4500_v24  ;;  %v6937_v5 = vsub.f32 %v4482_v1, %v4500_v24  ;;  %v4529_v37 = vsel %vm99_vm2, %v4518_v49, 0.0  ;;  %v6940_v29 = vsub.f32 %v4481_v34, %v4500_v24 }
 0x9ae   :  { %v4519_v15 = vmul.f32 %v6924_v54, %v6924_v54  ;;  %v4520_v21 = vmul.f32 %v6927_v47, %v6927_v47  ;;  %v4528_v8 = vadd.f32 %v4527_v16, %v4517_v63  ;;  %v4521_v33 = vmul.f32 %v6929_v3, %v6929_v3 }
 0x9af   :  { %v4522_v28 = vmul.f32 %v6931_v41, %v6931_v41  ;;  %v4524_v45 = vmul.f32 %v6937_v5, %v6937_v5  ;;  %v4523_v43 = vmul.f32 %v6940_v29, %v6940_v29 }
 0x9b0   :  { %v4533_v36 = vadd.f32 %v4520_v21, %v4519_v15  ;;  %v4530_v22 = vadd.f32 %v4529_v37, %v4528_v8 }
 0x9b1   :  { %v4537_v11 = vsel %vm99_vm2, %v4524_v45, 0.0 }
 0x9b2   :  { %v4534_v23 = vadd.f32 %v4533_v36, %v4521_v33  ;;  %4531 = vadd.xlane.f32.xlu1 %v4530_v22 }
 0x9b4   :  { %v4535_v20 = vadd.f32 %v4534_v23, %v4522_v28 }
 0x9b6   :  { %v4536_v52 = vadd.f32 %v4535_v20, %v4523_v43 }
 0x9b8   :  { %v4538_v10 = vadd.f32 %v4537_v11, %v4536_v52 }
 0x9ba   :  { %4539 = vadd.xlane.f32.xlu2 %v4538_v10 }
 0x9bc   :  { %v4548_v19 = vpop.permute.xlu0 %4547 }
 0x9bd   :  { %v4555_v18 = vmul.f32 %v4548_v19, %v6902_v27  ;;  %v4556_v1 = vmul.f32 %v4548_v19, %v6905_v46  ;;  %v4557_v62 = vmul.f32 %v4548_v19, %v6907_v26  ;;  %v4558_v6 = vmul.f32 %v4548_v19, %v6909_v50 }
 0x9be   :  { %v4559_v17 = vmul.f32 %v4548_v19, %v4505_v39  ;;  %v4560_v4 = vmul.f32 %v4548_v19, %v6915_v12 }
 0x9cb   :  { %4552 = vperm.xlu1 %4903, %v4544_v35  }
 0x9d2   :  { %4605 = vperm.xlu2 %4904, %v4601_v55  }
 0xa25   :  { %v4532_v42 = vpop.xlane.xlu1 %4531 }
 0xa26   :  { %v4541_v58 = vmul.f32 0.0015432099, %v4532_v42 }
 0xa28   :  { %v4567_v53 = vadd.f32 1e-05, %v4541_v58 }
 0xa2a   :  { %5057 = vrsqrt.f32 %v4567_v53  ;;  %vm4575_vm10 = vweird.f32 %v4567_v53 }
 0xa2d   :  { %v4540_v0 = vpop.xlane.xlu2 %4539 }
 0xa2e   :  { %v4542_v2 = vmul.f32 0.0015432099, %v4540_v0 }
 0xa30   :  { %v4568_v61 = vadd.f32 1e-05, %v4542_v2  ;;  %v5058_v48 = vpop.eup %5057 }
 0xa31   :  { %v4570_v59 = vmul.f32 %v5058_v48, %v4567_v53  ;;  %vm4576_vm1 = vweird.f32 %v5058_v48 }
 0xa32   :  { %5059 = vrsqrt.f32 %v4568_v61  ;;  %vm4577_vm12 = vmor %vm4575_vm10, %vm4576_vm1  ;;  %vm4585_vm14 = vweird.f32 %v4568_v61 }
 0xa33   :  { %v4571_v14 = vmul.f32 %v5058_v48, %v4570_v59 }
 0xa35   :  { %v4572_v40 = vmul.f32 0.5, %v4571_v14  ;;  %v4606_v56 = vpop.permute.xlu2 %4605 }
 0xa37   :  { %v4573_v13 = vsub.f32 1.5, %v4572_v40 }
 0xa38   :  { %v5060_v57 = vpop.eup %5059 }
 0xa39   :  { %v4580_v38 = vmul.f32 %v5060_v57, %v4568_v61  ;;  %v4574_v34 = vmul.f32 %v5058_v48, %v4573_v13  ;;  %vm4586_vm13 = vweird.f32 %v5060_v57 }
 0xa3a   :  { %vm4587_vm15 = vmor %vm4585_vm14, %vm4586_vm13 }
 0xa3b   :  { %v4581_v7 = vmul.f32 %v5060_v57, %v4580_v38  ;;  %v4578_v60 = vsel %vm4577_vm12, %v5058_v48, %v4574_v34 }
 0xa3c   :  { %v4589_v44 = vmul.f32 %v4578_v60, %v4555_v18  ;;  %v4590_v51 = vmul.f32 %v4578_v60, %v4556_v1  ;;  %v4591_v30 = vmul.f32 %v4578_v60, %v4557_v62  ;;  %v4592_v32 = vmul.f32 %v4578_v60, %v4558_v6 }
 0xa3d   :  { %v4582_v25 = vmul.f32 0.5, %v4581_v7  ;;  %v4593_v27 = vmul.f32 %v4578_v60, %v4559_v17  ;;  %v4594_v24 = vmul.f32 %v4578_v60, %v4560_v4  ;;  %v4553_v49 = vpop.permute.xlu1 %4552 }
 0xa3e   :  { %v4613_v31 = vadd.f32 %v4606_v56, %v4589_v44  ;;  %v4614_v26 = vadd.f32 %v4606_v56, %v4590_v51  ;;  %v4615_v9 = vadd.f32 %v4606_v56, %v4591_v30  ;;  %v4616_v63 = vadd.f32 %v4606_v56, %v4592_v32 }
 0xa3f   :  { %v4583_v46 = vsub.f32 1.5, %v4582_v25  ;;  %v4617_v39 = vadd.f32 %v4606_v56, %v4593_v27  ;;  %v4618_v12 = vadd.f32 %v4606_v56, %v4594_v24  ;;  %v4561_v16 = vmul.f32 %v4553_v49, %v6924_v54 }
 0xa40   :  { %4625 = vst [vmem:[%s7020_s13] sm:$0xff] %v4613_v31  ;;  %v4562_v15 = vmul.f32 %v4553_v49, %v6927_v47  ;;  %v4563_v21 = vmul.f32 %v4553_v49, %v6929_v3  ;;  %v4564_v8 = vmul.f32 %v4553_v49, %v6931_v41  ;;  %v4565_v33 = vmul.f32 %v4553_v49, %v6940_v29  ;;  %v4611_v3 = vpop.permute.xlu0 %4610 }
 0xa41   :  { %v4584_v50 = vmul.f32 %v5060_v57, %v4583_v46  ;;  %4626 = vst [vmem:[%s7020_s13 + $0x8] sm:$0xff] %v4614_v26  ;;  %v4566_v36 = vmul.f32 %v4553_v49, %v6937_v5 }
 0xa42   :  { %4627 = vst [vmem:[%s7020_s13 + $0x10] sm:$0xff] %v4615_v9 }
 0xa43   :  { %v4588_v37 = vsel %vm4587_vm15, %v5060_v57, %v4584_v50  ;;  %4628 = vst [vmem:[%s7020_s13 + $0x18] sm:$0xff] %v4616_v63 }
 0xa44   :  { %v4595_v54 = vmul.f32 %v4588_v37, %v4561_v16  ;;  %v4596_v22 = vmul.f32 %v4588_v37, %v4562_v15  ;;  %v4597_v47 = vmul.f32 %v4588_v37, %v4563_v21  ;;  %v4598_v28 = vmul.f32 %v4588_v37, %v4564_v8  ;;  %4629 = vst [vmem:[%s7020_s13 + $0x20] sm:$0xff] %v4617_v39 }
 0xa45   :  { %v4599_v41 = vmul.f32 %v4588_v37, %v4565_v33  ;;  %v4600_v23 = vmul.f32 %v4588_v37, %v4566_v36  ;;  %4630 = vst.msk [vmem:[%s7020_s13 + $0x28] sm:$0xff] %vm99_vm2, %v4618_v12 }
 0xa46   :  { %v4619_v5 = vadd.f32 %v4611_v3, %v4595_v54  ;;  %v4620_v29 = vadd.f32 %v4611_v3, %v4596_v22  ;;  %v4621_v45 = vadd.f32 %v4611_v3, %v4597_v47  ;;  %v4622_v43 = vadd.f32 %v4611_v3, %v4598_v28 }
 0xa47   :  { %v4623_v20 = vadd.f32 %v4611_v3, %v4599_v41  ;;  %v4624_v52 = vadd.f32 %v4611_v3, %v4600_v23 }
 0xa48   :  { %4631 = vst [vmem:[%s7020_s13 + $0x30] sm:$0xff] %v4619_v5 }
 0xa49   :  { %4632 = vst [vmem:[%s7020_s13 + $0x38] sm:$0xff] %v4620_v29 }
 0xa4a   :  { %4633 = vst [vmem:[%s7020_s13 + $0x40] sm:$0xff] %v4621_v45 }
 0xa4b   :  { %4634 = vst [vmem:[%s7020_s13 + $0x48] sm:$0xff] %v4622_v43 }
 0xa4c   :  { %4635 = vst [vmem:[%s7020_s13 + $0x50] sm:$0xff] %v4623_v20 }
 0xa4d   :  { %4636 = vst.msk [vmem:[%s7020_s13 + $0x58] sm:$0xff] %vm99_vm2, %v4624_v52 }

</bundles_post_ra>
